<compile_context>
chip_gen: v6e
topology: v6e:2x2x1
jax: 0.10.0
libtpu: 0.0.40
codegen_flags: <defaults>
</compile_context>

<pallas_src>
import functools

import jax
import jax.numpy as jnp
from jax.experimental import pallas as pl
from jax.experimental.pallas import tpu as pltpu

BN_EPS = 1e-5


def _round_up(x, m):
    return (x + m - 1) // m * m


# ---------------------------------------------------------------------------
# In-kernel building blocks (channels on sublanes, H*W on lanes)
# ---------------------------------------------------------------------------
def _bn_relu(x, sb_ref):
    # x: (C, M); sb_ref: (C, 2) f32 packed [scale, shift] (folded eval BN); ReLU.
    return jnp.maximum(x * sb_ref[:, 0:1] + sb_ref[:, 1:2], 0.0)


def _conv3x3_onedot(a, w2f, mask_ref, W_sp, dilation):
    """3x3 conv (stride 1, padding=dilation, dilation=dilation) as ONE MXU dot.

    a        : (Cmid, M) f32, spatially flattened row-major (m = h*W + w)
    w2f      : (Cmid, 9*Cmid) bf16, column index = (kh*3 + kw)*Cmid + cin
    mask_ref : (9, 1, M) f32 ref, host-precomputed zero-padding masks per tap
    returns  : (Cmid, M) f32
    """
    M = a.shape[-1]
    taps = []
    for kh in range(3):
        for kw in range(3):
            off = (kh - 1) * dilation * W_sp + (kw - 1) * dilation
            if off == 0:                        # centre tap: always in-bounds
                taps.append(a)
            else:
                # shifted[:, m] = a[:, (m + off) % M]  (jnp.roll convention)
                shifted = pltpu.roll(a, (-off) % M, axis=1)
                taps.append(shifted * mask_ref[kh * 3 + kw])
    stacked = jnp.concatenate(taps, axis=0).astype(jnp.bfloat16)   # (9*Cmid, M)
    return jnp.dot(w2f, stacked, preferred_element_type=jnp.float32)


def _res_block(x, prm, mask_ref, W_sp, dilation):
    """Pre-activation bottleneck ResBlock on a (Cin, M) activation."""
    sb1, w1, sb2, w2f, sb3, w3 = prm[:6]
    a1 = _bn_relu(x, sb1).astype(jnp.bfloat16)
    h1 = jnp.dot(w1[...], a1, preferred_element_type=jnp.float32)    # (Cmid, M)
    a2 = _bn_relu(h1, sb2)
    h2 = _conv3x3_onedot(a2, w2f[...], mask_ref, W_sp, dilation)     # (Cmid, M)
    a3 = _bn_relu(h2, sb3).astype(jnp.bfloat16)
    out = jnp.dot(w3[...], a3, preferred_element_type=jnp.float32)   # (Cout, M)
    if len(prm) == 7:
        # mode="UP" channel-reduction shortcut: sum groups of k = Cin//Cout
        # input channels, expressed as a constant 0/1 matmul (MXU is idle here).
        short = jnp.dot(prm[6][...], x.astype(jnp.bfloat16),
                        preferred_element_type=jnp.float32)
    else:                                        # identity (Cin == Cout)
        short = x
    return out + short


def _fish_body_kernel(x_ref, tx_ref, mask_m_ref, mask_t_ref, u_ref, *rest,
                      n_main, block_nparams, out_c, trans_c, W, dilation):
    o_ref = rest[-1]
    prm = rest[:-1]
    blocks, idx = [], 0
    for cnt in block_nparams:
        blocks.append(prm[idx:idx + cnt])
        idx += cnt

    # ---- UpStage: ResBlock("UP") + (num_blk-1) identity ResBlocks ----------
    cur = x_ref[0]                                        # (in_c, H*W) bf16
    for b in range(n_main):
        cur = _res_block(cur, blocks[b], mask_m_ref, W, dilation)
    # nn.Upsample(scale_factor=2, nearest), fused as a one-hot selection matmul.
    up = jnp.dot(cur, u_ref[...], preferred_element_type=jnp.float32)
    o_ref[0, 0:out_c, :] = up.astype(jnp.float32)         # concat slot [0:out_c)

    # ---- TransferBlock: num_trans identity ResBlocks at 2H x 2W ------------
    t = tx_ref[0]                                         # (trans_c, 4*H*W) bf16
    for b in range(n_main, len(blocks)):
        t = _res_block(t, blocks[b], mask_t_ref, 2 * W, 1)
    o_ref[0, out_c:out_c + trans_c, :] = t.astype(jnp.float32)


# ---------------------------------------------------------------------------
# Host-side grid-invariant constants
# ---------------------------------------------------------------------------
def _conv_masks(H, W, dilation):
    """(9, 1, H*W) f32 validity masks (== zero padding) for the 9 conv taps."""
    m = jnp.arange(H * W, dtype=jnp.int32)
    row, col = m // W, m % W
    masks = []
    for kh in range(3):
        dh = (kh - 1) * dilation
        for kw in range(3):
            dw = (kw - 1) * dilation
            ok = ((col + dw >= 0) & (col + dw < W) &
                  (row + dh >= 0) & (row + dh < H))
            masks.append(ok)
    return jnp.stack(masks).astype(jnp.float32).reshape(9, 1, H * W)


def _upsample_matrix(H, W):
    """U[m1, m2] = 1 iff input pixel m1 is the 2x nearest-neighbour source of
    output pixel m2 (row-major flattening)."""
    m2 = jnp.arange(4 * H * W, dtype=jnp.int32)
    h2, w2 = m2 // (2 * W), m2 % (2 * W)
    src = (h2 // 2) * W + (w2 // 2)
    return (jnp.arange(H * W, dtype=jnp.int32)[:, None]
            == src[None, :]).astype(jnp.float32)          # (H*W, 4*H*W)


# ---------------------------------------------------------------------------
# Pallas wrapper: whole FishBody.forward in one fused pallas_call
# ---------------------------------------------------------------------------
def _const_spec(shape):
    zeros = (0,) * len(shape)
    return pl.BlockSpec(shape, lambda n, _z=zeros: _z)


def fish_body_forward(params, x, trans_x, dilation=1):
    """FishBody.forward: concat([UpStage(x), TransferBlock(trans_x)], dim=1)."""
    N, in_c, H, W = x.shape
    Nt, trans_c, H2, W2 = trans_x.shape
    assert Nt == N and H2 == 2 * H and W2 == 2 * W
    M1, M2 = H * W, H2 * W2
    out_c = params["blocks"][-1]["w3"].shape[0]
    c_total = out_c + trans_c

    xf = x.astype(jnp.bfloat16).reshape(N, in_c, M1)      # bf16 halves DMA bytes
    tf = trans_x.astype(jnp.bfloat16).reshape(N, trans_c, M2)
    mask_m = _conv_masks(H, W, dilation)
    mask_t = _conv_masks(H2, W2, 1)
    umat = _upsample_matrix(H, W)

    inputs = [xf, tf, mask_m, mask_t, umat]
    in_specs = [
        pl.BlockSpec((1, in_c, M1), lambda n: (n, 0, 0)),
        pl.BlockSpec((1, trans_c, M2), lambda n: (n, 0, 0)),
        _const_spec(mask_m.shape),
        _const_spec(mask_t.shape),
        _const_spec(umat.shape),
    ]
    block_nparams = []
    for p in params["blocks"] + params["trans"]:
        arrs = [p["sb1"], p["w1"], p["sb2"], p["w2"], p["sb3"], p["w3"]]
        if "rmat" in p:
            arrs.append(p["rmat"])
        block_nparams.append(len(arrs))
        for a in arrs:
            inputs.append(a)
            in_specs.append(_const_spec(a.shape))

    kern = functools.partial(
        _fish_body_kernel,
        n_main=len(params["blocks"]),
        block_nparams=tuple(block_nparams),
        out_c=out_c, trans_c=trans_c, W=W, dilation=dilation)

    out = pl.pallas_call(
        kern,
        out_shape=jax.ShapeDtypeStruct((N, c_total, M2), jnp.float32),
        grid=(N,),
        in_specs=in_specs,
        out_specs=pl.BlockSpec((1, c_total, M2), lambda n: (n, 0, 0)),
        compiler_params=pltpu.CompilerParams(
            dimension_semantics=("parallel",)),
    )(*inputs)
    return out.reshape(N, c_total, H2, W2)


# ---------------------------------------------------------------------------
# Parameter construction (deterministic, synthetic; eval-mode BN folded)
# ---------------------------------------------------------------------------
def _init_bn(key, c):
    k1, k2, k3, k4 = jax.random.split(key, 4)
    gamma = 1.0 + 0.1 * jax.random.normal(k1, (c,), jnp.float32)
    beta = 0.1 * jax.random.normal(k2, (c,), jnp.float32)
    mean = 0.1 * jax.random.normal(k3, (c,), jnp.float32)
    var = 1.0 + 0.1 * jax.random.uniform(k4, (c,), jnp.float32)
    s = gamma / jnp.sqrt(var + BN_EPS)
    b = beta - mean * s
    return jnp.stack([s, b], axis=1)          # (c, 2) packed [scale, shift]


def _init_conv(key, kh, kw, cin, cout):
    # PyTorch layout (cout, cin, kh, kw)
    fan_in = cin * kh * kw
    return jax.random.normal(key, (cout, cin, kh, kw), jnp.float32) / jnp.sqrt(
        float(fan_in))


def _init_resblock(key, in_c, out_c, mode=""):
    assert out_c % 4 == 0
    mid = out_c // 4
    mid_p = _round_up(mid, 16)    # pad mid channels for bf16 sublane alignment;
                                  # padded weight rows/cols are zero -> exact.
    keys = jax.random.split(key, 6)
    p = {}
    p["sb1"] = _init_bn(keys[0], in_c)                                # (in_c, 2)
    w1 = _init_conv(keys[1], 1, 1, in_c, mid)[:, :, 0, 0]             # (mid, in_c)
    p["w1"] = jnp.zeros((mid_p, in_c), jnp.float32
                        ).at[:mid].set(w1).astype(jnp.bfloat16)
    p["sb2"] = jnp.zeros((mid_p, 2), jnp.float32).at[:mid].set(
        _init_bn(keys[2], mid))
    w2 = _init_conv(keys[3], 3, 3, mid, mid)                          # (mid, mid, 3, 3)
    w2p = jnp.zeros((mid_p, mid_p, 3, 3), jnp.float32).at[:mid, :mid].set(w2)
    # (Cout, kh, kw, Cin) -> (Cout, 9*Cin): column index (kh*3+kw)*mid_p + cin
    # matches the in-kernel tap stacking order.
    p["w2"] = jnp.transpose(w2p, (0, 2, 3, 1)).reshape(
        mid_p, 9 * mid_p).astype(jnp.bfloat16)
    p["sb3"] = jnp.zeros((mid_p, 2), jnp.float32).at[:mid].set(
        _init_bn(keys[4], mid))
    w3 = _init_conv(keys[5], 1, 1, mid, out_c)[:, :, 0, 0]            # (out_c, mid)
    p["w3"] = jnp.zeros((out_c, mid_p), jnp.float32
                        ).at[:, :mid].set(w3).astype(jnp.bfloat16)
    if mode == "UP":
        assert in_c % out_c == 0
        k = in_c // out_c
        # rmat[g, c] = 1 iff c // k == g  ->  rmat @ x sums groups of k channels
        p["rmat"] = (jnp.arange(out_c)[:, None]
                     == (jnp.arange(in_c)[None, :] // k)).astype(jnp.bfloat16)
    # (1x1-projection shortcut never occurs inside FishBody, so not needed.)
    return p


def init_fish_body(key, in_c, out_c, num_blk, trans_in_c, num_trans):
    keys = jax.random.split(key, num_blk + num_trans)
    blocks = [_init_resblock(keys[0], in_c, out_c, mode="UP")]
    for i in range(1, num_blk):
        blocks.append(_init_resblock(keys[i], out_c, out_c))
    trans = [_init_resblock(keys[num_blk + i], trans_in_c, trans_in_c)
             for i in range(num_trans)]
    return {"blocks": blocks, "trans": trans}


# ---------------------------------------------------------------------------
# Demo
# ---------------------------------------------------------------------------
if __name__ == "__main__":
    # FishBody(in_c=32, out_c=16, num_blk=2, trans_in_c=16, num_trans=1)
    in_c, out_c, num_blk, trans_in_c, num_trans = 32, 16, 2, 16, 1
    N, H, W = 2, 16, 16   # main path spatial; transfer path is 2H x 2W

    key = jax.random.PRNGKey(0)
    k_par, k_x, k_t = jax.random.split(key, 3)
    params = init_fish_body(k_par, in_c, out_c, num_blk, trans_in_c, num_trans)

    x = jax.random.normal(k_x, (N, in_c, H, W), jnp.float32)               # NCHW
    trans_x = jax.random.normal(k_t, (N, trans_in_c, 2 * H, 2 * W),
                                jnp.float32)                               # NCHW

    out = fish_body_forward(params, x, trans_x)
    out = jax.block_until_ready(out)

    expected_shape = (N, out_c + trans_in_c, 2 * H, 2 * W)
    assert out.shape == expected_shape, (out.shape, expected_shape)
    assert bool(jnp.all(jnp.isfinite(out)))
    print("KERNEL_OK")
</pallas_src>

<mosaic_0001>
module attributes {stable_mosaic.version = 11 : i64} {
  func.func @_fish_body_kernel(%arg0: i32, %arg1: memref<1x32x256xbf16, #tpu.memory_space<vmem>>, %arg2: memref<1x16x1024xbf16, #tpu.memory_space<vmem>>, %arg3: memref<9x1x256xf32, #tpu.memory_space<vmem>>, %arg4: memref<9x1x1024xf32, #tpu.memory_space<vmem>>, %arg5: memref<256x1024xf32, #tpu.memory_space<vmem>>, %arg6: memref<32x2xf32, #tpu.memory_space<vmem>>, %arg7: memref<16x32xbf16, #tpu.memory_space<vmem>>, %arg8: memref<16x2xf32, #tpu.memory_space<vmem>>, %arg9: memref<16x144xbf16, #tpu.memory_space<vmem>>, %arg10: memref<16x2xf32, #tpu.memory_space<vmem>>, %arg11: memref<16x16xbf16, #tpu.memory_space<vmem>>, %arg12: memref<16x32xbf16, #tpu.memory_space<vmem>>, %arg13: memref<16x2xf32, #tpu.memory_space<vmem>>, %arg14: memref<16x16xbf16, #tpu.memory_space<vmem>>, %arg15: memref<16x2xf32, #tpu.memory_space<vmem>>, %arg16: memref<16x144xbf16, #tpu.memory_space<vmem>>, %arg17: memref<16x2xf32, #tpu.memory_space<vmem>>, %arg18: memref<16x16xbf16, #tpu.memory_space<vmem>>, %arg19: memref<16x2xf32, #tpu.memory_space<vmem>>, %arg20: memref<16x16xbf16, #tpu.memory_space<vmem>>, %arg21: memref<16x2xf32, #tpu.memory_space<vmem>>, %arg22: memref<16x144xbf16, #tpu.memory_space<vmem>>, %arg23: memref<16x2xf32, #tpu.memory_space<vmem>>, %arg24: memref<16x16xbf16, #tpu.memory_space<vmem>>, %arg25: memref<1x32x1024xf32, #tpu.memory_space<vmem>>) attributes {dimension_semantics = [#tpu.dimension_semantics<parallel>], iteration_bounds = array<i64: 2>, scalar_prefetch = 0 : i64, scratch_operands = 0 : i64, tpu.core_type = #tpu.core_type<tc>, window_params = [{transform_indices = @transform_0, window_bounds = array<i64: 1, 32, 256>}, {transform_indices = @transform_1, window_bounds = array<i64: 1, 16, 1024>}, {pipeline_mode = #tpu.pipeline_mode<synchronous>, transform_indices = @transform_2, window_bounds = array<i64: 9, 1, 256>}, {pipeline_mode = #tpu.pipeline_mode<synchronous>, transform_indices = @transform_3, window_bounds = array<i64: 9, 1, 1024>}, {pipeline_mode = #tpu.pipeline_mode<synchronous>, transform_indices = @transform_4, window_bounds = array<i64: 256, 1024>}, {pipeline_mode = #tpu.pipeline_mode<synchronous>, transform_indices = @transform_5, window_bounds = array<i64: 32, 2>}, {pipeline_mode = #tpu.pipeline_mode<synchronous>, transform_indices = @transform_6, window_bounds = array<i64: 16, 32>}, {pipeline_mode = #tpu.pipeline_mode<synchronous>, transform_indices = @transform_7, window_bounds = array<i64: 16, 2>}, {pipeline_mode = #tpu.pipeline_mode<synchronous>, transform_indices = @transform_8, window_bounds = array<i64: 16, 144>}, {pipeline_mode = #tpu.pipeline_mode<synchronous>, transform_indices = @transform_9, window_bounds = array<i64: 16, 2>}, {pipeline_mode = #tpu.pipeline_mode<synchronous>, transform_indices = @transform_10, window_bounds = array<i64: 16, 16>}, {pipeline_mode = #tpu.pipeline_mode<synchronous>, transform_indices = @transform_11, window_bounds = array<i64: 16, 32>}, {pipeline_mode = #tpu.pipeline_mode<synchronous>, transform_indices = @transform_12, window_bounds = array<i64: 16, 2>}, {pipeline_mode = #tpu.pipeline_mode<synchronous>, transform_indices = @transform_13, window_bounds = array<i64: 16, 16>}, {pipeline_mode = #tpu.pipeline_mode<synchronous>, transform_indices = @transform_14, window_bounds = array<i64: 16, 2>}, {pipeline_mode = #tpu.pipeline_mode<synchronous>, transform_indices = @transform_15, window_bounds = array<i64: 16, 144>}, {pipeline_mode = #tpu.pipeline_mode<synchronous>, transform_indices = @transform_16, window_bounds = array<i64: 16, 2>}, {pipeline_mode = #tpu.pipeline_mode<synchronous>, transform_indices = @transform_17, window_bounds = array<i64: 16, 16>}, {pipeline_mode = #tpu.pipeline_mode<synchronous>, transform_indices = @transform_18, window_bounds = array<i64: 16, 2>}, {pipeline_mode = #tpu.pipeline_mode<synchronous>, transform_indices = @transform_19, window_bounds = array<i64: 16, 16>}, {pipeline_mode = #tpu.pipeline_mode<synchronous>, transform_indices = @transform_20, window_bounds = array<i64: 16, 2>}, {pipeline_mode = #tpu.pipeline_mode<synchronous>, transform_indices = @transform_21, window_bounds = array<i64: 16, 144>}, {pipeline_mode = #tpu.pipeline_mode<synchronous>, transform_indices = @transform_22, window_bounds = array<i64: 16, 2>}, {pipeline_mode = #tpu.pipeline_mode<synchronous>, transform_indices = @transform_23, window_bounds = array<i64: 16, 16>}, {transform_indices = @transform_24, window_bounds = array<i64: 1, 32, 1024>}]} {
    %c0 = arith.constant 0 : index
    %c0_0 = arith.constant 0 : index
    %c0_1 = arith.constant 0 : index
    %0 = vector.load %arg1[%c0, %c0_0, %c0_1] : memref<1x32x256xbf16, #tpu.memory_space<vmem>>, vector<1x32x256xbf16>
    %1 = vector.shape_cast %0 : vector<1x32x256xbf16> to vector<32x256xbf16>
    %c0_2 = arith.constant 0 : index
    %c0_3 = arith.constant 0 : index
    %2 = vector.load %arg6[%c0_2, %c0_3] : memref<32x2xf32, #tpu.memory_space<vmem>>, vector<32x1xf32>
    %3 = arith.extf %1 : vector<32x256xbf16> to vector<32x256xf32>
    %4 = vector.broadcast %2 : vector<32x1xf32> to vector<32x256xf32>
    %5 = arith.mulf %3, %4 : vector<32x256xf32>
    %c0_4 = arith.constant 0 : index
    %c1 = arith.constant 1 : index
    %6 = vector.load %arg6[%c0_4, %c1] : memref<32x2xf32, #tpu.memory_space<vmem>>, vector<32x1xf32>
    %7 = vector.broadcast %6 : vector<32x1xf32> to vector<32x256xf32>
    %8 = arith.addf %5, %7 : vector<32x256xf32>
    %cst = arith.constant 0.000000e+00 : f32
    %9 = vector.broadcast %cst : f32 to vector<32x256xf32>
    %10 = arith.maximumf %8, %9 : vector<32x256xf32>
    %11 = arith.truncf %10 : vector<32x256xf32> to vector<32x256xbf16>
    %c0_5 = arith.constant 0 : index
    %c0_6 = arith.constant 0 : index
    %12 = vector.load %arg7[%c0_5, %c0_6] : memref<16x32xbf16, #tpu.memory_space<vmem>>, vector<16x32xbf16>
    %cst_7 = arith.constant dense<0.000000e+00> : vector<16x256xf32>
    %13 = tpu.matmul %12, %11, %cst_7 {dimension_numbers = #tpu.dot_dimension_numbers<[1], [0], [0], [1], [0, 0, 1, 1], [], []>} : vector<16x32xbf16>, vector<32x256xbf16>, vector<16x256xf32> -> vector<16x256xf32>
    %c0_8 = arith.constant 0 : index
    %c0_9 = arith.constant 0 : index
    %14 = vector.load %arg8[%c0_8, %c0_9] : memref<16x2xf32, #tpu.memory_space<vmem>>, vector<16x1xf32>
    %15 = vector.broadcast %14 : vector<16x1xf32> to vector<16x256xf32>
    %16 = arith.mulf %13, %15 : vector<16x256xf32>
    %c0_10 = arith.constant 0 : index
    %c1_11 = arith.constant 1 : index
    %17 = vector.load %arg8[%c0_10, %c1_11] : memref<16x2xf32, #tpu.memory_space<vmem>>, vector<16x1xf32>
    %18 = vector.broadcast %17 : vector<16x1xf32> to vector<16x256xf32>
    %19 = arith.addf %16, %18 : vector<16x256xf32>
    %cst_12 = arith.constant 0.000000e+00 : f32
    %20 = vector.broadcast %cst_12 : f32 to vector<16x256xf32>
    %21 = arith.maximumf %19, %20 : vector<16x256xf32>
    %c0_13 = arith.constant 0 : index
    %c0_14 = arith.constant 0 : index
    %22 = vector.load %arg9[%c0_13, %c0_14] : memref<16x144xbf16, #tpu.memory_space<vmem>>, vector<16x144xbf16>
    %c17_i32 = arith.constant 17 : i32
    %23 = tpu.dynamic_rotate %21 by %c17_i32 dim 1 : vector<16x256xf32>, i32 -> vector<16x256xf32>
    %c0_15 = arith.constant 0 : index
    %c0_16 = arith.constant 0 : index
    %c0_17 = arith.constant 0 : index
    %24 = vector.load %arg3[%c0_15, %c0_16, %c0_17] : memref<9x1x256xf32, #tpu.memory_space<vmem>>, vector<1x1x256xf32>
    %25 = vector.shape_cast %24 : vector<1x1x256xf32> to vector<1x256xf32>
    %26 = vector.broadcast %25 : vector<1x256xf32> to vector<16x256xf32>
    %27 = arith.mulf %23, %26 : vector<16x256xf32>
    %c16_i32 = arith.constant 16 : i32
    %28 = tpu.dynamic_rotate %21 by %c16_i32 dim 1 : vector<16x256xf32>, i32 -> vector<16x256xf32>
    %c1_18 = arith.constant 1 : index
    %c0_19 = arith.constant 0 : index
    %c0_20 = arith.constant 0 : index
    %29 = vector.load %arg3[%c1_18, %c0_19, %c0_20] : memref<9x1x256xf32, #tpu.memory_space<vmem>>, vector<1x1x256xf32>
    %30 = vector.shape_cast %29 : vector<1x1x256xf32> to vector<1x256xf32>
    %31 = vector.broadcast %30 : vector<1x256xf32> to vector<16x256xf32>
    %32 = arith.mulf %28, %31 : vector<16x256xf32>
    %c15_i32 = arith.constant 15 : i32
    %33 = tpu.dynamic_rotate %21 by %c15_i32 dim 1 : vector<16x256xf32>, i32 -> vector<16x256xf32>
    %c2 = arith.constant 2 : index
    %c0_21 = arith.constant 0 : index
    %c0_22 = arith.constant 0 : index
    %34 = vector.load %arg3[%c2, %c0_21, %c0_22] : memref<9x1x256xf32, #tpu.memory_space<vmem>>, vector<1x1x256xf32>
    %35 = vector.shape_cast %34 : vector<1x1x256xf32> to vector<1x256xf32>
    %36 = vector.broadcast %35 : vector<1x256xf32> to vector<16x256xf32>
    %37 = arith.mulf %33, %36 : vector<16x256xf32>
    %c1_i32 = arith.constant 1 : i32
    %38 = tpu.dynamic_rotate %21 by %c1_i32 dim 1 : vector<16x256xf32>, i32 -> vector<16x256xf32>
    %c3 = arith.constant 3 : index
    %c0_23 = arith.constant 0 : index
    %c0_24 = arith.constant 0 : index
    %39 = vector.load %arg3[%c3, %c0_23, %c0_24] : memref<9x1x256xf32, #tpu.memory_space<vmem>>, vector<1x1x256xf32>
    %40 = vector.shape_cast %39 : vector<1x1x256xf32> to vector<1x256xf32>
    %41 = vector.broadcast %40 : vector<1x256xf32> to vector<16x256xf32>
    %42 = arith.mulf %38, %41 : vector<16x256xf32>
    %c255_i32 = arith.constant 255 : i32
    %43 = tpu.dynamic_rotate %21 by %c255_i32 dim 1 : vector<16x256xf32>, i32 -> vector<16x256xf32>
    %c5 = arith.constant 5 : index
    %c0_25 = arith.constant 0 : index
    %c0_26 = arith.constant 0 : index
    %44 = vector.load %arg3[%c5, %c0_25, %c0_26] : memref<9x1x256xf32, #tpu.memory_space<vmem>>, vector<1x1x256xf32>
    %45 = vector.shape_cast %44 : vector<1x1x256xf32> to vector<1x256xf32>
    %46 = vector.broadcast %45 : vector<1x256xf32> to vector<16x256xf32>
    %47 = arith.mulf %43, %46 : vector<16x256xf32>
    %c241_i32 = arith.constant 241 : i32
    %48 = tpu.dynamic_rotate %21 by %c241_i32 dim 1 : vector<16x256xf32>, i32 -> vector<16x256xf32>
    %c6 = arith.constant 6 : index
    %c0_27 = arith.constant 0 : index
    %c0_28 = arith.constant 0 : index
    %49 = vector.load %arg3[%c6, %c0_27, %c0_28] : memref<9x1x256xf32, #tpu.memory_space<vmem>>, vector<1x1x256xf32>
    %50 = vector.shape_cast %49 : vector<1x1x256xf32> to vector<1x256xf32>
    %51 = vector.broadcast %50 : vector<1x256xf32> to vector<16x256xf32>
    %52 = arith.mulf %48, %51 : vector<16x256xf32>
    %c240_i32 = arith.constant 240 : i32
    %53 = tpu.dynamic_rotate %21 by %c240_i32 dim 1 : vector<16x256xf32>, i32 -> vector<16x256xf32>
    %c7 = arith.constant 7 : index
    %c0_29 = arith.constant 0 : index
    %c0_30 = arith.constant 0 : index
    %54 = vector.load %arg3[%c7, %c0_29, %c0_30] : memref<9x1x256xf32, #tpu.memory_space<vmem>>, vector<1x1x256xf32>
    %55 = vector.shape_cast %54 : vector<1x1x256xf32> to vector<1x256xf32>
    %56 = vector.broadcast %55 : vector<1x256xf32> to vector<16x256xf32>
    %57 = arith.mulf %53, %56 : vector<16x256xf32>
    %c239_i32 = arith.constant 239 : i32
    %58 = tpu.dynamic_rotate %21 by %c239_i32 dim 1 : vector<16x256xf32>, i32 -> vector<16x256xf32>
    %c8 = arith.constant 8 : index
    %c0_31 = arith.constant 0 : index
    %c0_32 = arith.constant 0 : index
    %59 = vector.load %arg3[%c8, %c0_31, %c0_32] : memref<9x1x256xf32, #tpu.memory_space<vmem>>, vector<1x1x256xf32>
    %60 = vector.shape_cast %59 : vector<1x1x256xf32> to vector<1x256xf32>
    %61 = vector.broadcast %60 : vector<1x256xf32> to vector<16x256xf32>
    %62 = arith.mulf %58, %61 : vector<16x256xf32>
    %63 = tpu.concatenate %27, %32, %37, %42, %21, %47, %52, %57, %62 in 0 : vector<16x256xf32>, vector<16x256xf32>, vector<16x256xf32>, vector<16x256xf32>, vector<16x256xf32>, vector<16x256xf32>, vector<16x256xf32>, vector<16x256xf32>, vector<16x256xf32> -> vector<144x256xf32>
    %64 = arith.truncf %63 : vector<144x256xf32> to vector<144x256xbf16>
    %cst_33 = arith.constant dense<0.000000e+00> : vector<16x256xf32>
    %65 = tpu.matmul %22, %64, %cst_33 {dimension_numbers = #tpu.dot_dimension_numbers<[1], [0], [0], [1], [0, 0, 1, 1], [], []>} : vector<16x144xbf16>, vector<144x256xbf16>, vector<16x256xf32> -> vector<16x256xf32>
    %c0_34 = arith.constant 0 : index
    %c0_35 = arith.constant 0 : index
    %66 = vector.load %arg10[%c0_34, %c0_35] : memref<16x2xf32, #tpu.memory_space<vmem>>, vector<16x1xf32>
    %67 = vector.broadcast %66 : vector<16x1xf32> to vector<16x256xf32>
    %68 = arith.mulf %65, %67 : vector<16x256xf32>
    %c0_36 = arith.constant 0 : index
    %c1_37 = arith.constant 1 : index
    %69 = vector.load %arg10[%c0_36, %c1_37] : memref<16x2xf32, #tpu.memory_space<vmem>>, vector<16x1xf32>
    %70 = vector.broadcast %69 : vector<16x1xf32> to vector<16x256xf32>
    %71 = arith.addf %68, %70 : vector<16x256xf32>
    %cst_38 = arith.constant 0.000000e+00 : f32
    %72 = vector.broadcast %cst_38 : f32 to vector<16x256xf32>
    %73 = arith.maximumf %71, %72 : vector<16x256xf32>
    %74 = arith.truncf %73 : vector<16x256xf32> to vector<16x256xbf16>
    %c0_39 = arith.constant 0 : index
    %c0_40 = arith.constant 0 : index
    %75 = vector.load %arg11[%c0_39, %c0_40] : memref<16x16xbf16, #tpu.memory_space<vmem>>, vector<16x16xbf16>
    %cst_41 = arith.constant dense<0.000000e+00> : vector<16x256xf32>
    %76 = tpu.matmul %75, %74, %cst_41 {dimension_numbers = #tpu.dot_dimension_numbers<[1], [0], [0], [1], [0, 0, 1, 1], [], []>} : vector<16x16xbf16>, vector<16x256xbf16>, vector<16x256xf32> -> vector<16x256xf32>
    %c0_42 = arith.constant 0 : index
    %c0_43 = arith.constant 0 : index
    %77 = vector.load %arg12[%c0_42, %c0_43] : memref<16x32xbf16, #tpu.memory_space<vmem>>, vector<16x32xbf16>
    %cst_44 = arith.constant dense<0.000000e+00> : vector<16x256xf32>
    %78 = tpu.matmul %77, %1, %cst_44 {dimension_numbers = #tpu.dot_dimension_numbers<[1], [0], [0], [1], [0, 0, 1, 1], [], []>} : vector<16x32xbf16>, vector<32x256xbf16>, vector<16x256xf32> -> vector<16x256xf32>
    %79 = arith.addf %76, %78 : vector<16x256xf32>
    %c0_45 = arith.constant 0 : index
    %c0_46 = arith.constant 0 : index
    %80 = vector.load %arg13[%c0_45, %c0_46] : memref<16x2xf32, #tpu.memory_space<vmem>>, vector<16x1xf32>
    %81 = vector.broadcast %80 : vector<16x1xf32> to vector<16x256xf32>
    %82 = arith.mulf %79, %81 : vector<16x256xf32>
    %c0_47 = arith.constant 0 : index
    %c1_48 = arith.constant 1 : index
    %83 = vector.load %arg13[%c0_47, %c1_48] : memref<16x2xf32, #tpu.memory_space<vmem>>, vector<16x1xf32>
    %84 = vector.broadcast %83 : vector<16x1xf32> to vector<16x256xf32>
    %85 = arith.addf %82, %84 : vector<16x256xf32>
    %cst_49 = arith.constant 0.000000e+00 : f32
    %86 = vector.broadcast %cst_49 : f32 to vector<16x256xf32>
    %87 = arith.maximumf %85, %86 : vector<16x256xf32>
    %88 = arith.truncf %87 : vector<16x256xf32> to vector<16x256xbf16>
    %c0_50 = arith.constant 0 : index
    %c0_51 = arith.constant 0 : index
    %89 = vector.load %arg14[%c0_50, %c0_51] : memref<16x16xbf16, #tpu.memory_space<vmem>>, vector<16x16xbf16>
    %cst_52 = arith.constant dense<0.000000e+00> : vector<16x256xf32>
    %90 = tpu.matmul %89, %88, %cst_52 {dimension_numbers = #tpu.dot_dimension_numbers<[1], [0], [0], [1], [0, 0, 1, 1], [], []>} : vector<16x16xbf16>, vector<16x256xbf16>, vector<16x256xf32> -> vector<16x256xf32>
    %c0_53 = arith.constant 0 : index
    %c0_54 = arith.constant 0 : index
    %91 = vector.load %arg15[%c0_53, %c0_54] : memref<16x2xf32, #tpu.memory_space<vmem>>, vector<16x1xf32>
    %92 = vector.broadcast %91 : vector<16x1xf32> to vector<16x256xf32>
    %93 = arith.mulf %90, %92 : vector<16x256xf32>
    %c0_55 = arith.constant 0 : index
    %c1_56 = arith.constant 1 : index
    %94 = vector.load %arg15[%c0_55, %c1_56] : memref<16x2xf32, #tpu.memory_space<vmem>>, vector<16x1xf32>
    %95 = vector.broadcast %94 : vector<16x1xf32> to vector<16x256xf32>
    %96 = arith.addf %93, %95 : vector<16x256xf32>
    %cst_57 = arith.constant 0.000000e+00 : f32
    %97 = vector.broadcast %cst_57 : f32 to vector<16x256xf32>
    %98 = arith.maximumf %96, %97 : vector<16x256xf32>
    %c0_58 = arith.constant 0 : index
    %c0_59 = arith.constant 0 : index
    %99 = vector.load %arg16[%c0_58, %c0_59] : memref<16x144xbf16, #tpu.memory_space<vmem>>, vector<16x144xbf16>
    %c17_i32_60 = arith.constant 17 : i32
    %100 = tpu.dynamic_rotate %98 by %c17_i32_60 dim 1 : vector<16x256xf32>, i32 -> vector<16x256xf32>
    %c0_61 = arith.constant 0 : index
    %c0_62 = arith.constant 0 : index
    %c0_63 = arith.constant 0 : index
    %101 = vector.load %arg3[%c0_61, %c0_62, %c0_63] : memref<9x1x256xf32, #tpu.memory_space<vmem>>, vector<1x1x256xf32>
    %102 = vector.shape_cast %101 : vector<1x1x256xf32> to vector<1x256xf32>
    %103 = vector.broadcast %102 : vector<1x256xf32> to vector<16x256xf32>
    %104 = arith.mulf %100, %103 : vector<16x256xf32>
    %c16_i32_64 = arith.constant 16 : i32
    %105 = tpu.dynamic_rotate %98 by %c16_i32_64 dim 1 : vector<16x256xf32>, i32 -> vector<16x256xf32>
    %c1_65 = arith.constant 1 : index
    %c0_66 = arith.constant 0 : index
    %c0_67 = arith.constant 0 : index
    %106 = vector.load %arg3[%c1_65, %c0_66, %c0_67] : memref<9x1x256xf32, #tpu.memory_space<vmem>>, vector<1x1x256xf32>
    %107 = vector.shape_cast %106 : vector<1x1x256xf32> to vector<1x256xf32>
    %108 = vector.broadcast %107 : vector<1x256xf32> to vector<16x256xf32>
    %109 = arith.mulf %105, %108 : vector<16x256xf32>
    %c15_i32_68 = arith.constant 15 : i32
    %110 = tpu.dynamic_rotate %98 by %c15_i32_68 dim 1 : vector<16x256xf32>, i32 -> vector<16x256xf32>
    %c2_69 = arith.constant 2 : index
    %c0_70 = arith.constant 0 : index
    %c0_71 = arith.constant 0 : index
    %111 = vector.load %arg3[%c2_69, %c0_70, %c0_71] : memref<9x1x256xf32, #tpu.memory_space<vmem>>, vector<1x1x256xf32>
    %112 = vector.shape_cast %111 : vector<1x1x256xf32> to vector<1x256xf32>
    %113 = vector.broadcast %112 : vector<1x256xf32> to vector<16x256xf32>
    %114 = arith.mulf %110, %113 : vector<16x256xf32>
    %c1_i32_72 = arith.constant 1 : i32
    %115 = tpu.dynamic_rotate %98 by %c1_i32_72 dim 1 : vector<16x256xf32>, i32 -> vector<16x256xf32>
    %c3_73 = arith.constant 3 : index
    %c0_74 = arith.constant 0 : index
    %c0_75 = arith.constant 0 : index
    %116 = vector.load %arg3[%c3_73, %c0_74, %c0_75] : memref<9x1x256xf32, #tpu.memory_space<vmem>>, vector<1x1x256xf32>
    %117 = vector.shape_cast %116 : vector<1x1x256xf32> to vector<1x256xf32>
    %118 = vector.broadcast %117 : vector<1x256xf32> to vector<16x256xf32>
    %119 = arith.mulf %115, %118 : vector<16x256xf32>
    %c255_i32_76 = arith.constant 255 : i32
    %120 = tpu.dynamic_rotate %98 by %c255_i32_76 dim 1 : vector<16x256xf32>, i32 -> vector<16x256xf32>
    %c5_77 = arith.constant 5 : index
    %c0_78 = arith.constant 0 : index
    %c0_79 = arith.constant 0 : index
    %121 = vector.load %arg3[%c5_77, %c0_78, %c0_79] : memref<9x1x256xf32, #tpu.memory_space<vmem>>, vector<1x1x256xf32>
    %122 = vector.shape_cast %121 : vector<1x1x256xf32> to vector<1x256xf32>
    %123 = vector.broadcast %122 : vector<1x256xf32> to vector<16x256xf32>
    %124 = arith.mulf %120, %123 : vector<16x256xf32>
    %c241_i32_80 = arith.constant 241 : i32
    %125 = tpu.dynamic_rotate %98 by %c241_i32_80 dim 1 : vector<16x256xf32>, i32 -> vector<16x256xf32>
    %c6_81 = arith.constant 6 : index
    %c0_82 = arith.constant 0 : index
    %c0_83 = arith.constant 0 : index
    %126 = vector.load %arg3[%c6_81, %c0_82, %c0_83] : memref<9x1x256xf32, #tpu.memory_space<vmem>>, vector<1x1x256xf32>
    %127 = vector.shape_cast %126 : vector<1x1x256xf32> to vector<1x256xf32>
    %128 = vector.broadcast %127 : vector<1x256xf32> to vector<16x256xf32>
    %129 = arith.mulf %125, %128 : vector<16x256xf32>
    %c240_i32_84 = arith.constant 240 : i32
    %130 = tpu.dynamic_rotate %98 by %c240_i32_84 dim 1 : vector<16x256xf32>, i32 -> vector<16x256xf32>
    %c7_85 = arith.constant 7 : index
    %c0_86 = arith.constant 0 : index
    %c0_87 = arith.constant 0 : index
    %131 = vector.load %arg3[%c7_85, %c0_86, %c0_87] : memref<9x1x256xf32, #tpu.memory_space<vmem>>, vector<1x1x256xf32>
    %132 = vector.shape_cast %131 : vector<1x1x256xf32> to vector<1x256xf32>
    %133 = vector.broadcast %132 : vector<1x256xf32> to vector<16x256xf32>
    %134 = arith.mulf %130, %133 : vector<16x256xf32>
    %c239_i32_88 = arith.constant 239 : i32
    %135 = tpu.dynamic_rotate %98 by %c239_i32_88 dim 1 : vector<16x256xf32>, i32 -> vector<16x256xf32>
    %c8_89 = arith.constant 8 : index
    %c0_90 = arith.constant 0 : index
    %c0_91 = arith.constant 0 : index
    %136 = vector.load %arg3[%c8_89, %c0_90, %c0_91] : memref<9x1x256xf32, #tpu.memory_space<vmem>>, vector<1x1x256xf32>
    %137 = vector.shape_cast %136 : vector<1x1x256xf32> to vector<1x256xf32>
    %138 = vector.broadcast %137 : vector<1x256xf32> to vector<16x256xf32>
    %139 = arith.mulf %135, %138 : vector<16x256xf32>
    %140 = tpu.concatenate %104, %109, %114, %119, %98, %124, %129, %134, %139 in 0 : vector<16x256xf32>, vector<16x256xf32>, vector<16x256xf32>, vector<16x256xf32>, vector<16x256xf32>, vector<16x256xf32>, vector<16x256xf32>, vector<16x256xf32>, vector<16x256xf32> -> vector<144x256xf32>
    %141 = arith.truncf %140 : vector<144x256xf32> to vector<144x256xbf16>
    %cst_92 = arith.constant dense<0.000000e+00> : vector<16x256xf32>
    %142 = tpu.matmul %99, %141, %cst_92 {dimension_numbers = #tpu.dot_dimension_numbers<[1], [0], [0], [1], [0, 0, 1, 1], [], []>} : vector<16x144xbf16>, vector<144x256xbf16>, vector<16x256xf32> -> vector<16x256xf32>
    %c0_93 = arith.constant 0 : index
    %c0_94 = arith.constant 0 : index
    %143 = vector.load %arg17[%c0_93, %c0_94] : memref<16x2xf32, #tpu.memory_space<vmem>>, vector<16x1xf32>
    %144 = vector.broadcast %143 : vector<16x1xf32> to vector<16x256xf32>
    %145 = arith.mulf %142, %144 : vector<16x256xf32>
    %c0_95 = arith.constant 0 : index
    %c1_96 = arith.constant 1 : index
    %146 = vector.load %arg17[%c0_95, %c1_96] : memref<16x2xf32, #tpu.memory_space<vmem>>, vector<16x1xf32>
    %147 = vector.broadcast %146 : vector<16x1xf32> to vector<16x256xf32>
    %148 = arith.addf %145, %147 : vector<16x256xf32>
    %cst_97 = arith.constant 0.000000e+00 : f32
    %149 = vector.broadcast %cst_97 : f32 to vector<16x256xf32>
    %150 = arith.maximumf %148, %149 : vector<16x256xf32>
    %151 = arith.truncf %150 : vector<16x256xf32> to vector<16x256xbf16>
    %c0_98 = arith.constant 0 : index
    %c0_99 = arith.constant 0 : index
    %152 = vector.load %arg18[%c0_98, %c0_99] : memref<16x16xbf16, #tpu.memory_space<vmem>>, vector<16x16xbf16>
    %cst_100 = arith.constant dense<0.000000e+00> : vector<16x256xf32>
    %153 = tpu.matmul %152, %151, %cst_100 {dimension_numbers = #tpu.dot_dimension_numbers<[1], [0], [0], [1], [0, 0, 1, 1], [], []>} : vector<16x16xbf16>, vector<16x256xbf16>, vector<16x256xf32> -> vector<16x256xf32>
    %154 = arith.addf %153, %79 : vector<16x256xf32>
    %c0_101 = arith.constant 0 : index
    %c0_102 = arith.constant 0 : index
    %155 = vector.load %arg5[%c0_101, %c0_102] : memref<256x1024xf32, #tpu.memory_space<vmem>>, vector<256x1024xf32>
    %cst_103 = arith.constant dense<0.000000e+00> : vector<16x1024xf32>
    %156 = tpu.matmul %154, %155, %cst_103 {dimension_numbers = #tpu.dot_dimension_numbers<[1], [0], [0], [1], [0, 0, 1, 1], [], []>} : vector<16x256xf32>, vector<256x1024xf32>, vector<16x1024xf32> -> vector<16x1024xf32>
    %c0_104 = arith.constant 0 : index
    %c0_105 = arith.constant 0 : index
    %c0_106 = arith.constant 0 : index
    %157 = vector.load %arg25[%c0_104, %c0_105, %c0_106] : memref<1x32x1024xf32, #tpu.memory_space<vmem>>, vector<1x16x1024xf32>
    %158 = vector.shape_cast %157 : vector<1x16x1024xf32> to vector<16x1024xf32>
    %159 = vector.shape_cast %156 : vector<16x1024xf32> to vector<1x16x1024xf32>
    tpu.vector_store %arg25[%c0_104, %c0_105, %c0_106], %159 {strides = array<i32>} : memref<1x32x1024xf32, #tpu.memory_space<vmem>>, vector<1x16x1024xf32>,
    %c0_107 = arith.constant 0 : index
    %c0_108 = arith.constant 0 : index
    %c0_109 = arith.constant 0 : index
    %160 = vector.load %arg2[%c0_107, %c0_108, %c0_109] : memref<1x16x1024xbf16, #tpu.memory_space<vmem>>, vector<1x16x1024xbf16>
    %161 = vector.shape_cast %160 : vector<1x16x1024xbf16> to vector<16x1024xbf16>
    %c0_110 = arith.constant 0 : index
    %c0_111 = arith.constant 0 : index
    %162 = vector.load %arg19[%c0_110, %c0_111] : memref<16x2xf32, #tpu.memory_space<vmem>>, vector<16x1xf32>
    %163 = arith.extf %161 : vector<16x1024xbf16> to vector<16x1024xf32>
    %164 = vector.broadcast %162 : vector<16x1xf32> to vector<16x1024xf32>
    %165 = arith.mulf %163, %164 : vector<16x1024xf32>
    %c0_112 = arith.constant 0 : index
    %c1_113 = arith.constant 1 : index
    %166 = vector.load %arg19[%c0_112, %c1_113] : memref<16x2xf32, #tpu.memory_space<vmem>>, vector<16x1xf32>
    %167 = vector.broadcast %166 : vector<16x1xf32> to vector<16x1024xf32>
    %168 = arith.addf %165, %167 : vector<16x1024xf32>
    %cst_114 = arith.constant 0.000000e+00 : f32
    %169 = vector.broadcast %cst_114 : f32 to vector<16x1024xf32>
    %170 = arith.maximumf %168, %169 : vector<16x1024xf32>
    %171 = arith.truncf %170 : vector<16x1024xf32> to vector<16x1024xbf16>
    %c0_115 = arith.constant 0 : index
    %c0_116 = arith.constant 0 : index
    %172 = vector.load %arg20[%c0_115, %c0_116] : memref<16x16xbf16, #tpu.memory_space<vmem>>, vector<16x16xbf16>
    %cst_117 = arith.constant dense<0.000000e+00> : vector<16x1024xf32>
    %173 = tpu.matmul %172, %171, %cst_117 {dimension_numbers = #tpu.dot_dimension_numbers<[1], [0], [0], [1], [0, 0, 1, 1], [], []>} : vector<16x16xbf16>, vector<16x1024xbf16>, vector<16x1024xf32> -> vector<16x1024xf32>
    %c0_118 = arith.constant 0 : index
    %c0_119 = arith.constant 0 : index
    %174 = vector.load %arg21[%c0_118, %c0_119] : memref<16x2xf32, #tpu.memory_space<vmem>>, vector<16x1xf32>
    %175 = vector.broadcast %174 : vector<16x1xf32> to vector<16x1024xf32>
    %176 = arith.mulf %173, %175 : vector<16x1024xf32>
    %c0_120 = arith.constant 0 : index
    %c1_121 = arith.constant 1 : index
    %177 = vector.load %arg21[%c0_120, %c1_121] : memref<16x2xf32, #tpu.memory_space<vmem>>, vector<16x1xf32>
    %178 = vector.broadcast %177 : vector<16x1xf32> to vector<16x1024xf32>
    %179 = arith.addf %176, %178 : vector<16x1024xf32>
    %cst_122 = arith.constant 0.000000e+00 : f32
    %180 = vector.broadcast %cst_122 : f32 to vector<16x1024xf32>
    %181 = arith.maximumf %179, %180 : vector<16x1024xf32>
    %c0_123 = arith.constant 0 : index
    %c0_124 = arith.constant 0 : index
    %182 = vector.load %arg22[%c0_123, %c0_124] : memref<16x144xbf16, #tpu.memory_space<vmem>>, vector<16x144xbf16>
    %c33_i32 = arith.constant 33 : i32
    %183 = tpu.dynamic_rotate %181 by %c33_i32 dim 1 : vector<16x1024xf32>, i32 -> vector<16x1024xf32>
    %c0_125 = arith.constant 0 : index
    %c0_126 = arith.constant 0 : index
    %c0_127 = arith.constant 0 : index
    %184 = vector.load %arg4[%c0_125, %c0_126, %c0_127] : memref<9x1x1024xf32, #tpu.memory_space<vmem>>, vector<1x1x1024xf32>
    %185 = vector.shape_cast %184 : vector<1x1x1024xf32> to vector<1x1024xf32>
    %186 = vector.broadcast %185 : vector<1x1024xf32> to vector<16x1024xf32>
    %187 = arith.mulf %183, %186 : vector<16x1024xf32>
    %c32_i32 = arith.constant 32 : i32
    %188 = tpu.dynamic_rotate %181 by %c32_i32 dim 1 : vector<16x1024xf32>, i32 -> vector<16x1024xf32>
    %c1_128 = arith.constant 1 : index
    %c0_129 = arith.constant 0 : index
    %c0_130 = arith.constant 0 : index
    %189 = vector.load %arg4[%c1_128, %c0_129, %c0_130] : memref<9x1x1024xf32, #tpu.memory_space<vmem>>, vector<1x1x1024xf32>
    %190 = vector.shape_cast %189 : vector<1x1x1024xf32> to vector<1x1024xf32>
    %191 = vector.broadcast %190 : vector<1x1024xf32> to vector<16x1024xf32>
    %192 = arith.mulf %188, %191 : vector<16x1024xf32>
    %c31_i32 = arith.constant 31 : i32
    %193 = tpu.dynamic_rotate %181 by %c31_i32 dim 1 : vector<16x1024xf32>, i32 -> vector<16x1024xf32>
    %c2_131 = arith.constant 2 : index
    %c0_132 = arith.constant 0 : index
    %c0_133 = arith.constant 0 : index
    %194 = vector.load %arg4[%c2_131, %c0_132, %c0_133] : memref<9x1x1024xf32, #tpu.memory_space<vmem>>, vector<1x1x1024xf32>
    %195 = vector.shape_cast %194 : vector<1x1x1024xf32> to vector<1x1024xf32>
    %196 = vector.broadcast %195 : vector<1x1024xf32> to vector<16x1024xf32>
    %197 = arith.mulf %193, %196 : vector<16x1024xf32>
    %c1_i32_134 = arith.constant 1 : i32
    %198 = tpu.dynamic_rotate %181 by %c1_i32_134 dim 1 : vector<16x1024xf32>, i32 -> vector<16x1024xf32>
    %c3_135 = arith.constant 3 : index
    %c0_136 = arith.constant 0 : index
    %c0_137 = arith.constant 0 : index
    %199 = vector.load %arg4[%c3_135, %c0_136, %c0_137] : memref<9x1x1024xf32, #tpu.memory_space<vmem>>, vector<1x1x1024xf32>
    %200 = vector.shape_cast %199 : vector<1x1x1024xf32> to vector<1x1024xf32>
    %201 = vector.broadcast %200 : vector<1x1024xf32> to vector<16x1024xf32>
    %202 = arith.mulf %198, %201 : vector<16x1024xf32>
    %c1023_i32 = arith.constant 1023 : i32
    %203 = tpu.dynamic_rotate %181 by %c1023_i32 dim 1 : vector<16x1024xf32>, i32 -> vector<16x1024xf32>
    %c5_138 = arith.constant 5 : index
    %c0_139 = arith.constant 0 : index
    %c0_140 = arith.constant 0 : index
    %204 = vector.load %arg4[%c5_138, %c0_139, %c0_140] : memref<9x1x1024xf32, #tpu.memory_space<vmem>>, vector<1x1x1024xf32>
    %205 = vector.shape_cast %204 : vector<1x1x1024xf32> to vector<1x1024xf32>
    %206 = vector.broadcast %205 : vector<1x1024xf32> to vector<16x1024xf32>
    %207 = arith.mulf %203, %206 : vector<16x1024xf32>
    %c993_i32 = arith.constant 993 : i32
    %208 = tpu.dynamic_rotate %181 by %c993_i32 dim 1 : vector<16x1024xf32>, i32 -> vector<16x1024xf32>
    %c6_141 = arith.constant 6 : index
    %c0_142 = arith.constant 0 : index
    %c0_143 = arith.constant 0 : index
    %209 = vector.load %arg4[%c6_141, %c0_142, %c0_143] : memref<9x1x1024xf32, #tpu.memory_space<vmem>>, vector<1x1x1024xf32>
    %210 = vector.shape_cast %209 : vector<1x1x1024xf32> to vector<1x1024xf32>
    %211 = vector.broadcast %210 : vector<1x1024xf32> to vector<16x1024xf32>
    %212 = arith.mulf %208, %211 : vector<16x1024xf32>
    %c992_i32 = arith.constant 992 : i32
    %213 = tpu.dynamic_rotate %181 by %c992_i32 dim 1 : vector<16x1024xf32>, i32 -> vector<16x1024xf32>
    %c7_144 = arith.constant 7 : index
    %c0_145 = arith.constant 0 : index
    %c0_146 = arith.constant 0 : index
    %214 = vector.load %arg4[%c7_144, %c0_145, %c0_146] : memref<9x1x1024xf32, #tpu.memory_space<vmem>>, vector<1x1x1024xf32>
    %215 = vector.shape_cast %214 : vector<1x1x1024xf32> to vector<1x1024xf32>
    %216 = vector.broadcast %215 : vector<1x1024xf32> to vector<16x1024xf32>
    %217 = arith.mulf %213, %216 : vector<16x1024xf32>
    %c991_i32 = arith.constant 991 : i32
    %218 = tpu.dynamic_rotate %181 by %c991_i32 dim 1 : vector<16x1024xf32>, i32 -> vector<16x1024xf32>
    %c8_147 = arith.constant 8 : index
    %c0_148 = arith.constant 0 : index
    %c0_149 = arith.constant 0 : index
    %219 = vector.load %arg4[%c8_147, %c0_148, %c0_149] : memref<9x1x1024xf32, #tpu.memory_space<vmem>>, vector<1x1x1024xf32>
    %220 = vector.shape_cast %219 : vector<1x1x1024xf32> to vector<1x1024xf32>
    %221 = vector.broadcast %220 : vector<1x1024xf32> to vector<16x1024xf32>
    %222 = arith.mulf %218, %221 : vector<16x1024xf32>
    %223 = tpu.concatenate %187, %192, %197, %202, %181, %207, %212, %217, %222 in 0 : vector<16x1024xf32>, vector<16x1024xf32>, vector<16x1024xf32>, vector<16x1024xf32>, vector<16x1024xf32>, vector<16x1024xf32>, vector<16x1024xf32>, vector<16x1024xf32>, vector<16x1024xf32> -> vector<144x1024xf32>
    %224 = arith.truncf %223 : vector<144x1024xf32> to vector<144x1024xbf16>
    %cst_150 = arith.constant dense<0.000000e+00> : vector<16x1024xf32>
    %225 = tpu.matmul %182, %224, %cst_150 {dimension_numbers = #tpu.dot_dimension_numbers<[1], [0], [0], [1], [0, 0, 1, 1], [], []>} : vector<16x144xbf16>, vector<144x1024xbf16>, vector<16x1024xf32> -> vector<16x1024xf32>
    %c0_151 = arith.constant 0 : index
    %c0_152 = arith.constant 0 : index
    %226 = vector.load %arg23[%c0_151, %c0_152] : memref<16x2xf32, #tpu.memory_space<vmem>>, vector<16x1xf32>
    %227 = vector.broadcast %226 : vector<16x1xf32> to vector<16x1024xf32>
    %228 = arith.mulf %225, %227 : vector<16x1024xf32>
    %c0_153 = arith.constant 0 : index
    %c1_154 = arith.constant 1 : index
    %229 = vector.load %arg23[%c0_153, %c1_154] : memref<16x2xf32, #tpu.memory_space<vmem>>, vector<16x1xf32>
    %230 = vector.broadcast %229 : vector<16x1xf32> to vector<16x1024xf32>
    %231 = arith.addf %228, %230 : vector<16x1024xf32>
    %cst_155 = arith.constant 0.000000e+00 : f32
    %232 = vector.broadcast %cst_155 : f32 to vector<16x1024xf32>
    %233 = arith.maximumf %231, %232 : vector<16x1024xf32>
    %234 = arith.truncf %233 : vector<16x1024xf32> to vector<16x1024xbf16>
    %c0_156 = arith.constant 0 : index
    %c0_157 = arith.constant 0 : index
    %235 = vector.load %arg24[%c0_156, %c0_157] : memref<16x16xbf16, #tpu.memory_space<vmem>>, vector<16x16xbf16>
    %cst_158 = arith.constant dense<0.000000e+00> : vector<16x1024xf32>
    %236 = tpu.matmul %235, %234, %cst_158 {dimension_numbers = #tpu.dot_dimension_numbers<[1], [0], [0], [1], [0, 0, 1, 1], [], []>} : vector<16x16xbf16>, vector<16x1024xbf16>, vector<16x1024xf32> -> vector<16x1024xf32>
    %237 = arith.extf %161 : vector<16x1024xbf16> to vector<16x1024xf32>
    %238 = arith.addf %236, %237 : vector<16x1024xf32>
    %c0_159 = arith.constant 0 : index
    %c16 = arith.constant 16 : index
    %c0_160 = arith.constant 0 : index
    %239 = vector.load %arg25[%c0_159, %c16, %c0_160] : memref<1x32x1024xf32, #tpu.memory_space<vmem>>, vector<1x16x1024xf32>
    %240 = vector.shape_cast %239 : vector<1x16x1024xf32> to vector<16x1024xf32>
    %241 = vector.shape_cast %238 : vector<16x1024xf32> to vector<1x16x1024xf32>
    tpu.vector_store %arg25[%c0_159, %c16, %c0_160], %241 {strides = array<i32>} : memref<1x32x1024xf32, #tpu.memory_space<vmem>>, vector<1x16x1024xf32>,
    return
  }
  func.func @transform_0(%arg0: i32) -> (i32, i32, i32) {
    %c0_i32 = arith.constant 0 : i32
    %c0_i32_0 = arith.constant 0 : i32
    %c0_i32_1 = arith.constant 0 : i32
    return %arg0, %c0_i32, %c0_i32_0 : i32, i32, i32
  }
  func.func @transform_1(%arg0: i32) -> (i32, i32, i32) {
    %c0_i32 = arith.constant 0 : i32
    %c0_i32_0 = arith.constant 0 : i32
    %c0_i32_1 = arith.constant 0 : i32
    return %arg0, %c0_i32, %c0_i32_0 : i32, i32, i32
  }
  func.func @transform_2(%arg0: i32) -> (i32, i32, i32) {
    %c0_i32 = arith.constant 0 : i32
    %c0_i32_0 = arith.constant 0 : i32
    %c0_i32_1 = arith.constant 0 : i32
    %c0_i32_2 = arith.constant 0 : i32
    return %c0_i32, %c0_i32_0, %c0_i32_1 : i32, i32, i32
  }
  func.func @transform_3(%arg0: i32) -> (i32, i32, i32) {
    %c0_i32 = arith.constant 0 : i32
    %c0_i32_0 = arith.constant 0 : i32
    %c0_i32_1 = arith.constant 0 : i32
    %c0_i32_2 = arith.constant 0 : i32
    return %c0_i32, %c0_i32_0, %c0_i32_1 : i32, i32, i32
  }
  func.func @transform_4(%arg0: i32) -> (i32, i32) {
    %c0_i32 = arith.constant 0 : i32
    %c0_i32_0 = arith.constant 0 : i32
    %c0_i32_1 = arith.constant 0 : i32
    return %c0_i32, %c0_i32_0 : i32, i32
  }
  func.func @transform_5(%arg0: i32) -> (i32, i32) {
    %c0_i32 = arith.constant 0 : i32
    %c0_i32_0 = arith.constant 0 : i32
    %c0_i32_1 = arith.constant 0 : i32
    return %c0_i32, %c0_i32_0 : i32, i32
  }
  func.func @transform_6(%arg0: i32) -> (i32, i32) {
    %c0_i32 = arith.constant 0 : i32
    %c0_i32_0 = arith.constant 0 : i32
    %c0_i32_1 = arith.constant 0 : i32
    return %c0_i32, %c0_i32_0 : i32, i32
  }
  func.func @transform_7(%arg0: i32) -> (i32, i32) {
    %c0_i32 = arith.constant 0 : i32
    %c0_i32_0 = arith.constant 0 : i32
    %c0_i32_1 = arith.constant 0 : i32
    return %c0_i32, %c0_i32_0 : i32, i32
  }
  func.func @transform_8(%arg0: i32) -> (i32, i32) {
    %c0_i32 = arith.constant 0 : i32
    %c0_i32_0 = arith.constant 0 : i32
    %c0_i32_1 = arith.constant 0 : i32
    return %c0_i32, %c0_i32_0 : i32, i32
  }
  func.func @transform_9(%arg0: i32) -> (i32, i32) {
    %c0_i32 = arith.constant 0 : i32
    %c0_i32_0 = arith.constant 0 : i32
    %c0_i32_1 = arith.constant 0 : i32
    return %c0_i32, %c0_i32_0 : i32, i32
  }
  func.func @transform_10(%arg0: i32) -> (i32, i32) {
    %c0_i32 = arith.constant 0 : i32
    %c0_i32_0 = arith.constant 0 : i32
    %c0_i32_1 = arith.constant 0 : i32
    return %c0_i32, %c0_i32_0 : i32, i32
  }
  func.func @transform_11(%arg0: i32) -> (i32, i32) {
    %c0_i32 = arith.constant 0 : i32
    %c0_i32_0 = arith.constant 0 : i32
    %c0_i32_1 = arith.constant 0 : i32
    return %c0_i32, %c0_i32_0 : i32, i32
  }
  func.func @transform_12(%arg0: i32) -> (i32, i32) {
    %c0_i32 = arith.constant 0 : i32
    %c0_i32_0 = arith.constant 0 : i32
    %c0_i32_1 = arith.constant 0 : i32
    return %c0_i32, %c0_i32_0 : i32, i32
  }
  func.func @transform_13(%arg0: i32) -> (i32, i32) {
    %c0_i32 = arith.constant 0 : i32
    %c0_i32_0 = arith.constant 0 : i32
    %c0_i32_1 = arith.constant 0 : i32
    return %c0_i32, %c0_i32_0 : i32, i32
  }
  func.func @transform_14(%arg0: i32) -> (i32, i32) {
    %c0_i32 = arith.constant 0 : i32
    %c0_i32_0 = arith.constant 0 : i32
    %c0_i32_1 = arith.constant 0 : i32
    return %c0_i32, %c0_i32_0 : i32, i32
  }
  func.func @transform_15(%arg0: i32) -> (i32, i32) {
    %c0_i32 = arith.constant 0 : i32
    %c0_i32_0 = arith.constant 0 : i32
    %c0_i32_1 = arith.constant 0 : i32
    return %c0_i32, %c0_i32_0 : i32, i32
  }
  func.func @transform_16(%arg0: i32) -> (i32, i32) {
    %c0_i32 = arith.constant 0 : i32
    %c0_i32_0 = arith.constant 0 : i32
    %c0_i32_1 = arith.constant 0 : i32
    return %c0_i32, %c0_i32_0 : i32, i32
  }
  func.func @transform_17(%arg0: i32) -> (i32, i32) {
    %c0_i32 = arith.constant 0 : i32
    %c0_i32_0 = arith.constant 0 : i32
    %c0_i32_1 = arith.constant 0 : i32
    return %c0_i32, %c0_i32_0 : i32, i32
  }
  func.func @transform_18(%arg0: i32) -> (i32, i32) {
    %c0_i32 = arith.constant 0 : i32
    %c0_i32_0 = arith.constant 0 : i32
    %c0_i32_1 = arith.constant 0 : i32
    return %c0_i32, %c0_i32_0 : i32, i32
  }
  func.func @transform_19(%arg0: i32) -> (i32, i32) {
    %c0_i32 = arith.constant 0 : i32
    %c0_i32_0 = arith.constant 0 : i32
    %c0_i32_1 = arith.constant 0 : i32
    return %c0_i32, %c0_i32_0 : i32, i32
  }
  func.func @transform_20(%arg0: i32) -> (i32, i32) {
    %c0_i32 = arith.constant 0 : i32
    %c0_i32_0 = arith.constant 0 : i32
    %c0_i32_1 = arith.constant 0 : i32
    return %c0_i32, %c0_i32_0 : i32, i32
  }
  func.func @transform_21(%arg0: i32) -> (i32, i32) {
    %c0_i32 = arith.constant 0 : i32
    %c0_i32_0 = arith.constant 0 : i32
    %c0_i32_1 = arith.constant 0 : i32
    return %c0_i32, %c0_i32_0 : i32, i32
  }
  func.func @transform_22(%arg0: i32) -> (i32, i32) {
    %c0_i32 = arith.constant 0 : i32
    %c0_i32_0 = arith.constant 0 : i32
    %c0_i32_1 = arith.constant 0 : i32
    return %c0_i32, %c0_i32_0 : i32, i32
  }
  func.func @transform_23(%arg0: i32) -> (i32, i32) {
    %c0_i32 = arith.constant 0 : i32
    %c0_i32_0 = arith.constant 0 : i32
    %c0_i32_1 = arith.constant 0 : i32
    return %c0_i32, %c0_i32_0 : i32, i32
  }
  func.func @transform_24(%arg0: i32) -> (i32, i32, i32) {
    %c0_i32 = arith.constant 0 : i32
    %c0_i32_0 = arith.constant 0 : i32
    %c0_i32_1 = arith.constant 0 : i32
    return %arg0, %c0_i32, %c0_i32_0 : i32, i32, i32
  }
}

</mosaic_0001>

<bundles_post_ra>
// kernel: tpu_custom_call.1
= control target key start
LH: loop header
LB: loop body
LE: loop exit
PB: predicated region body
PF: predicated region fallthrough
CT: control target
= control target key end

     0   :  { %s7719_s0 = inlined_call_operand.hbm [shape: bf16[2,32,256], index: 0, kind: input, shape index: {}]   ;;  %s7720_s1 = inlined_call_operand.vmem [shape: bf16[2,16,1024], index: 1, kind: input, shape index: {}]   ;;  %s7721_s2 = inlined_call_operand.vmem [shape: f32[9,1,256], index: 2, kind: input, shape index: {}]   ;;  %s7722_s3 = inlined_call_operand.hbm [shape: f32[9,1,1024], index: 3, kind: input, shape index: {}]   ;;  %s7723_s4 = inlined_call_operand.hbm [shape: f32[256,1024], index: 4, kind: input, shape index: {}]   ;;  %s7724_s5 = inlined_call_operand.vmem [shape: f32[32,2], index: 5, kind: input, shape index: {}]   ;;  %s7725_s6 = inlined_call_operand.hbm [shape: bf16[16,32], index: 6, kind: input, shape index: {}]   ;;  %s7726_s7 = inlined_call_operand.vmem [shape: f32[16,2], index: 7, kind: input, shape index: {}]   ;;  %s7727_s8 = inlined_call_operand.vmem [shape: bf16[16,144], index: 8, kind: input, shape index: {}]   ;;  %s7728_s9 = inlined_call_operand.vmem [shape: f32[16,2], index: 9, kind: input, shape index: {}]   ;;  %s7729_s10 = inlined_call_operand.hbm [shape: bf16[16,16], index: 10, kind: input, shape index: {}]   ;;  %s7730_s11 = inlined_call_operand.hbm [shape: bf16[16,32], index: 11, kind: input, shape index: {}]   ;;  %s7731_s12 = inlined_call_operand.vmem [shape: f32[16,2], index: 12, kind: input, shape index: {}]   ;;  %s7732_s13 = inlined_call_operand.hbm [shape: bf16[16,16], index: 13, kind: input, shape index: {}]   ;;  %s7733_s14 = inlined_call_operand.vmem [shape: f32[16,2], index: 14, kind: input, shape index: {}]   ;;  %s7734_s15 = inlined_call_operand.vmem [shape: bf16[16,144], index: 15, kind: input, shape index: {}]   ;;  %s7735_s16 = inlined_call_operand.vmem [shape: f32[16,2], index: 16, kind: input, shape index: {}]   ;;  %s7736_s17 = inlined_call_operand.vmem [shape: bf16[16,16], index: 17, kind: input, shape index: {}]   ;;  %s7737_s18 = inlined_call_operand.vmem [shape: f32[16,2], index: 18, kind: input, shape index: {}]   ;;  %s7738_s19 = inlined_call_operand.vmem [shape: bf16[16,16], index: 19, kind: input, shape index: {}]   ;;  %s7739_s20 = inlined_call_operand.vmem [shape: f32[16,2], index: 20, kind: input, shape index: {}]   ;;  %s7740_s21 = inlined_call_operand.vmem [shape: bf16[16,144], index: 21, kind: input, shape index: {}]   ;;  %s7741_s22 = inlined_call_operand.vmem [shape: f32[16,2], index: 22, kind: input, shape index: {}]   ;;  %s7742_s23 = inlined_call_operand.vmem [shape: bf16[16,16], index: 23, kind: input, shape index: {}]   ;;  %s7743_s24 = inlined_call_operand.hbm [shape: f32[2,32,1024], index: 24, kind: output, shape index: {}]  }
   0x1   :  { %7883 = sst [smem:[#allocation95_spill]] %s7719_s0 }
   0x2   :  { %7884 = sst [smem:[#allocation96_spill]] %s7720_s1 }
   0x3   :  { %7885 = sst [smem:[#allocation97_spill]] %s7721_s2 }
   0x4   :  { %7886 = sst [smem:[#allocation98_spill]] %s7722_s3 }
   0x5   :  { %7887 = sst [smem:[#allocation99_spill]] %s7723_s4 }
   0x6   :  { %7888 = sst [smem:[#allocation100_spill]] %s7724_s5 }
   0x7   :  { %7889 = sst [smem:[#allocation101_spill]] %s7725_s6 }
   0x8   :  { %7890 = sst [smem:[#allocation102_spill]] %s7726_s7 }
   0x9   :  { %7891 = sst [smem:[#allocation103_spill]] %s7727_s8 }
   0xa   :  { %7892 = sst [smem:[#allocation104_spill]] %s7729_s10 }
   0xb   :  { %7893 = sst [smem:[#allocation105_spill]] %s7730_s11 }
   0xc   :  { %7894 = sst [smem:[#allocation106_spill]] %s7732_s13 }
   0xd   :  { %7895 = sst [smem:[#allocation107_spill]] %s7740_s21 }
   0xe   :  { %7896 = sst [smem:[#allocation108_spill]] %s7741_s22 }
   0xf   :  { %7897 = sst [smem:[#allocation109_spill]] %s7742_s23 }
  0x10   :  { %7898 = sst [smem:[#allocation110_spill]] %s7743_s24 }
  0x11   :  { %29 = vsyncpa [#allocation3], 0 }
  0x12   :  { %31 = vsyncpa [#allocation3 + $0x1], 0 }
  0x13   :  { %32 = vsyncpa [#allocation6], 0 }
  0x14   :  { %33 = vsyncpa [#allocation9], 0 }
  0x15   :  { %34 = vsyncpa [#allocation12], 0 }
  0x16   :  { %35 = vsyncpa [#allocation4], 0 }
  0x17   :  { %37 = vsyncpa [#allocation4 + $0x1], 0  ;;  %s5071_s5 = smov 0   ;;  %s5073_s26 = smov 0  }
  0x18   :  { %s5075_s27 = smov 0   ;;  %s5077_s28 = smov 0  }
  0x19 LB: > { %7899 = sst [smem:[#allocation20_spill]] %s4909_s27  ;;  %s4915_s6 = smov [#allocation5]   ;;  %s4913_s28 = sphi %s5077_s28, %s8139_s28   ;;  %s4909_s27 = sphi %s5075_s27, %s8141_s27   ;;  %s4905_s26 = sphi %s5073_s26, %s8143_s26   ;;  %s4901_s5 = sphi %s5071_s5, %s8142_s5  }
  0x1a   : > { %s603_s2 = sshll.u32 %s4915_s6, 4  ;;  %s5092_s29 = sadd.s32 4294967295, %s4913_s28   ;;  %s604_s2 = int_to_ptr.vmem [resolvable:$true] %s603_s2 }
  0x1b   : > { %p4396_p0 = scmp.ge.s32.totalorder %s4913_s28, 1  ;;  %p7756_p1 = scmp.eq.s32.totalorder %s5092_s29, 0 }
  0x1c   : > { %p588_p2 = scmp.lt.s32.totalorder %s4913_s28, 3  ;;  %s4916_s30 = smov [#allocation8]  }
  0x1d   : > { %s632_s3 = sshll.u32 %s4916_s30, 4  ;;  %s4917_s25 = smov [#allocation11]   ;;  %s5110_s3 = int_to_ptr.vmem [resolvable:$true] %s632_s3 }
  0x1e   : > { %p5097_p3 = pnand %p4396_p0, %p588_p2  ;;  %s5112_s8 = sshll.u32 %s4917_s25, 4  ;;  %s668_s8 = int_to_ptr.vmem [resolvable:$true] %s5112_s8 }
  0x1f   : > { %s4664_s1 = scalar_lea.vmem %s604_s2, 1152  ;;  %p4672_p11 = scmp.lt.s32.totalorder %s604_s2, %s604_s2 }
  0x20   : > { %s7900_s0 = scalar_select %p5097_p3, 1, 0 }
  0x21   : > { %p4497_p5 = pneg %p5097_p3  ;;  %p4665_p8 = scmp.ne.s32.totalorder %s604_s2, %s4664_s1 }
  0x22   : > { %p4673_p12 = scmp.lt.s32.totalorder %s4664_s1, %s4664_s1 }
  0x23   : > { %p5106_p6 = pnand %p4497_p5, %p7756_p1 }
  0x24   : > { %p4674_p13 = por %p4673_p12, %p4672_p11 }
  0x25   : > { %p5116_p7 = pneg %p5106_p6 }
  0x27   : > { %p4667_p9 = pnand %p4665_p8, %p5116_p7 }
  0x29   : > { %p4668_p10 = pneg %p4667_p9 }
  0x2b   : > { %p4675_p0 = pnand %p4674_p13, %p4668_p10 }
  0x2d   : > { %4678 = shalt.err (!%p4675_p0)
}
  0x2e   : > { %s7752_s6 = smov 128   ;;  %s7753_s30 = smov 8  }
  0x2f   : > { %s7903_s23 = sld [smem:[#allocation98_spill]]  ;;  %s4690_s22 = scalar_lea.vmem %s5110_s3, 128 }
  0x30   : > { %p4691_p2 = scmp.ne.s32.totalorder %s5110_s3, %s4690_s22  ;;  %p4698_p9 = scmp.lt.s32.totalorder %s5110_s3, %s5110_s3 }
  0x31   : > { %p4699_p10 = scmp.lt.s32.totalorder %s4690_s22, %s4690_s22 }
  0x32   : > { %p4693_p5 = pnand %p4691_p2, %p5116_p7 }
  0x33   : > { %p4700_p11 = por %p4699_p10, %p4698_p9 }
  0x34   : > { %p4694_p8 = pneg %p4693_p5 }
  0x35   : > { %4500 = dma.hbm_to_vmem [thread:$0]  (!%p5106_p6), %s7903_s23, 1152, %s604_s2, [#allocation6], %s7752_s6, %s7752_s6, %s7753_s30  }
  0x36   : > { %p4701_p12 = pnand %p4700_p11, %p4694_p8 }
  0x38   : > { %4704 = shalt.err (!%p4701_p12)
}
  0x39   : > { %s4920_s1 = smov 64   ;;  %s7754_s21 = smov 4  }
  0x3a   : > { %s7904_s2 = sld [smem:[#allocation101_spill]]  ;;  %s4716_s25 = scalar_lea.vmem %s668_s8, 128 }
  0x3b   : > { %p4717_p13 = scmp.ne.s32.totalorder %s668_s8, %s4716_s25  ;;  %p4724_p5 = scmp.lt.s32.totalorder %s668_s8, %s668_s8 }
  0x3c   : > { %p4725_p8 = scmp.lt.s32.totalorder %s4716_s25, %s4716_s25 }
  0x3d   : > { %p4719_p0 = pnand %p4717_p13, %p5116_p7 }
  0x3e   : > { %p4726_p9 = por %p4725_p8, %p4724_p5 }
  0x3f   : > { %p4720_p2 = pneg %p4719_p0 }
  0x40   : > { %4506 = dma.hbm_to_vmem [thread:$0]  (!%p5106_p6), %s7904_s2, 128, %s5110_s3, [#allocation9], %s4920_s1, %s4920_s1, %s7754_s21  }
  0x41   : > { %p4727_p10 = pnand %p4726_p9, %p4720_p2 }
  0x43   : > { %4730 = shalt.err (!%p4727_p10)
}
  0x44   : > { %s7905_s11 = sld [smem:[#allocation105_spill]]  ;;  %s4922_s3 = smov [#allocation7]  }
  0x45   : > { %s616_s23 = sshll.u32 %s4922_s3, 4  ;;  %s617_s23 = int_to_ptr.vmem [resolvable:$true] %s616_s23 }
  0x46   : > { %s4742_s24 = scalar_lea.vmem %s617_s23, 32768  ;;  %p4750_p0 = scmp.lt.s32.totalorder %s617_s23, %s617_s23 }
  0x47   : > { %p4743_p11 = scmp.ne.s32.totalorder %s617_s23, %s4742_s24  ;;  %p4751_p2 = scmp.lt.s32.totalorder %s4742_s24, %s4742_s24 }
  0x49   : > { %p4745_p12 = pnand %p4743_p11, %p5116_p7  ;;  %p4752_p5 = por %p4751_p2, %p4750_p0 }
  0x4a   : > { %4512 = dma.hbm_to_vmem [thread:$0]  (!%p5106_p6), %s7905_s11, 128, %s668_s8, [#allocation12], %s4920_s1, %s4920_s1, %s7754_s21  }
  0x4b   : > { %p4746_p13 = pneg %p4745_p12 }
  0x4d   : > { %p4753_p8 = pnand %p4752_p5, %p4746_p13 }
  0x4f   : > { %4756 = shalt.err (!%p4753_p8)
}
  0x50   : > { %s4923_s2 = smov 1024   ;;  %s7906_s8 = sld [smem:[#allocation99_spill]] }
  0x51   : > { %s4924_s22 = smov [#allocation10]   ;;  %s4925_s30 = smov [#allocation13]  }
  0x52   : > { %s654_s3 = sshll.u32 %s4924_s22, 4  ;;  %s683_s21 = sshll.u32 %s4925_s30, 4  ;;  %s655_s3 = int_to_ptr.vmem [resolvable:$true] %s654_s3  ;;  %s684_s21 = int_to_ptr.vmem [resolvable:$true] %s683_s21 }
  0x53   : > { %s4768_s11 = scalar_lea.vmem %s655_s3, 128  ;;  %p4776_p12 = scmp.lt.s32.totalorder %s655_s3, %s655_s3 }
  0x54   : > { %p4769_p9 = scmp.ne.s32.totalorder %s655_s3, %s4768_s11  ;;  %p4777_p13 = scmp.lt.s32.totalorder %s4768_s11, %s4768_s11 }
  0x56   : > { %4503 = dma.hbm_to_vmem [thread:$0]  (!%p5106_p6), %s7906_s8, 32768, %s617_s23, [#allocation6], %s4923_s2, %s4923_s2, %s4920_s1  }
  0x57   : > { %p4771_p10 = pnand %p4769_p9, %p5116_p7  ;;  %p4778_p0 = por %p4777_p13, %p4776_p12 }
  0x59   : > { %p4772_p11 = pneg %p4771_p10 }
  0x5b   : > { %p4779_p2 = pnand %p4778_p0, %p4772_p11 }
  0x5d   : > { %4782 = shalt.err (!%p4779_p2)
}
  0x5e   : > { %s7907_s24 = smov 4   ;;  %s7908_s10 = sld [smem:[#allocation104_spill]] }
  0x5f   : > { %s4794_s30 = scalar_lea.vmem %s684_s21, 128  ;;  %p4802_p10 = scmp.lt.s32.totalorder %s684_s21, %s684_s21 }
  0x60   : > { %p4795_p5 = scmp.ne.s32.totalorder %s684_s21, %s4794_s30  ;;  %p4803_p12 = scmp.lt.s32.totalorder %s4794_s30, %s4794_s30 }
  0x62   : > { %p4797_p8 = pnand %p4795_p5, %p5116_p7  ;;  %p4804_p11 = por %p4803_p12, %p4802_p10 }
  0x64   : > { %4509 = dma.hbm_to_vmem [thread:$0]  (!%p5106_p6), %s7908_s10, 128, %s655_s3, [#allocation9], %s4920_s1, %s4920_s1, %s7907_s24  }
  0x65   : > { %p4798_p9 = pneg %p4797_p8 }
  0x67   : > { %p4805_p13 = pnand %p4804_p11, %p4798_p9 }
  0x69   : > { %4808 = shalt.err (!%p4805_p13)
}
  0x6a   : > { %s7909_s13 = sld [smem:[#allocation106_spill]]  ;;  %s4395_s7 = sadd.s32 4294967294, %s4913_s28  }
  0x6b   : > { %s5186_s4 = sadd.s32 1, %s4913_s28   ;;  %s50_s25 = sadd.s32 1, %s4909_s27 }
  0x6c   : > { %7910 = sst [smem:[#allocation21_spill]] %s5186_s4  ;;  %s47_s8 = ssub.s32 %s4913_s28, %s5186_s4 }
  0x6d   : > { %p57_p7 = scmp.ne.s32.totalorder %s4909_s27, %s4905_s26  ;;  %p48_p0 = scmp.eq.s32.totalorder %s47_s8, 0 }
  0x6e   : > { %p58_p2 = scmp.eq.s32.totalorder %s4913_s28, 0  ;;  %p63_p5 = scmp.ne.s32.totalorder %s4905_s26, %s4901_s5 }
  0x6f   : > { %p575_p8 = scmp.eq.s32.totalorder %s5092_s29, 1  ;;  %p581_p12 = scmp.eq.s32.totalorder %s4395_s7, 1 }
  0x70   : > { %4515 = dma.hbm_to_vmem [thread:$0]  (!%p5106_p6), %s7909_s13, 128, %s684_s21, [#allocation12], %s4920_s1, %s4920_s1, %s7907_s24  }
  0x71   : > { %s5198_s22 = scalar_select %p48_p0, %s4909_s27, %s50_s25  }
  0x72   : > { %p59_p9 = por %p58_p2, %p57_p7  ;;  %p5202_p10 = por %p7756_p1, %p63_p5 }
  0x73   : > { %7911 = sst [smem:[#allocation22_spill]] %s5198_s22  ;;  %p5206_p6 = por %p575_p8, %p57_p7 }
  0x74   : > { %s7912_s3 = scalar_select %p5202_p10, 1, 0 }
  0x75   : > { %s7913_s21 = scalar_select %p5206_p6, 1, 0 }
  0x76   : > { %p4530_p11 = scmp.lt.s32.totalorder %s4913_s28, 2  ;;  %s727_s1 = sand.u32 1, %s4909_s27  }
  0x77   : > { %p5212_p13 = por %p581_p12, %p63_p5  ;;  %s4404_s23 = sshll.u32 %s727_s1, 5 }
  0x78   : > { %s4466_s2 = sshll.u32 %s4913_s28, 9  ;;  %s7915_s6 = sld [smem:[#allocation95_spill]] }
  0x79   : > { %s7914_s24 = scalar_select %p5212_p13, 1, 0 }
  0x7a   : > { %s731_s8 = scalar_lea.vmem [#allocation2], %s4404_s23  ;;  %p5222_p7 = pnand %p4530_p11, %p59_p9 }
  0x7b   : > { %s738_s10 = sshll.u32 %s731_s8, 4  ;;  %s5228_s13 = scalar_lea.sflag [#allocation3], %s727_s1  ;;  %s5226_s10 = int_to_ptr.vmem [resolvable:$true] %s738_s10 }
  0x7c   : > { %p4811_p2 = pneg %p5222_p7 }
  0x7e   : > { %s5220_s25 = scalar_lea.hbm %s7915_s6, %s4466_s2  ;;  %s4814_s23 = scalar_lea.hbm %s7915_s6, 1024 }
  0x7f   : > { %s4809_s22 = scalar_lea.hbm %s5220_s25, 512  ;;  %p4815_p9 = scmp.lt.s32.totalorder %s5220_s25, %s7915_s6 }
  0x80   : > { %p4810_p0 = scmp.ne.s32.totalorder %s5220_s25, %s4809_s22  ;;  %p4816_p12 = scmp.lt.s32.totalorder %s4814_s23, %s4809_s22 }
  0x82   : > { %p4812_p5 = pnand %p4811_p2, %p4810_p0  ;;  %p4817_p11 = por %p4816_p12, %p4815_p9 }
  0x84   : > { %p4813_p8 = pneg %p4812_p5 }
  0x86   : > { %p4818_p4 = pnand %p4817_p11, %p4813_p8 }
  0x88   : > { %4821 = shalt.err (!%p4818_p4)
}
  0x89   : > { %s4822_s1 = scalar_lea.vmem %s5226_s10, 512  ;;  %s4926_s27 = smov [#allocation2]  }
  0x8a   : > { %p4823_p1 = scmp.ne.s32.totalorder %s5226_s10, %s4822_s1  ;;  %s4827_s4 = sshll.u32 %s4926_s27, 4  ;;  %s4828_s4 = int_to_ptr.vmem [resolvable:$false] %s4827_s4 }
  0x8b   : > { %s4829_s2 = scalar_lea.vmem %s4828_s4, 1024  ;;  %p4830_p5 = scmp.lt.s32.totalorder %s5226_s10, %s4828_s4 }
  0x8c   : > { %p4825_p13 = pnand %p4823_p1, %p4811_p2  ;;  %p4831_p6 = scmp.lt.s32.totalorder %s4829_s2, %s4822_s1 }
  0x8e   : > { %p4826_p0 = pneg %p4825_p13  ;;  %p4832_p10 = por %p4831_p6, %p4830_p5 }
  0x90   : > { %p4833_p3 = pnand %p4832_p10, %p4826_p0 }
  0x92   : > { %4836 = shalt.err (!%p4833_p3)
}
  0x93   : > { %s7917_s22 = smov 8   ;;  %s7918_s30 = smov 128  }
  0x94   : > { %4519 = dma.hbm_to_vmem [thread:$0]  (!%p5222_p7), %s5220_s25, 512, %s5226_s10, %s5228_s13, %s7918_s30, %s7918_s30, %s7917_s22  }
  0x95   : > { %p7919_p1 = scmp.ne.s32.totalorder %s7900_s0, 0 }
  0x97   : > { %758 = sbr.rel (%p7919_p1) target bundleno = 3013 (0xbc5), region = 116 }
  0x9c   : > { %s5255_s27 = sand.u32 1, %s4905_s26   ;;  %p7920_p3 = scmp.ne.s32.totalorder %s7912_s3, 0 }
  0x9d   : > { %s4408_s4 = sshll.u32 %s5255_s27, 5  ;;  %s761_s23 = scalar_lea.sflag [#allocation3], %s5255_s27 }
  0x9e   : > { %s5259_s11 = scalar_lea.vmem [#allocation2], %s4408_s4 }
  0x9f   : > { %4880 = dma.done.wait (%p7920_p3), %s761_s23, 512  }
  0xa0   : > { %4882 = vsyncadd (%p7920_p3), %s761_s23, 4294966784  ;;  %p7921_p4 = scmp.eq.s32.totalorder %s5092_s29, 0 }
  0xa2   : > { %4884 = dma.done.wait (%p7921_p4), [#allocation6], 33920   ;;  %p7922_p10 = pmov %p7921_p4 }
  0xa3   : > { %p7923_p6 = pmov %p7921_p4 }
  0xa4   : > { %4886 = vsyncadd (%p7922_p10), [#allocation6], 4294933376 }
  0xa5   : > { %4888 = dma.done.wait (%p7923_p6), [#allocation9], 256   ;;  %p7924_p13 = pmov %p7921_p4 }
  0xa6   : > { %p7925_p7 = pmov %p7921_p4 }
  0xa7   : > { %4890 = vsyncadd (%p7924_p13), [#allocation9], 4294967040 }
  0xa8   : > { %4892 = dma.done.wait (%p7925_p7), [#allocation12], 256   ;;  %p7926_p2 = pmov %p7921_p4 }
  0xa9   : > { %v7793_v0 = vmov 1   ;;  %v7791_v1 = vmov 0   ;;  %s7927_s0 = sld [smem:[#allocation100_spill]]  ;;  %v5306_v8 = vld [vmem:[%s5259_s11 + $0x10] sm:$0xff]  ;;  %v5311_v11 = vld [vmem:[%s5259_s11 + $0x18] sm:$0xff]  ;;  %v5316_v22 = vld [vmem:[%s5259_s11] sm:$0xff] }
  0xaa   : > { %4894 = vsyncadd (%p7926_p2), [#allocation12], 4294967040  ;;  %4600 = vset.pattern.permute.xlu1 %v7793_v0  ;;  %4599 = vset.pattern.permute.xlu0 %v7791_v1  ;;  %s7928_s4 = sld [smem:[#allocation102_spill]]  ;;  %v876_v9 = vunpack.c.l.bf16 %v5306_v8  ;;  %v877_v10 = vunpack.c.h.bf16 %v5306_v8  ;;  %v878_v16 = vunpack.c.l.bf16 %v5311_v11  ;;  %v879_v17 = vunpack.c.h.bf16 %v5311_v11  ;;  %v5319_v23 = vld [vmem:[%s5259_s11 + $0x8] sm:$0xff]  ;;  %s4929_s11 = smov 112  }
  0xab   : > { %987 = vmatprep.mubr.bf16.mxu0 %v7791_v1  ;;  %v872_v29 = vunpack.c.l.bf16 %v5316_v22  ;;  %v873_v30 = vunpack.c.h.bf16 %v5316_v22  ;;  %v874_v31 = vunpack.c.l.bf16 %v5319_v23  ;;  %v875_v32 = vunpack.c.h.bf16 %v5319_v23  ;;  %v4628_v56 = vld [vmem:[#allocation8] sm:$0xff]   ;;  %s4930_s13 = smov 113   ;;  %s4931_s3 = smov 127  }
  0xac   : > { %vm951_vm0 = vcmask 261120   ;;  %s4932_s25 = smov 1   ;;  %s7769_s7 = smov 15   ;;  %vm1300_vm1 = vcmask 130048  }
  0xad   : > { %s7763_s8 = smov 16   ;;  %s7767_s1 = smov 17  }
  0xae   : > { %s7765_s2 = smov 111   ;;  %s7929_s23 = sld [smem:[#allocation103_spill]] }
  0xaf   : > { %v870_v2 = vld [vmem:[%s7927_s0 + $0x10] sm:$0xff]  ;;  %v871_v3 = vld [vmem:[%s7927_s0 + $0x18] sm:$0xff]  ;;  %v868_v4 = vld [vmem:[%s7927_s0] sm:$0xff]  ;;  %s7930_s22 = sld [smem:[#allocation97_spill]]  ;;  %s7931_s10 = smov 15  }
  0xb0   : > { %917 = vperm.xlu1 %4600, %v870_v2   ;;  %892 = vperm.xlu0 %4599, %v870_v2   ;;  %v869_v5 = vld [vmem:[%s7927_s0 + $0x8] sm:$0xff]  ;;  %v998_v6 = vld [vmem:[%s7928_s4] sm:$0xff]  ;;  %s7932_s30 = smov 16   ;;  %p858_p8 = scmp.lt.s32.totalorder %s5092_s29, 1 }
  0xb1   : > { %v999_v7 = vld [vmem:[%s7928_s4 + $0x8] sm:$0xff]  ;;  %p8135_p12 = scmp.ne.s32.totalorder %s7913_s21, 0 }
  0xb4   : > { %921 = vperm.xlu1 %4600, %v871_v3   ;;  %897 = vperm.xlu0 %4599, %v871_v3  }
  0xb8   : > { %4601 = vset.pattern.permute.xlu1 %v7791_v1  ;;  %882 = vperm.xlu0 %4599, %v868_v4  }
  0xb9   : > { %887 = vperm.xlu1 %4601, %v869_v5  }
  0xbc   : > { %4602 = vset.pattern.permute.xlu0 %v7793_v0 }
  0xbd   : > { %4603 = vset.pattern.permute.xlu1 %v7793_v0  ;;  %909 = vperm.xlu0 %4602, %v868_v4  }
  0xbe   : > { %913 = vperm.xlu1 %4603, %v869_v5  }
  0xc1   : > { %4605 = vset.pattern.permute.xlu0 %v7791_v1 }
  0xc2   : > { %4604 = vset.pattern.permute.xlu1 %v7791_v1  ;;  %1007 = vperm.xlu0 %4605, %v999_v7  }
  0xc3   : > { %1002 = vperm.xlu1 %4604, %v998_v6  }
  0xc7   : > { %4606 = vset.pattern.permute.xlu1 %v7793_v0 }
  0xc8   : > { %1015 = vperm.xlu1 %4606, %v998_v6  }
  0xcc   : > { %1019 = vperm.xlu1 %4606, %v999_v7  }
  0xd0   : > { %4607 = vset.pattern.permute.xlu1 %v7791_v1 }
 0x12b   : > { %v918_v12 = vpop.permute.xlu1 %917  ;;  %v893_v13 = vpop.permute.xlu0 %892 }
 0x12c   : > { %v904_v14 = vmul.f32 %v893_v13, %v876_v9  ;;  %v905_v15 = vmul.f32 %v893_v13, %v877_v10 }
 0x12e   : > { %v929_v24 = vadd.f32 %v918_v12, %v905_v15  ;;  %v928_v25 = vadd.f32 %v918_v12, %v904_v14 }
 0x12f   : > { %v922_v18 = vpop.permute.xlu1 %921  ;;  %v898_v19 = vpop.permute.xlu0 %897 }
 0x130   : > { %v906_v20 = vmul.f32 %v898_v19, %v878_v16  ;;  %v907_v21 = vmul.f32 %v898_v19, %v879_v17  ;;  %v937_v34 = vmax.f32 %v929_v24, 0.0  ;;  %v936_v36 = vmax.f32 %v928_v25, 0.0  ;;  %v4631_v19 = vld [vmem:[%s7929_s23 + $0x4] ss:$8 sps:$4 sm:$0xff]  }
 0x131   : > { %4429 = vmatprep.mubr.msk.bf16.mxu1 %vm1300_vm1, %v4631_v19  ;;  %v1347_v24 = vld [vmem:[%s7728_s9] sm:$0xff]  ;;  %v1348_v25 = vld [vmem:[%s7728_s9 + $0x8] sm:$0xff] }
 0x132   : > { %v931_v26 = vadd.f32 %v922_v18, %v907_v21  ;;  %v930_v27 = vadd.f32 %v922_v18, %v906_v20  ;;  %v4434_v20 = vcombine.high %v5306_v8, %v5311_v11  ;;  %v4433_v21 = vcombine.low %v5306_v8, %v5311_v11 }
 0x133   : > { %v883_v28 = vpop.permute.xlu0 %882 }
 0x134   : > { %v888_v33 = vpop.permute.xlu1 %887  ;;  %v939_v35 = vmax.f32 %v931_v26, 0.0  ;;  %v938_v37 = vmax.f32 %v930_v27, 0.0  ;;  %v900_v40 = vmul.f32 %v883_v28, %v872_v29  ;;  %v901_v41 = vmul.f32 %v883_v28, %v873_v30 }
 0x135   : > { %v902_v42 = vmul.f32 %v888_v33, %v874_v31  ;;  %v903_v43 = vmul.f32 %v888_v33, %v875_v32  ;;  %v1040_v33 = vlaneseq }
 0x136   : > { %v943_v38 = vpack.c.bf16 %v939_v35, %v937_v34  ;;  %v942_v39 = vpack.c.bf16 %v938_v37, %v936_v36 }
 0x137   : > { %v5431_v36 = vshrl.u32 %v1040_v33, 7 }
 0x138   : > { %v910_v44 = vpop.permute.xlu0 %909  ;;  %967 = vmatprep.subr.bf16.mxu0 %v943_v38 }
 0x139   : > { %v924_v45 = vadd.f32 %v910_v44, %v900_v40  ;;  %v925_v46 = vadd.f32 %v910_v44, %v901_v41  ;;  %v914_v47 = vpop.permute.xlu1 %913  ;;  %968 = vmatpush1.bf16.msra.mxu0 %v942_v39  ;;  %v5437_v39 = vand.u32 127, %v1040_v33  ;;  %v5440_v40 = vsub.s32 0, %v5431_v36 }
 0x13a   : > { %v926_v48 = vadd.f32 %v914_v47, %v902_v42  ;;  %v927_v49 = vadd.f32 %v914_v47, %v903_v43  ;;  %v5443_v41 = vsub.s32 1, %v5431_v36  ;;  %v4425_v42 = vld [vmem:[%s7930_s22 + $0xe] sm:$0x3] }
 0x13b   : > { %v932_v50 = vmax.f32 %v924_v45, 0.0  ;;  %v933_v51 = vmax.f32 %v925_v46, 0.0  ;;  %vm1221_vm2 = vcmp.lt.s32.totalorder %v5437_v39, 112  ;;  %v4424_v45 = vld [vmem:[%s7930_s22 + $0xc] sm:$0x3]  ;;  %v5458_v47 = vrot.slane %v4425_v42, %v5440_v40 }
 0x13c   : > { %v934_v52 = vmax.f32 %v926_v48, 0.0  ;;  %v935_v53 = vmax.f32 %v927_v49, 0.0  ;;  %v5455_v46 = vrot.slane %v4425_v42, %v5443_v41  ;;  %vm1191_vm3 = vcmp.lt.s32.totalorder %v5437_v39, 113 }
 0x13d   : > { %v1008_v62 = vpop.permute.xlu0 %1007  ;;  %vm1161_vm4 = vcmp.lt.s32.totalorder %v5437_v39, 127  ;;  %vm1131_vm5 = vcmp.lt.s32.totalorder %v5437_v39, 1  ;;  %vm1101_vm6 = vcmp.lt.s32.totalorder %v5437_v39, 15  ;;  %vm1071_vm7 = vcmp.lt.s32.totalorder %v5437_v39, 16 }
 0x13e   : > { %v941_v54 = vpack.c.bf16 %v935_v53, %v933_v51  ;;  %v940_v55 = vpack.c.bf16 %v934_v52, %v932_v50  ;;  %v1003_v57 = vpop.permute.xlu1 %1002  ;;  %v5466_v52 = vrot.slane %v4424_v45, %v5440_v40  ;;  %v5469_v53 = vrot.slane %v4424_v45, %v5443_v41 }
 0x13f   : > { %vm1042_vm8 = vcmp.lt.s32.totalorder %v5437_v39, 17  ;;  %vm1251_vm9 = vcmp.lt.s32.totalorder %v5437_v39, 111  ;;  %vm3095_vm10 = vcmp.lt.s32.totalorder %v5437_v39, 31  ;;  %vm2987_vm11 = vcmp.lt.s32.totalorder %v5437_v39, 32 }
 0x140   : > { %969 = vmatprep.subr.bf16.mxu0 %v941_v54  ;;  %vm2880_vm12 = vcmp.lt.s32.totalorder %v5437_v39, 33  ;;  %vm3525_vm13 = vcmp.lt.s32.totalorder %v5437_v39, 96  ;;  %vm3417_vm14 = vcmp.lt.s32.totalorder %v5437_v39, 97  ;;  %vm3633_vm15 = vcmp.lt.s32.totalorder %v5437_v39, 95 }
 0x141   : > { %970 = vmatpush1.bf16.msra.mxu0 %v940_v55  ;;  %v8108_v39 = vmov 0  }
 0x142   : > { %1425 = vmatprep.subr.bf16.mxu0 %v4434_v20 }
 0x143   : > { %v1016_v58 = vpop.permute.xlu1 %1015 }
 0x144   : > { %4419 = vmatmul.mubr.msk.bf16.vlgmr.msra.gmra.mxu0 %vm951_vm0, %v4628_v56  ;;  %v4423_v56 = vld [vmem:[%s7930_s22 + $0xa] sm:$0x3] }
 0x145   : > { %1445 = vmatprep.mubr.bf16.mxu0 %v7791_v1  ;;  %1426 = vmatpush1.bf16.msra.mxu0 %v4433_v21 }
 0x147   : > { %v1020_v6 = vpop.permute.xlu1 %1019 }
 0x204   : > { %v989_v59 = vpop.f32.mrf.mxu0 }
 0x205   : > { %v1010_v60 = vmul.f32 %v1003_v57, %v989_v59 }
 0x206   : > { %v991_v61 = vpop.f32.mrf.mxu0 }
 0x207   : > { %v1022_v63 = vadd.f32 %v1016_v58, %v1010_v60  ;;  %v1011_v2 = vmul.f32 %v1003_v57, %v991_v61 }
 0x208   : > { %v993_v3 = vpop.f32.mrf.mxu0 }
 0x209   : > { %v5327_v4 = vmax.f32 %v1022_v63, 0.0  ;;  %v1012_v5 = vmul.f32 %v1008_v62, %v993_v3  ;;  %v1023_v9 = vadd.f32 %v1016_v58, %v1011_v2 }
 0x20a   : > { %v995_v7 = vpop.f32.mrf.mxu0 }
 0x20b   : > { %v1024_v10 = vadd.f32 %v1020_v6, %v1012_v5  ;;  %v1013_v12 = vmul.f32 %v1008_v62, %v995_v7  ;;  %1213 = vrot.lane.b32.xlu0 %v5327_v4, %s4929_s11  ;;  %v5333_v15 = vmax.f32 %v1023_v9, 0.0  ;;  %v5491_v7 = vrot.slane %v4423_v56, %v5443_v41 }
 0x20d   : > { %v5331_v13 = vmax.f32 %v1024_v10, 0.0  ;;  %v1025_v14 = vadd.f32 %v1020_v6, %v1013_v12  ;;  %v5488_v6 = vrot.slane %v4423_v56, %v5440_v40  ;;  %v4421_v56 = vld [vmem:[%s7930_s22 + $0x4] sm:$0x3] }
 0x20f   : > { %v5335_v16 = vmax.f32 %v1025_v14, 0.0  ;;  %1183 = vrot.lane.b32.xlu0 %v5327_v4, %s4930_s13  ;;  %1215 = vrot.lane.b32.xlu1 %v5331_v13, %s4929_s11  ;;  %v1281_v17 = vpack.c.bf16 %v5331_v13, %v5327_v4 }
 0x211   : > { %v1282_v18 = vpack.c.bf16 %v5335_v16, %v5333_v15 }
 0x213   : > { %1153 = vrot.lane.b32.xlu0 %v5327_v4, %s4931_s3  ;;  %1185 = vrot.lane.b32.xlu1 %v5331_v13, %s4930_s13 }
 0x217   : > { %1123 = vrot.lane.b32.xlu0 %v5327_v4, %s4932_s25  ;;  %1155 = vrot.lane.b32.xlu1 %v5331_v13, %s4931_s3 }
 0x21b   : > { %1093 = vrot.lane.b32.xlu0 %v5327_v4, %s7769_s7  ;;  %1125 = vrot.lane.b32.xlu1 %v5331_v13, %s4932_s25 }
 0x21f   : > { %1063 = vrot.lane.b32.xlu0 %v5327_v4, %s7763_s8  ;;  %1095 = vrot.lane.b32.xlu1 %v5331_v13, %s7769_s7 }
 0x223   : > { %1032 = vrot.lane.b32.xlu0 %v5327_v4, %s7767_s1  ;;  %1065 = vrot.lane.b32.xlu1 %v5331_v13, %s7763_s8 }
 0x227   : > { %1217 = vrot.lane.b32.xlu0 %v5333_v15, %s4929_s11  ;;  %1034 = vrot.lane.b32.xlu1 %v5331_v13, %s7767_s1 }
 0x22b   : > { %1187 = vrot.lane.b32.xlu0 %v5333_v15, %s4930_s13  ;;  %1219 = vrot.lane.b32.xlu1 %v5335_v16, %s4929_s11 }
 0x22f   : > { %1157 = vrot.lane.b32.xlu0 %v5333_v15, %s4931_s3  ;;  %1189 = vrot.lane.b32.xlu1 %v5335_v16, %s4930_s13 }
 0x233   : > { %1243 = vrot.lane.b32.xlu0 %v5327_v4, %s7765_s2  ;;  %1159 = vrot.lane.b32.xlu1 %v5335_v16, %s4931_s3 }
 0x237   : > { %1127 = vrot.lane.b32.xlu0 %v5333_v15, %s4932_s25  ;;  %1245 = vrot.lane.b32.xlu1 %v5331_v13, %s7765_s2 }
 0x23b   : > { %1097 = vrot.lane.b32.xlu0 %v5333_v15, %s7769_s7  ;;  %1129 = vrot.lane.b32.xlu1 %v5335_v16, %s4932_s25 }
 0x23f   : > { %1067 = vrot.lane.b32.xlu0 %v5333_v15, %s7763_s8  ;;  %1099 = vrot.lane.b32.xlu1 %v5335_v16, %s7769_s7  ;;  %s4942_s7 = smov 95  }
 0x243   : > { %1036 = vrot.lane.b32.xlu0 %v5333_v15, %s7767_s1  ;;  %1069 = vrot.lane.b32.xlu1 %v5335_v16, %s7763_s8  ;;  %s7934_s8 = smov 111  }
 0x247   : > { %1247 = vrot.lane.b32.xlu0 %v5333_v15, %s7765_s2  ;;  %1038 = vrot.lane.b32.xlu1 %v5335_v16, %s7767_s1 }
 0x24b   : > { %1351 = vperm.xlu0 %4605, %v1347_v24   ;;  %1249 = vrot.lane.b32.xlu1 %v5335_v16, %s7765_s2  ;;  %s7933_s2 = smov 17  }
 0x24f   : > { %4608 = vset.pattern.permute.xlu0 %v7793_v0  ;;  %1356 = vperm.xlu1 %4607, %v1348_v25  }
 0x250   : > { %1364 = vperm.xlu0 %4608, %v1347_v24  }
 0x253   : > { %4609 = vset.pattern.permute.xlu1 %v7793_v0 }
 0x254   : > { %1368 = vperm.xlu1 %4609, %v1348_v25   ;;  %4611 = vset.pattern.permute.xlu0 %v7791_v1 }
 0x258   : > { %4610 = vset.pattern.permute.xlu1 %v7791_v1 }
 0x27d   : > { %v1214_v8 = vpop.permute.xlu0 %1213 }
 0x281   : > { %v1184_v11 = vpop.permute.xlu0 %1183  ;;  %v1216_v26 = vpop.permute.xlu1 %1215 }
 0x285   : > { %v1154_v27 = vpop.permute.xlu0 %1153  ;;  %v1186_v28 = vpop.permute.xlu1 %1185 }
 0x289   : > { %v5421_v29 = vpop.permute.xlu0 %1123  ;;  %v1156_v30 = vpop.permute.xlu1 %1155 }
 0x28d   : > { %v5423_v31 = vpop.permute.xlu0 %1093  ;;  %v5425_v32 = vpop.permute.xlu1 %1125 }
 0x291   : > { %v5427_v34 = vpop.permute.xlu0 %1063  ;;  %v5429_v35 = vpop.permute.xlu1 %1095 }
 0x295   : > { %v5433_v37 = vpop.permute.xlu0 %1032  ;;  %v5435_v38 = vpop.permute.xlu1 %1065 }
 0x299   : > { %v1218_v43 = vpop.permute.xlu0 %1217  ;;  %v5449_v44 = vpop.permute.xlu1 %1034 }
 0x29a   : > { %v1222_v48 = vsel %vm1221_vm2, %v1214_v8, %v1218_v43  ;;  %v1224_v49 = vsel %vm1221_vm2, %v1218_v43, %v1214_v8 }
 0x29b   : > { %v1240_v57 = vmul.f32 %v5455_v46, %v1224_v49  ;;  %v1239_v59 = vmul.f32 %v5458_v47, %v1222_v48  ;;  %v4422_v48 = vld [vmem:[%s7930_s22 + $0x6] sm:$0x3] }
 0x29d   : > { %v1188_v50 = vpop.permute.xlu0 %1187  ;;  %v1220_v51 = vpop.permute.xlu1 %1219 }
 0x29e   : > { %v1223_v54 = vsel %vm1221_vm2, %v1216_v26, %v1220_v51  ;;  %v1225_v55 = vsel %vm1221_vm2, %v1220_v51, %v1216_v26  ;;  %v1192_v61 = vsel %vm1191_vm3, %v1184_v11, %v1188_v50  ;;  %v1194_v62 = vsel %vm1191_vm3, %v1188_v50, %v1184_v11 }
 0x29f   : > { %v1242_v58 = vmul.f32 %v5455_v46, %v1225_v55  ;;  %v1241_v60 = vmul.f32 %v5458_v47, %v1223_v54  ;;  %v1209_v12 = vmul.f32 %v5466_v52, %v1192_v61  ;;  %v1210_v14 = vmul.f32 %v5469_v53, %v1194_v62 }
 0x2a0   : > { %v5522_v54 = vrot.slane %v4422_v48, %v5440_v40  ;;  %v5525_v55 = vrot.slane %v4422_v48, %v5443_v41  ;;  %v5541_v61 = vrot.slane %v4421_v56, %v5440_v40  ;;  %v5544_v62 = vrot.slane %v4421_v56, %v5443_v41  ;;  %v4426_v56 = vld [vmem:[%s7930_s22 + $0x10] sm:$0x3] }
 0x2a1   : > { %v1158_v63 = vpop.permute.xlu0 %1157  ;;  %v1190_v2 = vpop.permute.xlu1 %1189  ;;  %v1288_v3 = vpack.c.bf16 %v1242_v58, %v1240_v57  ;;  %v1287_v5 = vpack.c.bf16 %v1241_v60, %v1239_v59 }
 0x2a2   : > { %v1193_v9 = vsel %vm1191_vm3, %v1186_v28, %v1190_v2  ;;  %v1195_v10 = vsel %vm1191_vm3, %v1190_v2, %v1186_v28  ;;  %v1162_v21 = vsel %vm1161_vm4, %v1154_v27, %v1158_v63  ;;  %v1164_v24 = vsel %vm1161_vm4, %v1158_v63, %v1154_v27 }
 0x2a3   : > { %v1211_v19 = vmul.f32 %v5466_v52, %v1193_v9  ;;  %v1212_v20 = vmul.f32 %v5469_v53, %v1195_v10  ;;  %1304 = vmatprep.subr.bf16.mxu1 %v1288_v3  ;;  %v1179_v42 = vmul.f32 %v5488_v6, %v1162_v21  ;;  %v1180_v43 = vmul.f32 %v5491_v7, %v1164_v24 }
 0x2a4   : > { %1305 = vmatpush1.bf16.msra.mxu1 %v1287_v5 }
 0x2a5   : > { %v5505_v25 = vpop.permute.xlu0 %1243  ;;  %v1160_v8 = vpop.permute.xlu1 %1159  ;;  %v1286_v11 = vpack.c.bf16 %v1212_v20, %v1210_v14  ;;  %v1285_v26 = vpack.c.bf16 %v1211_v19, %v1209_v12 }
 0x2a6   : > { %v1163_v28 = vsel %vm1161_vm4, %v1156_v30, %v1160_v8  ;;  %v1165_v33 = vsel %vm1161_vm4, %v1160_v8, %v1156_v30  ;;  %v1047_v8 = vld [vmem:[%s7930_s22] sm:$0x3] }
 0x2a7   : > { %v1181_v45 = vmul.f32 %v5488_v6, %v1163_v28  ;;  %v1182_v27 = vmul.f32 %v5491_v7, %v1165_v33  ;;  %1306 = vmatprep.subr.bf16.mxu1 %v1286_v11 }
 0x2a8   : > { %1307 = vmatpush1.bf16.msra.mxu1 %v1285_v26 }
 0x2a9   : > { %v1128_v49 = vpop.permute.xlu0 %1127  ;;  %v5519_v50 = vpop.permute.xlu1 %1245  ;;  %v1284_v30 = vpack.c.bf16 %v1182_v27, %v1180_v43  ;;  %v1283_v51 = vpack.c.bf16 %v1181_v45, %v1179_v42  ;;  %v5596_v43 = vrot.slane %v1047_v8, %v5440_v40  ;;  %v5599_v45 = vrot.slane %v1047_v8, %v5443_v41  ;;  %v4629_v8 = vld [vmem:[%s7929_s23] ss:$8 sps:$4 sm:$0xff]  }
 0x2aa   : > { %v1132_v57 = vsel %vm1131_vm5, %v5421_v29, %v1128_v49  ;;  %v1134_v58 = vsel %vm1131_vm5, %v1128_v49, %v5421_v29 }
 0x2ab   : > { %1308 = vmatprep.subr.bf16.mxu1 %v1284_v30  ;;  %v1149_v2 = vmul.f32 %v5522_v54, %v1134_v58  ;;  %v1150_v3 = vmul.f32 %v5525_v55, %v1132_v57 }
 0x2ac   : > { %1309 = vmatpush1.bf16.msra.mxu1 %v1283_v51 }
 0x2ad   : > { %v1098_v59 = vpop.permute.xlu0 %1097  ;;  %v1130_v60 = vpop.permute.xlu1 %1129  ;;  %1310 = vmatprep.subr.bf16.mxu1 %v1282_v18  ;;  %v4420_v18 = vld [vmem:[%s7930_s22 + $0x2] sm:$0x3] }
 0x2ae   : > { %v1133_v63 = vsel %vm1131_vm5, %v5425_v32, %v1130_v60  ;;  %v1135_v29 = vsel %vm1131_vm5, %v1130_v60, %v5425_v32  ;;  %v1102_v5 = vsel %vm1101_vm6, %v5423_v31, %v1098_v59  ;;  %v1104_v32 = vsel %vm1101_vm6, %v1098_v59, %v5423_v31 }
 0x2af   : > { %v1151_v15 = vmul.f32 %v5522_v54, %v1135_v29  ;;  %v1152_v16 = vmul.f32 %v5525_v55, %v1133_v63  ;;  %v5570_v19 = vrot.slane %v4420_v18, %v5440_v40  ;;  %v5573_v20 = vrot.slane %v4420_v18, %v5443_v41 }
 0x2b0   : > { %1311 = vmatpush1.bf16.msra.mxu1 %v1281_v17  ;;  %v1119_v13 = vmul.f32 %v5541_v61, %v1104_v32  ;;  %v1120_v17 = vmul.f32 %v5544_v62, %v1102_v5  ;;  %v5622_v29 = vrot.slane %v4426_v56, %v5440_v40 }
 0x2b1   : > { %v1068_v9 = vpop.permute.xlu0 %1067  ;;  %v1100_v10 = vpop.permute.xlu1 %1099  ;;  %v1280_v12 = vpack.c.bf16 %v1152_v16, %v1150_v3  ;;  %v1279_v14 = vpack.c.bf16 %v1151_v15, %v1149_v2  ;;  %v5625_v2 = vrot.slane %v4426_v56, %v5443_v41 }
 0x2b2   : > { %v1103_v31 = vsel %vm1101_vm6, %v5429_v35, %v1100_v10  ;;  %v1105_v4 = vsel %vm1101_vm6, %v1100_v10, %v5429_v35  ;;  %v1072_v11 = vsel %vm1071_vm7, %v5427_v34, %v1068_v9  ;;  %v1074_v35 = vsel %vm1071_vm7, %v1068_v9, %v5427_v34 }
 0x2b3   : > { %v1121_v21 = vmul.f32 %v5541_v61, %v1105_v4  ;;  %v1122_v24 = vmul.f32 %v5544_v62, %v1103_v31  ;;  %1312 = vmatprep.subr.bf16.mxu1 %v1280_v12  ;;  %v1089_v48 = vmul.f32 %v5570_v19, %v1074_v35  ;;  %v1090_v49 = vmul.f32 %v5573_v20, %v1072_v11  ;;  %v4636_v35 = vld [vmem:[#allocation11] sm:$0xff]  }
 0x2b4   : > { %1313 = vmatpush1.bf16.msra.mxu1 %v1279_v14  ;;  %v4431_v11 = vcombine.low %v5316_v22, %v5319_v23 }
 0x2b5   : > { %v1037_v26 = vpop.permute.xlu0 %1036  ;;  %v1070_v28 = vpop.permute.xlu1 %1069  ;;  %v1278_v33 = vpack.c.bf16 %v1122_v24, %v1120_v17  ;;  %v1277_v42 = vpack.c.bf16 %v1121_v21, %v1119_v13 }
 0x2b6   : > { %v1073_v27 = vsel %vm1071_vm7, %v5435_v38, %v1070_v28  ;;  %v1075_v34 = vsel %vm1071_vm7, %v1070_v28, %v5435_v38  ;;  %v1043_v57 = vsel %vm1042_vm8, %v5433_v37, %v1037_v26  ;;  %v1045_v38 = vsel %vm1042_vm8, %v1037_v26, %v5433_v37  ;;  %v1507_v26 = vld [vmem:[%s7731_s12] sm:$0xff]  ;;  %v1508_v28 = vld [vmem:[%s7731_s12 + $0x8] sm:$0xff] }
 0x2b7   : > { %v1091_v30 = vmul.f32 %v5570_v19, %v1075_v34  ;;  %v1092_v51 = vmul.f32 %v5573_v20, %v1073_v27  ;;  %1314 = vmatprep.subr.bf16.mxu1 %v1278_v33  ;;  %v1059_v15 = vmul.f32 %v5596_v43, %v1045_v38  ;;  %v1060_v16 = vmul.f32 %v5599_v45, %v1043_v57 }
 0x2b8   : > { %1315 = vmatpush1.bf16.msra.mxu1 %v1277_v42  ;;  %1511 = vperm.xlu1 %4610, %v1507_v26  }
 0x2b9   : > { %v1248_v58 = vpop.permute.xlu0 %1247  ;;  %v1039_v59 = vpop.permute.xlu1 %1038  ;;  %v1276_v60 = vpack.c.bf16 %v1092_v51, %v1090_v49  ;;  %v1275_v63 = vpack.c.bf16 %v1091_v30, %v1089_v48  ;;  %1516 = vperm.xlu0 %4611, %v1508_v28  }
 0x2ba   : > { %v1044_v3 = vsel %vm1042_vm8, %v5449_v44, %v1039_v59  ;;  %v1046_v37 = vsel %vm1042_vm8, %v1039_v59, %v5449_v44  ;;  %v1252_v32 = vsel %vm1251_vm9, %v5505_v25, %v1248_v58  ;;  %v1254_v9 = vsel %vm1251_vm9, %v1248_v58, %v5505_v25 }
 0x2bb   : > { %v1061_v18 = vmul.f32 %v5596_v43, %v1046_v37  ;;  %v1062_v5 = vmul.f32 %v5599_v45, %v1044_v3  ;;  %1316 = vmatprep.subr.bf16.mxu1 %v1276_v60  ;;  %v1269_v4 = vmul.f32 %v5622_v29, %v1252_v32  ;;  %v1270_v13 = vmul.f32 %v5625_v2, %v1254_v9  ;;  %v4637_v32 = vld [vmem:[#allocation10] sm:$0xff]   ;;  %v1595_v9 = vld [vmem:[%s7733_s14 + $0x8] sm:$0xff] }
 0x2bc   : > { %1317 = vmatpush1.bf16.msra.mxu1 %v1275_v63  ;;  %4612 = vset.pattern.permute.xlu1 %v7793_v0 }
 0x2bd   : > { %v1250_v10 = vpop.permute.xlu1 %1249  ;;  %v1274_v44 = vpack.c.bf16 %v1062_v5, %v1060_v16  ;;  %v1273_v12 = vpack.c.bf16 %v1061_v18, %v1059_v15  ;;  %1524 = vperm.xlu1 %4612, %v1507_v26  }
 0x2be   : > { %v1253_v14 = vsel %vm1251_vm9, %v5519_v50, %v1250_v10  ;;  %v1255_v31 = vsel %vm1251_vm9, %v1250_v10, %v5519_v50  ;;  %v4432_v50 = vcombine.high %v5316_v22, %v5319_v23  ;;  %v1594_v22 = vld [vmem:[%s7733_s14] sm:$0xff] }
 0x2bf   : > { %v1271_v17 = vmul.f32 %v5622_v29, %v1253_v14  ;;  %v1272_v25 = vmul.f32 %v5625_v2, %v1255_v31  ;;  %1318 = vmatprep.subr.bf16.mxu1 %v1274_v44  ;;  %1598 = vperm.xlu0 %4611, %v1594_v22  }
 0x2c0   : > { %1319 = vmatpush1.bf16.msra.mxu1 %v1273_v12  ;;  %1427 = vmatprep.subr.bf16.mxu0 %v4432_v50 }
 0x2c1   : > { %v1290_v21 = vpack.c.bf16 %v1272_v25, %v1270_v13  ;;  %v1289_v24 = vpack.c.bf16 %v1271_v17, %v1269_v4  ;;  %1428 = vmatpush1.bf16.msra.mxu0 %v4431_v11  ;;  %1528 = vperm.xlu1 %4612, %v1508_v28  }
 0x2c3   : > { %1334 = vmatprep.subr.bf16.mxu1 %v1290_v21  ;;  %4614 = vset.pattern.permute.xlu0 %v7793_v0 }
 0x2c4   : > { %1335 = vmatpush2.bf16.msra.mxu1 %v1289_v24  ;;  %4435 = vmatmul.mubr.msk.bf16.vlgmr.msra.gmra.mxu0 %vm951_vm0, %v4636_v35 }
 0x2c5   : > { %1496 = vmatprep.mubr.bf16.mxu0 %v7791_v1  ;;  %1611 = vperm.xlu0 %4614, %v1594_v22  }
 0x2c6   : > { %4613 = vset.pattern.permute.xlu1 %v7791_v1  ;;  %v1352_v42 = vpop.permute.xlu0 %1351 }
 0x2c7   : > { %1337 = vmatmul.mubr.bf16.vlgmr.msra.gmra.mxu1 %v4629_v8  ;;  %1603 = vperm.xlu1 %4613, %v1595_v9  }
 0x2c8   : > { %1905 = vmatprep.mubr.bf16.mxu1 %v7791_v1 }
 0x2c9   : > { %4617 = vset.pattern.permute.xlu0 %v7791_v1 }
 0x2ca   : > { %v1357_v23 = vpop.permute.xlu1 %1356 }
 0x2cb   : > { %v1365_v51 = vpop.permute.xlu0 %1364  ;;  %4615 = vset.pattern.permute.xlu1 %v7793_v0 }
 0x2cc   : > { %1615 = vperm.xlu1 %4615, %v1595_v9  }
 0x2cf   : > { %v1369_v30 = vpop.permute.xlu1 %1368 }
 0x2d0   : > { %4616 = vset.pattern.permute.xlu1 %v7791_v1 }
 0x333   : > { %v1512_v14 = vpop.permute.xlu1 %1511 }
 0x334   : > { %v1517_v35 = vpop.permute.xlu0 %1516 }
 0x338   : > { %v1525_v17 = vpop.permute.xlu1 %1524 }
 0x384   : > { %v1447_v10 = vpop.f32.mrf.mxu0 }
 0x386   : > { %v1449_v44 = vpop.f32.mrf.mxu0 }
 0x387   : > { %v1338_v33 = vpop.f32.mrf.mxu1 }
 0x388   : > { %v1359_v48 = vmul.f32 %v1352_v42, %v1338_v33  ;;  %v1451_v12 = vpop.f32.mrf.mxu0 }
 0x389   : > { %v1340_v27 = vpop.f32.mrf.mxu1 }
 0x38a   : > { %v1360_v34 = vmul.f32 %v1352_v42, %v1340_v27  ;;  %v1371_v60 = vadd.f32 %v1365_v51, %v1359_v48  ;;  %v1453_v31 = vpop.f32.mrf.mxu0 }
 0x38b   : > { %v1342_v49 = vpop.f32.mrf.mxu1 }
 0x38c   : > { %v1361_v56 = vmul.f32 %v1357_v23, %v1342_v49  ;;  %v1372_v38 = vadd.f32 %v1365_v51, %v1360_v34  ;;  %v1375_v16 = vmax.f32 %v1371_v60, 0.0 }
 0x38d   : > { %v1344_v57 = vpop.f32.mrf.mxu1 }
 0x38e   : > { %v1373_v58 = vadd.f32 %v1369_v30, %v1361_v56  ;;  %v1362_v59 = vmul.f32 %v1357_v23, %v1344_v57  ;;  %v1376_v37 = vmax.f32 %v1372_v38, 0.0  ;;  %v1529_v23 = vpop.permute.xlu1 %1528 }
 0x390   : > { %v1374_v63 = vadd.f32 %v1369_v30, %v1362_v59  ;;  %v1377_v3 = vmax.f32 %v1373_v58, 0.0  ;;  %v4638_v58 = vld [vmem:[#allocation13] sm:$0xff]   ;;  %v1599_v59 = vpop.permute.xlu0 %1598 }
 0x392   : > { %v1378_v15 = vmax.f32 %v1374_v63, 0.0  ;;  %v1379_v5 = vpack.c.bf16 %v1377_v3, %v1375_v16  ;;  %v1604_v60 = vpop.permute.xlu1 %1603 }
 0x394   : > { %v1380_v18 = vpack.c.bf16 %v1378_v15, %v1376_v37  ;;  %v1612_v3 = vpop.permute.xlu0 %1611 }
 0x396   : > { %1478 = vmatprep.subr.bf16.mxu0 %v1380_v18 }
 0x397   : > { %1479 = vmatpush1.bf16.msra.mxu0 %v1379_v5 }
 0x39a   : > { %4437 = vmatmul.mubr.msk.bf16.vlgmr.msra.gmra.mxu0 %vm1300_vm1, %v4637_v32  ;;  %v1616_v32 = vpop.permute.xlu1 %1615 }
 0x39b   : > { %1583 = vmatprep.mubr.bf16.mxu0 %v7791_v1 }
 0x45a   : > { %v1498_v4 = vpop.f32.mrf.mxu0 }
 0x45b   : > { %v5683_v13 = vadd.f32 %v1498_v4, %v1447_v10 }
 0x45c   : > { %v1500_v25 = vpop.f32.mrf.mxu0 }
 0x45d   : > { %v5685_v21 = vadd.f32 %v1500_v25, %v1449_v44  ;;  %v1519_v11 = vmul.f32 %v1512_v14, %v5683_v13 }
 0x45e   : > { %v1502_v24 = vpop.f32.mrf.mxu0 }
 0x45f   : > { %v1520_v8 = vmul.f32 %v1512_v14, %v5685_v21  ;;  %v5688_v50 = vadd.f32 %v1502_v24, %v1451_v12  ;;  %v1531_v34 = vadd.f32 %v1525_v17, %v1519_v11 }
 0x460   : > { %v1504_v26 = vpop.f32.mrf.mxu0 }
 0x461   : > { %v1521_v28 = vmul.f32 %v1517_v35, %v5688_v50  ;;  %v5692_v22 = vadd.f32 %v1504_v26, %v1453_v31  ;;  %v1532_v33 = vadd.f32 %v1525_v17, %v1520_v8  ;;  %v1535_v56 = vmax.f32 %v1531_v34, 0.0  ;;  %v1829_v26 = vld [vmem:[%s7735_s16] sm:$0xff] }
 0x463   : > { %v1533_v42 = vadd.f32 %v1529_v23, %v1521_v28  ;;  %v1522_v27 = vmul.f32 %v1517_v35, %v5692_v22  ;;  %v1536_v30 = vmax.f32 %v1532_v33, 0.0  ;;  %v4639_v35 = vld [vmem:[%s7734_s15 + $0x4] ss:$8 sps:$4 sm:$0xff]  }
 0x464   : > { %v1830_v28 = vld [vmem:[%s7735_s16 + $0x8] sm:$0xff] }
 0x465   : > { %v1534_v48 = vadd.f32 %v1529_v23, %v1522_v27  ;;  %v1537_v49 = vmax.f32 %v1533_v42, 0.0  ;;  %v2504_v23 = vld [vmem:[%s7737_s18] sm:$0xff]  ;;  %v2505_v33 = vld [vmem:[%s7737_s18 + $0x8] sm:$0xff] }
 0x467   : > { %v1538_v51 = vmax.f32 %v1534_v48, 0.0  ;;  %v1539_v38 = vpack.c.bf16 %v1537_v49, %v1535_v56 }
 0x469   : > { %v1540_v57 = vpack.c.bf16 %v1538_v51, %v1536_v30 }
 0x46b   : > { %1565 = vmatprep.subr.bf16.mxu0 %v1540_v57 }
 0x46c   : > { %1566 = vmatpush1.bf16.msra.mxu0 %v1539_v38 }
 0x46f   : > { %4439 = vmatmul.mubr.msk.bf16.vlgmr.msra.gmra.mxu0 %vm1300_vm1, %v4638_v58 }
 0x470   : > { %4442 = vmatprep.mubr.msk.bf16.mxu0 %vm1300_vm1, %v4639_v35 }
 0x52f   : > { %v1585_v63 = vpop.f32.mrf.mxu0 }
 0x530   : > { %v1606_v37 = vmul.f32 %v1599_v59, %v1585_v63 }
 0x531   : > { %v1587_v15 = vpop.f32.mrf.mxu0 }
 0x532   : > { %v1618_v16 = vadd.f32 %v1612_v3, %v1606_v37  ;;  %v1607_v18 = vmul.f32 %v1599_v59, %v1587_v15 }
 0x533   : > { %v1589_v5 = vpop.f32.mrf.mxu0 }
 0x534   : > { %v5696_v9 = vmax.f32 %v1618_v16, 0.0  ;;  %v1608_v10 = vmul.f32 %v1604_v60, %v1589_v5  ;;  %v1619_v12 = vadd.f32 %v1612_v3, %v1607_v18 }
 0x535   : > { %v1591_v44 = vpop.f32.mrf.mxu0 }
 0x536   : > { %v1620_v14 = vadd.f32 %v1616_v32, %v1608_v10  ;;  %v1609_v31 = vmul.f32 %v1604_v60, %v1591_v44  ;;  %1724 = vrot.lane.b32.xlu1 %v5696_v9, %s4929_s11  ;;  %v5702_v25 = vmax.f32 %v1619_v12, 0.0 }
 0x538   : > { %v5700_v4 = vmax.f32 %v1620_v14, 0.0  ;;  %v1621_v17 = vadd.f32 %v1616_v32, %v1609_v31 }
 0x53a   : > { %v5704_v24 = vmax.f32 %v1621_v17, 0.0  ;;  %1708 = vrot.lane.b32.xlu1 %v5696_v9, %s4930_s13  ;;  %1726 = vrot.lane.b32.xlu0 %v5700_v4, %s4929_s11  ;;  %v1764_v8 = vpack.c.bf16 %v5700_v4, %v5696_v9 }
 0x53c   : > { %v1765_v11 = vpack.c.bf16 %v5704_v24, %v5702_v25 }
 0x53e   : > { %1692 = vrot.lane.b32.xlu1 %v5696_v9, %s4931_s3  ;;  %1710 = vrot.lane.b32.xlu0 %v5700_v4, %s4930_s13 }
 0x542   : > { %1676 = vrot.lane.b32.xlu1 %v5696_v9, %s4932_s25  ;;  %1694 = vrot.lane.b32.xlu0 %v5700_v4, %s4931_s3 }
 0x546   : > { %1660 = vrot.lane.b32.xlu1 %v5696_v9, %s7931_s10  ;;  %1678 = vrot.lane.b32.xlu0 %v5700_v4, %s4932_s25 }
 0x54a   : > { %1644 = vrot.lane.b32.xlu1 %v5696_v9, %s7932_s30  ;;  %1662 = vrot.lane.b32.xlu0 %v5700_v4, %s7931_s10 }
 0x54e   : > { %1628 = vrot.lane.b32.xlu1 %v5696_v9, %s7933_s2  ;;  %1646 = vrot.lane.b32.xlu0 %v5700_v4, %s7932_s30 }
 0x552   : > { %1728 = vrot.lane.b32.xlu1 %v5702_v25, %s4929_s11  ;;  %1630 = vrot.lane.b32.xlu0 %v5700_v4, %s7933_s2 }
 0x556   : > { %1712 = vrot.lane.b32.xlu1 %v5702_v25, %s4930_s13  ;;  %1730 = vrot.lane.b32.xlu0 %v5704_v24, %s4929_s11  ;;  %s7935_s11 = sld [smem:[#allocation96_spill]] }
 0x55a   : > { %1696 = vrot.lane.b32.xlu1 %v5702_v25, %s4931_s3  ;;  %1714 = vrot.lane.b32.xlu0 %v5704_v24, %s4930_s13 }
 0x55e   : > { %1740 = vrot.lane.b32.xlu1 %v5696_v9, %s7934_s8  ;;  %1698 = vrot.lane.b32.xlu0 %v5704_v24, %s4931_s3 }
 0x562   : > { %1680 = vrot.lane.b32.xlu1 %v5702_v25, %s4932_s25  ;;  %1742 = vrot.lane.b32.xlu0 %v5700_v4, %s7934_s8 }
 0x566   : > { %1664 = vrot.lane.b32.xlu1 %v5702_v25, %s7931_s10  ;;  %1682 = vrot.lane.b32.xlu0 %v5704_v24, %s4932_s25 }
 0x56a   : > { %1648 = vrot.lane.b32.xlu1 %v5702_v25, %s7932_s30  ;;  %1666 = vrot.lane.b32.xlu0 %v5704_v24, %s7931_s10  ;;  %s4937_s10 = smov 96  }
 0x56e   : > { %1632 = vrot.lane.b32.xlu1 %v5702_v25, %s7933_s2  ;;  %1650 = vrot.lane.b32.xlu0 %v5704_v24, %s7932_s30  ;;  %s4938_s30 = smov 97  }
 0x572   : > { %1744 = vrot.lane.b32.xlu1 %v5702_v25, %s7934_s8  ;;  %1634 = vrot.lane.b32.xlu0 %v5704_v24, %s7933_s2  ;;  %s4941_s2 = smov 33  }
 0x576   : > { %1746 = vrot.lane.b32.xlu0 %v5704_v24, %s7934_s8  ;;  %1833 = vperm.xlu1 %4616, %v1829_v26   ;;  %s5963_s8 = scalar_select %p858_p8, %s5092_s29, 1 }
 0x578   : > { %s4467_s1 = sshll.u32 %s5963_s8, 6  ;;  %s4415_s8 = sshll.u32 %s5255_s27, 8 }
 0x579   : > { %s5969_s13 = scalar_lea.vmem %s7935_s11, %s4467_s1  ;;  %s6110_s1 = scalar_lea.vmem [#allocation14], %s4415_s8 }
 0x57a   : > { %4618 = vset.pattern.permute.xlu1 %v7793_v0  ;;  %1838 = vperm.xlu0 %4617, %v1830_v28   ;;  %s7779_s11 = smov 31   ;;  %s7976_s8 = smov 32  }
 0x57b   : > { %1846 = vperm.xlu1 %4618, %v1829_v26  }
 0x57e   : > { %2524 = vperm.xlu0 %4617, %v2504_v23  }
 0x57f   : > { %1850 = vperm.xlu1 %4618, %v1830_v28  }
 0x582   : > { %4620 = vset.pattern.permute.xlu0 %v7793_v0 }
 0x583   : > { %4619 = vset.pattern.permute.xlu1 %v7791_v1  ;;  %2549 = vperm.xlu0 %4620, %v2504_v23  }
 0x584   : > { %2529 = vperm.xlu1 %4619, %v2505_v33  }
 0x587   : > { %4623 = vset.pattern.permute.xlu0 %v7791_v1 }
 0x588   : > { %4621 = vset.pattern.permute.xlu1 %v7793_v0 }
 0x589   : > { %2553 = vperm.xlu1 %4621, %v2505_v33  }
 0x58d   : > { %4622 = vset.pattern.permute.xlu1 %v7791_v1 }
 0x5a8   : > { %v1725_v42 = vpop.permute.xlu1 %1724 }
 0x5ac   : > { %v1709_v27 = vpop.permute.xlu1 %1708  ;;  %v1727_v34 = vpop.permute.xlu0 %1726 }
 0x5b0   : > { %v1693_v48 = vpop.permute.xlu1 %1692  ;;  %v1711_v49 = vpop.permute.xlu0 %1710 }
 0x5b4   : > { %v1677_v30 = vpop.permute.xlu1 %1676  ;;  %v1695_v51 = vpop.permute.xlu0 %1694 }
 0x5b8   : > { %v5794_v56 = vpop.permute.xlu1 %1660  ;;  %v1679_v57 = vpop.permute.xlu0 %1678 }
 0x5bc   : > { %v5796_v38 = vpop.permute.xlu1 %1644  ;;  %v5798_v58 = vpop.permute.xlu0 %1662 }
 0x5c0   : > { %v5800_v59 = vpop.permute.xlu1 %1628  ;;  %v5802_v60 = vpop.permute.xlu0 %1646 }
 0x5c4   : > { %v1729_v63 = vpop.permute.xlu1 %1728  ;;  %v5804_v3 = vpop.permute.xlu0 %1630 }
 0x5c5   : > { %v1732_v37 = vsel %vm1221_vm2, %v1725_v42, %v1729_v63  ;;  %v1734_v15 = vsel %vm1221_vm2, %v1729_v63, %v1725_v42 }
 0x5c6   : > { %v1736_v10 = vmul.f32 %v1732_v37, %v5458_v47  ;;  %v1737_v44 = vmul.f32 %v1734_v15, %v5455_v46 }
 0x5c8   : > { %v1713_v16 = vpop.permute.xlu1 %1712  ;;  %v1731_v18 = vpop.permute.xlu0 %1730 }
 0x5c9   : > { %v1733_v5 = vsel %vm1221_vm2, %v1727_v34, %v1731_v18  ;;  %v1735_v32 = vsel %vm1221_vm2, %v1731_v18, %v1727_v34  ;;  %v1716_v31 = vsel %vm1191_vm3, %v1709_v27, %v1713_v16  ;;  %v1718_v17 = vsel %vm1191_vm3, %v1713_v16, %v1709_v27 }
 0x5ca   : > { %v1738_v12 = vmul.f32 %v1733_v5, %v5458_v47  ;;  %v1739_v14 = vmul.f32 %v1735_v32, %v5455_v46  ;;  %v1720_v47 = vmul.f32 %v1716_v31, %v5466_v52  ;;  %v1721_v46 = vmul.f32 %v1718_v17, %v5469_v53 }
 0x5cc   : > { %v1770_v35 = vpack.c.bf16 %v1738_v12, %v1736_v10  ;;  %v1697_v26 = vpop.permute.xlu1 %1696  ;;  %v1715_v28 = vpop.permute.xlu0 %1714  ;;  %v1771_v23 = vpack.c.bf16 %v1739_v14, %v1737_v44 }
 0x5cd   : > { %v1717_v33 = vsel %vm1191_vm3, %v1711_v49, %v1715_v28  ;;  %v1719_v42 = vsel %vm1191_vm3, %v1715_v28, %v1711_v49  ;;  %v1700_v27 = vsel %vm1161_vm4, %v1693_v48, %v1697_v26  ;;  %v1702_v37 = vsel %vm1161_vm4, %v1697_v26, %v1693_v48 }
 0x5ce   : > { %v1722_v34 = vmul.f32 %v1717_v33, %v5466_v52  ;;  %v1723_v63 = vmul.f32 %v1719_v42, %v5469_v53  ;;  %1786 = vmatprep.subr.bf16.mxu0 %v1771_v23  ;;  %v1704_v53 = vmul.f32 %v1700_v27, %v5488_v6  ;;  %v1705_v32 = vmul.f32 %v1702_v37, %v5491_v7 }
 0x5cf   : > { %1787 = vmatpush1.bf16.msra.mxu0 %v1770_v35 }
 0x5d0   : > { %v1768_v15 = vpack.c.bf16 %v1722_v34, %v1720_v47  ;;  %v5834_v16 = vpop.permute.xlu1 %1740  ;;  %v1699_v49 = vpop.permute.xlu0 %1698  ;;  %v1769_v18 = vpack.c.bf16 %v1723_v63, %v1721_v46 }
 0x5d1   : > { %v1701_v5 = vsel %vm1161_vm4, %v1695_v51, %v1699_v49  ;;  %v1703_v52 = vsel %vm1161_vm4, %v1699_v49, %v1695_v51 }
 0x5d2   : > { %v1706_v10 = vmul.f32 %v1701_v5, %v5488_v6  ;;  %v1707_v48 = vmul.f32 %v1703_v52, %v5491_v7  ;;  %1788 = vmatprep.subr.bf16.mxu0 %v1769_v18 }
 0x5d3   : > { %1789 = vmatpush1.bf16.msra.mxu0 %v1768_v15 }
 0x5d4   : > { %v1766_v44 = vpack.c.bf16 %v1706_v10, %v1704_v53  ;;  %v1681_v12 = vpop.permute.xlu1 %1680  ;;  %v5844_v14 = vpop.permute.xlu0 %1742  ;;  %v1767_v31 = vpack.c.bf16 %v1707_v48, %v1705_v32 }
 0x5d5   : > { %v1684_v17 = vsel %vm1131_vm5, %v1677_v30, %v1681_v12  ;;  %v1686_v51 = vsel %vm1131_vm5, %v1681_v12, %v1677_v30 }
 0x5d6   : > { %1790 = vmatprep.subr.bf16.mxu0 %v1767_v31  ;;  %v1688_v28 = vmul.f32 %v1686_v51, %v5522_v54  ;;  %v1689_v23 = vmul.f32 %v1684_v17, %v5525_v55 }
 0x5d7   : > { %1791 = vmatpush1.bf16.msra.mxu0 %v1766_v44 }
 0x5d8   : > { %v1665_v35 = vpop.permute.xlu1 %1664  ;;  %v1683_v26 = vpop.permute.xlu0 %1682  ;;  %1792 = vmatprep.subr.bf16.mxu0 %v1765_v11 }
 0x5d9   : > { %v1685_v6 = vsel %vm1131_vm5, %v1679_v57, %v1683_v26  ;;  %v1687_v7 = vsel %vm1131_vm5, %v1683_v26, %v1679_v57  ;;  %v1668_v42 = vsel %vm1101_vm6, %v5794_v56, %v1665_v35  ;;  %v1670_v25 = vsel %vm1101_vm6, %v1665_v35, %v5794_v56 }
 0x5da   : > { %v1690_v33 = vmul.f32 %v1687_v7, %v5522_v54  ;;  %v1691_v30 = vmul.f32 %v1685_v6, %v5525_v55  ;;  %v1672_v46 = vmul.f32 %v1670_v25, %v5541_v61  ;;  %v1673_v56 = vmul.f32 %v1668_v42, %v5544_v62  ;;  %v2031_v42 = vld [vmem:[#allocation7 + $0x398] sm:$0xff]  ;;  %v2022_v25 = vld [vmem:[#allocation7 + $0x350] sm:$0xff] }
 0x5db   : > { %1793 = vmatpush1.bf16.msra.mxu0 %v1764_v8 }
 0x5dc   : > { %v1762_v24 = vpack.c.bf16 %v1690_v33, %v1688_v28  ;;  %v1649_v11 = vpop.permute.xlu1 %1648  ;;  %v1667_v57 = vpop.permute.xlu0 %1666  ;;  %v1763_v47 = vpack.c.bf16 %v1691_v30, %v1689_v23  ;;  %v4641_v33 = vld [vmem:[%s7734_s15] ss:$8 sps:$4 sm:$0xff]   ;;  %v2038_v30 = vld [vmem:[#allocation7 + $0x3d0] sm:$0xff] }
 0x5dd   : > { %v1669_v54 = vsel %vm1101_vm6, %v5798_v58, %v1667_v57  ;;  %v1671_v55 = vsel %vm1101_vm6, %v1667_v57, %v5798_v58  ;;  %v1652_v4 = vsel %vm1071_vm7, %v5796_v38, %v1649_v11  ;;  %v1654_v8 = vsel %vm1071_vm7, %v1649_v11, %v5796_v38  ;;  %v2014_v11 = vld [vmem:[#allocation7 + $0x310] sm:$0xff]  ;;  %v2007_v57 = vld [vmem:[#allocation7 + $0x2d8] sm:$0xff] }
 0x5de   : > { %v1674_v34 = vmul.f32 %v1671_v55, %v5541_v61  ;;  %v1675_v9 = vmul.f32 %v1669_v54, %v5544_v62  ;;  %1794 = vmatprep.subr.bf16.mxu0 %v1763_v47  ;;  %v1656_v15 = vmul.f32 %v1654_v8, %v5570_v19  ;;  %v1657_v49 = vmul.f32 %v1652_v4, %v5573_v20  ;;  %v2006_v47 = vld [vmem:[#allocation7 + $0x2d0] sm:$0xff]  ;;  %v1999_v54 = vld [vmem:[#allocation7 + $0x298] sm:$0xff] }
 0x5df   : > { %1795 = vmatpush1.bf16.msra.mxu0 %v1762_v24  ;;  %v2015_v24 = vld [vmem:[#allocation7 + $0x318] sm:$0xff]  ;;  %v1998_v55 = vld [vmem:[#allocation7 + $0x290] sm:$0xff] }
 0x5e0   : > { %v1760_v63 = vpack.c.bf16 %v1674_v34, %v1672_v46  ;;  %v1633_v58 = vpop.permute.xlu1 %1632  ;;  %v1651_v27 = vpop.permute.xlu0 %1650  ;;  %v1761_v37 = vpack.c.bf16 %v1675_v9, %v1673_v56  ;;  %v1991_v46 = vld [vmem:[#allocation7 + $0x258] sm:$0xff]  ;;  %v1990_v56 = vld [vmem:[#allocation7 + $0x250] sm:$0xff] }
 0x5e1   : > { %v1653_v61 = vsel %vm1071_vm7, %v5802_v60, %v1651_v27  ;;  %v1655_v62 = vsel %vm1071_vm7, %v1651_v27, %v5802_v60  ;;  %v1636_v5 = vsel %vm1042_vm8, %v5800_v59, %v1633_v58  ;;  %v1638_v52 = vsel %vm1042_vm8, %v1633_v58, %v5800_v59  ;;  %v1983_v34 = vld [vmem:[#allocation7 + $0x218] sm:$0xff]  ;;  %v1982_v9 = vld [vmem:[#allocation7 + $0x210] sm:$0xff] }
 0x5e2   : > { %v1658_v18 = vmul.f32 %v1655_v62, %v5570_v19  ;;  %v1659_v38 = vmul.f32 %v1653_v61, %v5573_v20  ;;  %1796 = vmatprep.subr.bf16.mxu0 %v1761_v37  ;;  %v1640_v48 = vmul.f32 %v1638_v52, %v5596_v43  ;;  %v1641_v44 = vmul.f32 %v1636_v5, %v5599_v45  ;;  %v1975_v4 = vld [vmem:[#allocation7 + $0x1d8] sm:$0xff]  ;;  %v1974_v8 = vld [vmem:[#allocation7 + $0x1d0] sm:$0xff] }
 0x5e3   : > { %1797 = vmatpush1.bf16.msra.mxu0 %v1760_v63  ;;  %v1967_v63 = vld [vmem:[#allocation7 + $0x198] sm:$0xff]  ;;  %v1966_v58 = vld [vmem:[#allocation7 + $0x190] sm:$0xff] }
 0x5e4   : > { %v1758_v53 = vpack.c.bf16 %v1658_v18, %v1656_v15  ;;  %v1745_v60 = vpop.permute.xlu1 %1744  ;;  %v1635_v32 = vpop.permute.xlu0 %1634  ;;  %v1759_v10 = vpack.c.bf16 %v1659_v38, %v1657_v49  ;;  %v1959_v27 = vld [vmem:[#allocation7 + $0x158] sm:$0xff]  ;;  %v1958_v37 = vld [vmem:[#allocation7 + $0x150] sm:$0xff] }
 0x5e5   : > { %v1637_v19 = vsel %vm1042_vm8, %v5804_v3, %v1635_v32  ;;  %v1639_v20 = vsel %vm1042_vm8, %v1635_v32, %v5804_v3  ;;  %v1748_v31 = vsel %vm1251_vm9, %v5834_v16, %v1745_v60  ;;  %v1750_v17 = vsel %vm1251_vm9, %v1745_v60, %v5834_v16  ;;  %v1951_v61 = vld [vmem:[#allocation7 + $0x118] sm:$0xff]  ;;  %v1950_v62 = vld [vmem:[#allocation7 + $0x110] sm:$0xff] }
 0x5e6   : > { %v1642_v12 = vmul.f32 %v1639_v20, %v5596_v43  ;;  %v1643_v59 = vmul.f32 %v1637_v19, %v5599_v45  ;;  %1798 = vmatprep.subr.bf16.mxu0 %v1759_v10  ;;  %v1752_v45 = vmul.f32 %v1748_v31, %v5622_v29  ;;  %v1753_v6 = vmul.f32 %v1750_v17, %v5625_v2  ;;  %v1943_v15 = vld [vmem:[#allocation7 + $0xd8] sm:$0xff]  ;;  %v1942_v49 = vld [vmem:[#allocation7 + $0xd0] sm:$0xff] }
 0x5e7   : > { %1799 = vmatpush1.bf16.msra.mxu0 %v1758_v53  ;;  %v1935_v18 = vld [vmem:[#allocation7 + $0x98] sm:$0xff]  ;;  %v1934_v38 = vld [vmem:[#allocation7 + $0x90] sm:$0xff] }
 0x5e8   : > { %v1756_v51 = vpack.c.bf16 %v1642_v12, %v1640_v48  ;;  %v1747_v3 = vpop.permute.xlu0 %1746  ;;  %v1757_v35 = vpack.c.bf16 %v1643_v59, %v1641_v44  ;;  %v1927_v5 = vld [vmem:[#allocation7 + $0x58] sm:$0xff]  ;;  %v1926_v52 = vld [vmem:[#allocation7 + $0x50] sm:$0xff] }
 0x5e9   : > { %v1749_v26 = vsel %vm1251_vm9, %v5844_v14, %v1747_v3  ;;  %v1751_v43 = vsel %vm1251_vm9, %v1747_v3, %v5844_v14  ;;  %v2039_v14 = vld [vmem:[#allocation7 + $0x3d8] sm:$0xff]  ;;  %v1918_v60 = vld [vmem:[#allocation7 + $0x10] sm:$0xff] }
 0x5ea   : > { %v1754_v7 = vmul.f32 %v1749_v26, %v5622_v29  ;;  %v1755_v16 = vmul.f32 %v1751_v43, %v5625_v2  ;;  %1800 = vmatprep.subr.bf16.mxu0 %v1757_v35  ;;  %v2030_v29 = vld [vmem:[#allocation7 + $0x390] sm:$0xff]  ;;  %v2023_v2 = vld [vmem:[#allocation7 + $0x358] sm:$0xff] }
 0x5eb   : > { %1801 = vmatpush1.bf16.msra.mxu0 %v1756_v51  ;;  %v1919_v53 = vld [vmem:[#allocation7 + $0x18] sm:$0xff]  ;;  %v2166_v10 = vld [vmem:[#allocation7 + $0x7d0] sm:$0xff] }
 0x5ec   : > { %v1772_v28 = vpack.c.bf16 %v1754_v7, %v1752_v45  ;;  %v1773_v23 = vpack.c.bf16 %v1755_v16, %v1753_v6  ;;  %v2167_v32 = vld [vmem:[#allocation7 + $0x7d8] sm:$0xff]  ;;  %v2158_v20 = vld [vmem:[#allocation7 + $0x790] sm:$0xff] }
 0x5ed   : > { %v2159_v19 = vld [vmem:[#allocation7 + $0x798] sm:$0xff]  ;;  %v2150_v44 = vld [vmem:[#allocation7 + $0x750] sm:$0xff] }
 0x5ee   : > { %1816 = vmatprep.subr.bf16.mxu0 %v1773_v23  ;;  %v2151_v48 = vld [vmem:[#allocation7 + $0x758] sm:$0xff]  ;;  %v2142_v59 = vld [vmem:[#allocation7 + $0x710] sm:$0xff] }
 0x5ef   : > { %1817 = vmatpush2.bf16.msra.mxu0 %v1772_v28  ;;  %v2143_v12 = vld [vmem:[#allocation7 + $0x718] sm:$0xff]  ;;  %v2134_v17 = vld [vmem:[#allocation7 + $0x6d0] sm:$0xff] }
 0x5f0   : > { %2249 = vmatprep.subr.mxu0 %v2039_v14  ;;  %v2135_v31 = vld [vmem:[#allocation7 + $0x6d8] sm:$0xff]  ;;  %v2126_v3 = vld [vmem:[#allocation7 + $0x690] sm:$0xff] }
 0x5f1   : > { %v2127_v51 = vld [vmem:[#allocation7 + $0x698] sm:$0xff]  ;;  %v2118_v26 = vld [vmem:[#allocation7 + $0x650] sm:$0xff] }
 0x5f2   : > { %1819 = vmatmul.mubr.bf16.vlgmr.msra.gmra.mxu0 %v4641_v33  ;;  %v2119_v35 = vld [vmem:[#allocation7 + $0x658] sm:$0xff]  ;;  %v2110_v45 = vld [vmem:[#allocation7 + $0x610] sm:$0xff] }
 0x5f3   : > { %2250 = vmatpush1.msra.mxu0 %v2038_v30  ;;  %v2111_v43 = vld [vmem:[#allocation7 + $0x618] sm:$0xff]  ;;  %v2102_v7 = vld [vmem:[#allocation7 + $0x5d0] sm:$0xff] }
 0x5f4   : > { %2251 = vmatprep.subr.mxu0 %v2031_v42  ;;  %v2103_v6 = vld [vmem:[#allocation7 + $0x5d8] sm:$0xff]  ;;  %v2094_v28 = vld [vmem:[#allocation7 + $0x590] sm:$0xff] }
 0x5f5   : > { %2252 = vmatpush1.msra.mxu0 %v2030_v29  ;;  %v2095_v16 = vld [vmem:[#allocation7 + $0x598] sm:$0xff]  ;;  %v2086_v33 = vld [vmem:[#allocation7 + $0x550] sm:$0xff] }
 0x5f6   : > { %2253 = vmatprep.subr.mxu0 %v2023_v2  ;;  %v2087_v23 = vld [vmem:[#allocation7 + $0x558] sm:$0xff]  ;;  %v2078_v30 = vld [vmem:[#allocation7 + $0x510] sm:$0xff] }
 0x5f7   : > { %2254 = vmatpush1.msra.mxu0 %v2022_v25  ;;  %v2079_v14 = vld [vmem:[#allocation7 + $0x518] sm:$0xff]  ;;  %v2070_v29 = vld [vmem:[#allocation7 + $0x4d0] sm:$0xff]  ;;  %v1834_v25 = vpop.permute.xlu1 %1833 }
 0x5f8   : > { %2255 = vmatprep.subr.mxu0 %v2015_v24  ;;  %v2071_v42 = vld [vmem:[#allocation7 + $0x4d8] sm:$0xff] }
 0x5f9   : > { %2256 = vmatpush1.msra.mxu0 %v2014_v11  ;;  %v2063_v2 = vld [vmem:[#allocation7 + $0x498] sm:$0xff] }
 0x5fa   : > { %2257 = vmatprep.subr.mxu0 %v2007_v57 }
 0x5fb   : > { %2258 = vmatpush1.msra.mxu0 %v2006_v47  ;;  %v1847_v24 = vpop.permute.xlu1 %1846 }
 0x5fc   : > { %2259 = vmatprep.subr.mxu0 %v1999_v54  ;;  %v1839_v54 = vpop.permute.xlu0 %1838 }
 0x5fd   : > { %2260 = vmatpush1.msra.mxu0 %v1998_v55 }
 0x5fe   : > { %2261 = vmatprep.subr.mxu0 %v1991_v46 }
 0x5ff   : > { %2262 = vmatpush1.msra.mxu0 %v1990_v56 }
 0x600   : > { %2263 = vmatprep.subr.mxu0 %v1983_v34  ;;  %v1851_v34 = vpop.permute.xlu1 %1850 }
 0x601   : > { %2264 = vmatpush1.msra.mxu0 %v1982_v9 }
 0x602   : > { %2265 = vmatprep.subr.mxu0 %v1975_v4 }
 0x603   : > { %2266 = vmatpush1.msra.mxu0 %v1974_v8 }
 0x604   : > { %2267 = vmatprep.subr.mxu0 %v1967_v63 }
 0x605   : > { %2268 = vmatpush1.msra.mxu0 %v1966_v58 }
 0x606   : > { %2269 = vmatprep.subr.mxu0 %v1959_v27 }
 0x607   : > { %2270 = vmatpush1.msra.mxu0 %v1958_v37 }
 0x608   : > { %2271 = vmatprep.subr.mxu0 %v1951_v61 }
 0x609   : > { %2272 = vmatpush1.msra.mxu0 %v1950_v62 }
 0x60a   : > { %2273 = vmatprep.subr.mxu0 %v1943_v15 }
 0x60b   : > { %2274 = vmatpush1.msra.mxu0 %v1942_v49 }
 0x60c   : > { %2275 = vmatprep.subr.mxu0 %v1935_v18 }
 0x60d   : > { %2276 = vmatpush1.msra.mxu0 %v1934_v38  ;;  %v2037_v38 = vld [vmem:[#allocation7 + $0x3c8] sm:$0xff] }
 0x60e   : > { %2277 = vmatprep.subr.mxu0 %v1927_v5  ;;  %v4642_v5 = vld [vmem:[%s7736_s17] sm:$0xff]  }
 0x60f   : > { %2278 = vmatpush1.msra.mxu0 %v1926_v52  ;;  %v2036_v52 = vld [vmem:[#allocation7 + $0x3c0] sm:$0xff] }
 0x610   : > { %2279 = vmatprep.subr.mxu0 %v1919_v53  ;;  %v2029_v53 = vld [vmem:[#allocation7 + $0x388] sm:$0xff] }
 0x611   : > { %2280 = vmatpush1.msra.mxu0 %v1918_v60  ;;  %v2028_v60 = vld [vmem:[#allocation7 + $0x380] sm:$0xff] }
 0x612   : > { %2281 = vmatprep.subr.mxu0 %v2167_v32  ;;  %v2021_v32 = vld [vmem:[#allocation7 + $0x348] sm:$0xff] }
 0x613   : > { %2282 = vmatpush2.msra.mxu0 %v2166_v10  ;;  %v2020_v10 = vld [vmem:[#allocation7 + $0x340] sm:$0xff] }
 0x614   : > { %2283 = vmatprep.subr.mxu0 %v2159_v19  ;;  %v2013_v19 = vld [vmem:[#allocation7 + $0x308] sm:$0xff] }
 0x615   : > { %2284 = vmatpush2.msra.mxu0 %v2158_v20  ;;  %v2012_v20 = vld [vmem:[#allocation7 + $0x300] sm:$0xff] }
 0x616   : > { %2285 = vmatprep.subr.mxu0 %v2151_v48  ;;  %v2005_v48 = vld [vmem:[#allocation7 + $0x2c8] sm:$0xff] }
 0x617   : > { %2286 = vmatpush2.msra.mxu0 %v2150_v44  ;;  %v2004_v44 = vld [vmem:[#allocation7 + $0x2c0] sm:$0xff] }
 0x618   : > { %2287 = vmatprep.subr.mxu0 %v2143_v12  ;;  %v1997_v12 = vld [vmem:[#allocation7 + $0x288] sm:$0xff] }
 0x619   : > { %2288 = vmatpush2.msra.mxu0 %v2142_v59  ;;  %v1996_v59 = vld [vmem:[#allocation7 + $0x280] sm:$0xff] }
 0x61a   : > { %2289 = vmatprep.subr.mxu0 %v2135_v31  ;;  %v1989_v31 = vld [vmem:[#allocation7 + $0x248] sm:$0xff] }
 0x61b   : > { %2290 = vmatpush2.msra.mxu0 %v2134_v17  ;;  %v1988_v17 = vld [vmem:[#allocation7 + $0x240] sm:$0xff] }
 0x61c   : > { %2291 = vmatprep.subr.mxu0 %v2127_v51  ;;  %v1981_v51 = vld [vmem:[#allocation7 + $0x208] sm:$0xff] }
 0x61d   : > { %2292 = vmatpush2.msra.mxu0 %v2126_v3  ;;  %v1980_v3 = vld [vmem:[#allocation7 + $0x200] sm:$0xff] }
 0x61e   : > { %2293 = vmatprep.subr.mxu0 %v2119_v35  ;;  %v1973_v35 = vld [vmem:[#allocation7 + $0x1c8] sm:$0xff] }
 0x61f   : > { %2294 = vmatpush2.msra.mxu0 %v2118_v26  ;;  %v1972_v26 = vld [vmem:[#allocation7 + $0x1c0] sm:$0xff] }
 0x620   : > { %2295 = vmatprep.subr.mxu0 %v2111_v43  ;;  %v1965_v43 = vld [vmem:[#allocation7 + $0x188] sm:$0xff] }
 0x621   : > { %2296 = vmatpush2.msra.mxu0 %v2110_v45  ;;  %v1964_v45 = vld [vmem:[#allocation7 + $0x180] sm:$0xff] }
 0x622   : > { %2297 = vmatprep.subr.mxu0 %v2103_v6  ;;  %v1957_v6 = vld [vmem:[#allocation7 + $0x148] sm:$0xff] }
 0x623   : > { %2298 = vmatpush2.msra.mxu0 %v2102_v7  ;;  %v1956_v7 = vld [vmem:[#allocation7 + $0x140] sm:$0xff] }
 0x624   : > { %2299 = vmatprep.subr.mxu0 %v2095_v16  ;;  %v1949_v16 = vld [vmem:[#allocation7 + $0x108] sm:$0xff] }
 0x625   : > { %2300 = vmatpush2.msra.mxu0 %v2094_v28  ;;  %v1948_v28 = vld [vmem:[#allocation7 + $0x100] sm:$0xff] }
 0x626   : > { %2301 = vmatprep.subr.mxu0 %v2087_v23  ;;  %v1941_v23 = vld [vmem:[#allocation7 + $0xc8] sm:$0xff] }
 0x627   : > { %2302 = vmatpush2.msra.mxu0 %v2086_v33  ;;  %v1940_v33 = vld [vmem:[#allocation7 + $0xc0] sm:$0xff] }
 0x628   : > { %2303 = vmatprep.subr.mxu0 %v2079_v14  ;;  %v1933_v14 = vld [vmem:[#allocation7 + $0x88] sm:$0xff] }
 0x629   : > { %2304 = vmatpush2.msra.mxu0 %v2078_v30  ;;  %v1932_v30 = vld [vmem:[#allocation7 + $0x80] sm:$0xff] }
 0x62a   : > { %2305 = vmatprep.subr.mxu0 %v2071_v42  ;;  %v1925_v42 = vld [vmem:[#allocation7 + $0x48] sm:$0xff] }
 0x62b   : > { %2306 = vmatpush2.msra.mxu0 %v2070_v29  ;;  %v1924_v29 = vld [vmem:[#allocation7 + $0x40] sm:$0xff] }
 0x62c   : > { %2307 = vmatprep.subr.mxu0 %v2063_v2  ;;  %v1917_v2 = vld [vmem:[#allocation7 + $0x8] sm:$0xff] }
 0x6b2   : > { %v1820_v11 = vpop.f32.mrf.mxu0 }
 0x6b3   : > { %v1841_v55 = vmul.f32 %v1834_v25, %v1820_v11  ;;  %v2164_v11 = vld [vmem:[#allocation7 + $0x7c0] sm:$0xff] }
 0x6b4   : > { %v1822_v57 = vpop.f32.mrf.mxu0 }
 0x6b5   : > { %v1842_v47 = vmul.f32 %v1834_v25, %v1822_v57  ;;  %v1853_v58 = vadd.f32 %v1847_v24, %v1841_v55  ;;  %v1916_v25 = vld [vmem:[#allocation7] sm:$0xff]  ;;  %v2157_v57 = vld [vmem:[#allocation7 + $0x788] sm:$0xff] }
 0x6b6   : > { %v1824_v46 = vpop.f32.mrf.mxu0  ;;  %v2148_v55 = vld [vmem:[#allocation7 + $0x740] sm:$0xff] }
 0x6b7   : > { %v1843_v56 = vmul.f32 %v1839_v54, %v1824_v46  ;;  %v1854_v4 = vadd.f32 %v1847_v24, %v1842_v47  ;;  %v1857_v15 = vmax.f32 %v1853_v58, 0.0  ;;  %v2165_v24 = vld [vmem:[#allocation7 + $0x7c8] sm:$0xff]  ;;  %v2156_v47 = vld [vmem:[#allocation7 + $0x780] sm:$0xff] }
 0x6b8   : > { %v1826_v9 = vpop.f32.mrf.mxu0  ;;  %v2141_v46 = vld [vmem:[#allocation7 + $0x708] sm:$0xff]  ;;  %v2116_v58 = vld [vmem:[#allocation7 + $0x640] sm:$0xff] }
 0x6b9   : > { %v1855_v8 = vadd.f32 %v1851_v34, %v1843_v56  ;;  %v1844_v63 = vmul.f32 %v1839_v54, %v1826_v9  ;;  %v1858_v61 = vmax.f32 %v1854_v4, 0.0  ;;  %v2149_v54 = vld [vmem:[#allocation7 + $0x748] sm:$0xff]  ;;  %v2140_v56 = vld [vmem:[#allocation7 + $0x700] sm:$0xff] }
 0x6ba   : > { %v2132_v9 = vld [vmem:[#allocation7 + $0x6c0] sm:$0xff]  ;;  %v2125_v4 = vld [vmem:[#allocation7 + $0x688] sm:$0xff] }
 0x6bb   : > { %v1856_v27 = vadd.f32 %v1851_v34, %v1844_v63  ;;  %v1859_v37 = vmax.f32 %v1855_v8, 0.0  ;;  %v2133_v34 = vld [vmem:[#allocation7 + $0x6c8] sm:$0xff]  ;;  %v2124_v8 = vld [vmem:[#allocation7 + $0x680] sm:$0xff] }
 0x6bc   : > { %v2117_v63 = vld [vmem:[#allocation7 + $0x648] sm:$0xff] }
 0x6bd   : > { %v1860_v62 = vmax.f32 %v1856_v27, 0.0  ;;  %v1861_v18 = vpack.c.bf16 %v1859_v37, %v1857_v15  ;;  %v2109_v27 = vld [vmem:[#allocation7 + $0x608] sm:$0xff]  ;;  %v2108_v37 = vld [vmem:[#allocation7 + $0x600] sm:$0xff] }
 0x6be   : > { %v2093_v15 = vld [vmem:[#allocation7 + $0x588] sm:$0xff] }
 0x6bf   : > { %v1862_v49 = vpack.c.bf16 %v1860_v62, %v1858_v61  ;;  %v2101_v61 = vld [vmem:[#allocation7 + $0x5c8] sm:$0xff]  ;;  %v2100_v62 = vld [vmem:[#allocation7 + $0x5c0] sm:$0xff] }
 0x6c1   : > { %1887 = vmatprep.subr.bf16.mxu1 %v1862_v49  ;;  %v2092_v49 = vld [vmem:[#allocation7 + $0x580] sm:$0xff] }
 0x6c2   : > { %1888 = vmatpush1.bf16.msra.mxu1 %v1861_v18  ;;  %v2085_v18 = vld [vmem:[#allocation7 + $0x548] sm:$0xff] }
 0x6c3   : > { %2172 = vmatprep.subr.mxu1 %v2037_v38  ;;  %v2084_v38 = vld [vmem:[#allocation7 + $0x540] sm:$0xff] }
 0x6c5   : > { %4444 = vmatmul.mubr.msk.bf16.vlgmr.msra.gmra.mxu1 %vm1300_vm1, %v4642_v5  ;;  %v2077_v5 = vld [vmem:[#allocation7 + $0x508] sm:$0xff] }
 0x6c6   : > { %2173 = vmatpush1.msra.mxu1 %v2036_v52  ;;  %v2076_v52 = vld [vmem:[#allocation7 + $0x500] sm:$0xff] }
 0x6c7   : > { %2174 = vmatprep.subr.mxu1 %v2029_v53  ;;  %v2069_v53 = vld [vmem:[#allocation7 + $0x4c8] sm:$0xff] }
 0x6c8   : > { %2175 = vmatpush1.msra.mxu1 %v2028_v60  ;;  %v2068_v60 = vld [vmem:[#allocation7 + $0x4c0] sm:$0xff] }
 0x6c9   : > { %2176 = vmatprep.subr.mxu1 %v2021_v32  ;;  %v2061_v32 = vld [vmem:[#allocation7 + $0x488] sm:$0xff] }
 0x6ca   : > { %2177 = vmatpush1.msra.mxu1 %v2020_v10  ;;  %v2060_v10 = vld [vmem:[#allocation7 + $0x480] sm:$0xff] }
 0x6cb   : > { %2178 = vmatprep.subr.mxu1 %v2013_v19  ;;  %v2062_v19 = vld [vmem:[#allocation7 + $0x490] sm:$0xff] }
 0x6cc   : > { %2179 = vmatpush1.msra.mxu1 %v2012_v20  ;;  %2308 = vmatpush2.msra.mxu0 %v2062_v19  ;;  %v2053_v20 = vld [vmem:[#allocation7 + $0x448] sm:$0xff]  ;;  %v1970_v19 = vld [vmem:[#allocation7 + $0x1b0] sm:$0xff] }
 0x6cd   : > { %2180 = vmatprep.subr.mxu1 %v2005_v48  ;;  %v2055_v48 = vld [vmem:[#allocation7 + $0x458] sm:$0xff] }
 0x6ce   : > { %2181 = vmatpush1.msra.mxu1 %v2004_v44  ;;  %2309 = vmatprep.subr.mxu0 %v2055_v48  ;;  %v2052_v44 = vld [vmem:[#allocation7 + $0x440] sm:$0xff]  ;;  %v1963_v48 = vld [vmem:[#allocation7 + $0x178] sm:$0xff] }
 0x6cf   : > { %2182 = vmatprep.subr.mxu1 %v1997_v12  ;;  %v2054_v12 = vld [vmem:[#allocation7 + $0x450] sm:$0xff] }
 0x6d0   : > { %2183 = vmatpush1.msra.mxu1 %v1996_v59  ;;  %2310 = vmatpush2.msra.mxu0 %v2054_v12  ;;  %v2045_v59 = vld [vmem:[#allocation7 + $0x408] sm:$0xff]  ;;  %v1962_v12 = vld [vmem:[#allocation7 + $0x170] sm:$0xff] }
 0x6d1   : > { %2184 = vmatprep.subr.mxu1 %v1989_v31  ;;  %v2047_v31 = vld [vmem:[#allocation7 + $0x418] sm:$0xff] }
 0x6d2   : > { %2185 = vmatpush1.msra.mxu1 %v1988_v17  ;;  %2311 = vmatprep.subr.mxu0 %v2047_v31  ;;  %v2044_v17 = vld [vmem:[#allocation7 + $0x400] sm:$0xff]  ;;  %v1955_v31 = vld [vmem:[#allocation7 + $0x138] sm:$0xff] }
 0x6d3   : > { %2186 = vmatprep.subr.mxu1 %v1981_v51  ;;  %v2046_v51 = vld [vmem:[#allocation7 + $0x410] sm:$0xff] }
 0x6d4   : > { %2187 = vmatpush1.msra.mxu1 %v1980_v3  ;;  %2312 = vmatpush2.msra.mxu0 %v2046_v51  ;;  %v2041_v3 = vld [vmem:[#allocation7 + $0x3e8] sm:$0xff]  ;;  %v1954_v51 = vld [vmem:[#allocation7 + $0x130] sm:$0xff] }
 0x6d5   : > { %2188 = vmatprep.subr.mxu1 %v1973_v35  ;;  %v2043_v35 = vld [vmem:[#allocation7 + $0x3f8] sm:$0xff] }
 0x6d6   : > { %2189 = vmatpush1.msra.mxu1 %v1972_v26  ;;  %2403 = vmatprep.subr.mxu0 %v2043_v35  ;;  %v2778_v26 = vld [vmem:[%s7739_s20] sm:$0xff] }
 0x6d7   : > { %2190 = vmatprep.subr.mxu1 %v1965_v43  ;;  %v2779_v43 = vld [vmem:[%s7739_s20 + $0x8] sm:$0xff]  ;;  %2782 = vperm.xlu1 %4622, %v2778_v26   ;;  %v1947_v35 = vld [vmem:[#allocation7 + $0xf8] sm:$0xff] }
 0x6d8   : > { %2191 = vmatpush1.msra.mxu1 %v1964_v45  ;;  %2787 = vperm.xlu0 %4623, %v2779_v43  }
 0x6d9   : > { %2192 = vmatprep.subr.mxu1 %v1957_v6 }
 0x6da   : > { %2193 = vmatpush1.msra.mxu1 %v1956_v7 }
 0x6db   : > { %2194 = vmatprep.subr.mxu1 %v1949_v16  ;;  %4624 = vset.pattern.permute.xlu1 %v7793_v0 }
 0x6dc   : > { %2195 = vmatpush1.msra.mxu1 %v1948_v28  ;;  %2807 = vperm.xlu1 %4624, %v2778_v26   ;;  %v1944_v26 = vld [vmem:[#allocation7 + $0xe0] sm:$0xff] }
 0x6dd   : > { %2196 = vmatprep.subr.mxu1 %v1941_v23  ;;  %v2040_v23 = vld [vmem:[#allocation7 + $0x3e0] sm:$0xff] }
 0x6de   : > { %2197 = vmatpush1.msra.mxu1 %v1940_v33  ;;  %v2042_v33 = vld [vmem:[#allocation7 + $0x3f0] sm:$0xff] }
 0x6df   : > { %2198 = vmatprep.subr.mxu1 %v1933_v14  ;;  %v2033_v14 = vld [vmem:[#allocation7 + $0x3a8] sm:$0xff] }
 0x6e0   : > { %2199 = vmatpush1.msra.mxu1 %v1932_v30  ;;  %2811 = vperm.xlu1 %4624, %v2779_v43   ;;  %v2035_v30 = vld [vmem:[#allocation7 + $0x3b8] sm:$0xff]  ;;  %v1946_v43 = vld [vmem:[#allocation7 + $0xf0] sm:$0xff] }
 0x6e1   : > { %2200 = vmatprep.subr.mxu1 %v1925_v42 }
 0x6e2   : > { %2201 = vmatpush1.msra.mxu1 %v1924_v29  ;;  %v2032_v29 = vld [vmem:[#allocation7 + $0x3a0] sm:$0xff] }
 0x6e3   : > { %2202 = vmatprep.subr.mxu1 %v1917_v2  ;;  %v2034_v2 = vld [vmem:[#allocation7 + $0x3b0] sm:$0xff] }
 0x6e4   : > { %2203 = vmatpush1.msra.mxu1 %v1916_v25  ;;  %4625 = vset.pattern.permute.xlu1 %v7791_v1 }
 0x6e5   : > { %2204 = vmatprep.subr.mxu1 %v2165_v24 }
 0x6e6   : > { %2205 = vmatpush2.msra.mxu1 %v2164_v11  ;;  %v2024_v11 = vld [vmem:[#allocation7 + $0x360] sm:$0xff] }
 0x6e7   : > { %2206 = vmatprep.subr.mxu1 %v2157_v57  ;;  %v2026_v57 = vld [vmem:[#allocation7 + $0x370] sm:$0xff] }
 0x6e8   : > { %2207 = vmatpush2.msra.mxu1 %v2156_v47  ;;  %v2019_v47 = vld [vmem:[#allocation7 + $0x338] sm:$0xff] }
 0x6e9   : > { %2208 = vmatprep.subr.mxu1 %v2149_v54  ;;  %v2016_v54 = vld [vmem:[#allocation7 + $0x320] sm:$0xff] }
 0x6ea   : > { %2209 = vmatpush2.msra.mxu1 %v2148_v55  ;;  %v2018_v55 = vld [vmem:[#allocation7 + $0x330] sm:$0xff] }
 0x6eb   : > { %2210 = vmatprep.subr.mxu1 %v2141_v46  ;;  %v2011_v46 = vld [vmem:[#allocation7 + $0x2f8] sm:$0xff] }
 0x6ec   : > { %2211 = vmatpush2.msra.mxu1 %v2140_v56  ;;  %v2008_v56 = vld [vmem:[#allocation7 + $0x2e0] sm:$0xff] }
 0x6ed   : > { %2212 = vmatprep.subr.mxu1 %v2133_v34  ;;  %v2010_v34 = vld [vmem:[#allocation7 + $0x2f0] sm:$0xff] }
 0x6ee   : > { %2213 = vmatpush2.msra.mxu1 %v2132_v9  ;;  %v2001_v9 = vld [vmem:[#allocation7 + $0x2a8] sm:$0xff] }
 0x6ef   : > { %2214 = vmatprep.subr.mxu1 %v2125_v4  ;;  %v2003_v4 = vld [vmem:[#allocation7 + $0x2b8] sm:$0xff] }
 0x6f0   : > { %2215 = vmatpush2.msra.mxu1 %v2124_v8  ;;  %v2000_v8 = vld [vmem:[#allocation7 + $0x2a0] sm:$0xff] }
 0x6f1   : > { %2216 = vmatprep.subr.mxu1 %v2117_v63  ;;  %v2002_v63 = vld [vmem:[#allocation7 + $0x2b0] sm:$0xff] }
 0x6f2   : > { %2217 = vmatpush2.msra.mxu1 %v2116_v58  ;;  %v1993_v58 = vld [vmem:[#allocation7 + $0x268] sm:$0xff] }
 0x6f3   : > { %2218 = vmatprep.subr.mxu1 %v2109_v27  ;;  %v1995_v27 = vld [vmem:[#allocation7 + $0x278] sm:$0xff] }
 0x6f4   : > { %2219 = vmatpush2.msra.mxu1 %v2108_v37  ;;  %v1992_v37 = vld [vmem:[#allocation7 + $0x260] sm:$0xff] }
 0x6f5   : > { %2220 = vmatprep.subr.mxu1 %v2101_v61  ;;  %v1994_v61 = vld [vmem:[#allocation7 + $0x270] sm:$0xff] }
 0x6f6   : > { %2221 = vmatpush2.msra.mxu1 %v2100_v62  ;;  %v1985_v62 = vld [vmem:[#allocation7 + $0x228] sm:$0xff] }
 0x6f7   : > { %2222 = vmatprep.subr.mxu1 %v2093_v15  ;;  %v1987_v15 = vld [vmem:[#allocation7 + $0x238] sm:$0xff] }
 0x6f8   : > { %2223 = vmatpush2.msra.mxu1 %v2092_v49  ;;  %v1984_v49 = vld [vmem:[#allocation7 + $0x220] sm:$0xff] }
 0x6f9   : > { %2224 = vmatprep.subr.mxu1 %v2085_v18  ;;  %v1986_v18 = vld [vmem:[#allocation7 + $0x230] sm:$0xff] }
 0x6fa   : > { %2225 = vmatpush2.msra.mxu1 %v2084_v38  ;;  %v1977_v38 = vld [vmem:[#allocation7 + $0x1e8] sm:$0xff] }
 0x6fb   : > { %2226 = vmatprep.subr.mxu1 %v2077_v5  ;;  %v1979_v5 = vld [vmem:[#allocation7 + $0x1f8] sm:$0xff] }
 0x6fc   : > { %2227 = vmatpush2.msra.mxu1 %v2076_v52  ;;  %v1976_v52 = vld [vmem:[#allocation7 + $0x1e0] sm:$0xff] }
 0x6fd   : > { %2228 = vmatprep.subr.mxu1 %v2069_v53  ;;  %v1978_v53 = vld [vmem:[#allocation7 + $0x1f0] sm:$0xff] }
 0x6fe   : > { %2229 = vmatpush2.msra.mxu1 %v2068_v60  ;;  %v1969_v60 = vld [vmem:[#allocation7 + $0x1a8] sm:$0xff] }
 0x6ff   : > { %2230 = vmatprep.subr.mxu1 %v2061_v32  ;;  %v1971_v32 = vld [vmem:[#allocation7 + $0x1b8] sm:$0xff] }
 0x700   : > { %2231 = vmatpush2.msra.mxu1 %v2060_v10  ;;  %v1968_v10 = vld [vmem:[#allocation7 + $0x1a0] sm:$0xff] }
 0x701   : > { %2232 = vmatprep.subr.mxu1 %v2053_v20  ;;  %v1961_v20 = vld [vmem:[#allocation7 + $0x168] sm:$0xff] }
 0x702   : > { %2233 = vmatpush2.msra.mxu1 %v2052_v44  ;;  %v1960_v44 = vld [vmem:[#allocation7 + $0x160] sm:$0xff] }
 0x703   : > { %2234 = vmatprep.subr.mxu1 %v2045_v59  ;;  %v1953_v59 = vld [vmem:[#allocation7 + $0x128] sm:$0xff] }
 0x704   : > { %2235 = vmatpush2.msra.mxu1 %v2044_v17  ;;  %v1952_v17 = vld [vmem:[#allocation7 + $0x120] sm:$0xff] }
 0x705   : > { %2326 = vmatprep.subr.mxu1 %v2041_v3  ;;  %v1945_v3 = vld [vmem:[#allocation7 + $0xe8] sm:$0xff] }
 0x785   : > { %v1907_v45 = vpop.f32.mrf.mxu1 }
 0x786   : > { %v5945_v16 = vadd.f32 %v1907_v45, %v5683_v13  ;;  %v2025_v13 = vld [vmem:[#allocation7 + $0x368] sm:$0xff] }
 0x787   : > { %v1909_v6 = vpop.f32.mrf.mxu1  ;;  %v1937_v45 = vld [vmem:[#allocation7 + $0xa8] sm:$0xff] }
 0x788   : > { %v1910_v7 = vadd.f32 %v1909_v6, %v5685_v21  ;;  %v2027_v21 = vld [vmem:[#allocation7 + $0x378] sm:$0xff] }
 0x789   : > { %v1911_v28 = vpop.f32.mrf.mxu1  ;;  %v1939_v6 = vld [vmem:[#allocation7 + $0xb8] sm:$0xff] }
 0x78a   : > { %2236 = vmatprep.mubr.f32.mxu1 %v1910_v7  ;;  %2313 = vmatprep.mubr.f32.mxu0 %v1910_v7  ;;  %v5953_v24 = vadd.f32 %v1911_v28, %v5688_v50  ;;  %v2009_v50 = vld [vmem:[#allocation7 + $0x2e8] sm:$0xff]  ;;  %v1938_v28 = vld [vmem:[#allocation7 + $0xb0] sm:$0xff] }
 0x78b   : > { %v1913_v42 = vpop.f32.mrf.mxu1  ;;  %2237 = vmatmul.mubr.f32.vlgmr.msra.gmra.mxu1 %v5945_v16  ;;  %2314 = vmatmul.mubr.f32.vlgmr.msra.gmra.mxu0 %v5945_v16 }
 0x78c   : > { %v5950_v25 = vadd.f32 %v1913_v42, %v5692_v22  ;;  %2327 = vmatpush1.msra.mxu1 %v2040_v23  ;;  %2404 = vmatpush1.msra.mxu0 %v2042_v33  ;;  %v2017_v22 = vld [vmem:[#allocation7 + $0x328] sm:$0xff]  ;;  %v1931_v33 = vld [vmem:[#allocation7 + $0x78] sm:$0xff] }
 0x78d   : > { %2328 = vmatprep.subr.mxu1 %v2033_v14  ;;  %2405 = vmatprep.subr.mxu0 %v2035_v30  ;;  %v1929_v23 = vld [vmem:[#allocation7 + $0x68] sm:$0xff]  ;;  %v1928_v14 = vld [vmem:[#allocation7 + $0x60] sm:$0xff]  ;;  %v1930_v30 = vld [vmem:[#allocation7 + $0x70] sm:$0xff] }
 0x78e   : > { %2329 = vmatpush1.msra.mxu1 %v2032_v29  ;;  %2406 = vmatpush1.msra.mxu0 %v2034_v2  ;;  %v1921_v42 = vld [vmem:[#allocation7 + $0x28] sm:$0xff]  ;;  %v1923_v29 = vld [vmem:[#allocation7 + $0x38] sm:$0xff]  ;;  %v1920_v2 = vld [vmem:[#allocation7 + $0x20] sm:$0xff] }
 0x78f   : > { %2242 = vmatprep.mubr.f32.mxu1 %v5950_v25  ;;  %2319 = vmatprep.mubr.f32.mxu0 %v5950_v25 }
 0x790   : > { %2330 = vmatprep.subr.mxu1 %v2025_v13  ;;  %2407 = vmatprep.subr.mxu0 %v2027_v21  ;;  %v1922_v13 = vld [vmem:[#allocation7 + $0x30] sm:$0xff]  ;;  %v2169_v21 = vld [vmem:[#allocation7 + $0x7e8] sm:$0xff] }
 0x791   : > { %2243 = vmatmul.mubr.f32.gmra.mxu1 %v5953_v24  ;;  %2320 = vmatmul.mubr.f32.gmra.mxu0 %v5953_v24 }
 0x792   : > { %2331 = vmatpush1.msra.mxu1 %v2024_v11  ;;  %2408 = vmatpush1.msra.mxu0 %v2026_v57  ;;  %v2171_v11 = vld [vmem:[#allocation7 + $0x7f8] sm:$0xff]  ;;  %v2168_v57 = vld [vmem:[#allocation7 + $0x7e0] sm:$0xff] }
 0x793   : > { %2332 = vmatprep.subr.mxu1 %v2017_v22  ;;  %2390 = vmatprep.mubr.f32.mxu1 %v1910_v7  ;;  %v2170_v22 = vld [vmem:[#allocation7 + $0x7f0] sm:$0xff] }
 0x794   : > { %2409 = vmatprep.subr.mxu0 %v2019_v47  ;;  %2467 = vmatprep.mubr.f32.mxu0 %v1910_v7  ;;  %v1936_v7 = vld [vmem:[#allocation7 + $0xa0] sm:$0xff]  ;;  %v2161_v47 = vld [vmem:[#allocation7 + $0x7a8] sm:$0xff] }
 0x795   : > { %2333 = vmatpush1.msra.mxu1 %v2016_v54  ;;  %2410 = vmatpush1.msra.mxu0 %v2018_v55  ;;  %v2163_v54 = vld [vmem:[#allocation7 + $0x7b8] sm:$0xff]  ;;  %v2160_v55 = vld [vmem:[#allocation7 + $0x7a0] sm:$0xff] }
 0x796   : > { %2334 = vmatprep.subr.mxu1 %v2009_v50  ;;  %2411 = vmatprep.subr.mxu0 %v2011_v46  ;;  %v2162_v50 = vld [vmem:[#allocation7 + $0x7b0] sm:$0xff]  ;;  %v2153_v46 = vld [vmem:[#allocation7 + $0x768] sm:$0xff] }
 0x797   : > { %2335 = vmatpush1.msra.mxu1 %v2008_v56  ;;  %2412 = vmatpush1.msra.mxu0 %v2010_v34  ;;  %v2155_v56 = vld [vmem:[#allocation7 + $0x778] sm:$0xff]  ;;  %v2152_v34 = vld [vmem:[#allocation7 + $0x760] sm:$0xff] }
 0x798   : > { %2336 = vmatprep.subr.mxu1 %v2001_v9  ;;  %2413 = vmatprep.subr.mxu0 %v2003_v4  ;;  %v2154_v9 = vld [vmem:[#allocation7 + $0x770] sm:$0xff]  ;;  %v2145_v4 = vld [vmem:[#allocation7 + $0x728] sm:$0xff] }
 0x799   : > { %2337 = vmatpush1.msra.mxu1 %v2000_v8  ;;  %2414 = vmatpush1.msra.mxu0 %v2002_v63  ;;  %v2147_v8 = vld [vmem:[#allocation7 + $0x738] sm:$0xff]  ;;  %v2144_v63 = vld [vmem:[#allocation7 + $0x720] sm:$0xff] }
 0x79a   : > { %2338 = vmatprep.subr.mxu1 %v1993_v58  ;;  %2415 = vmatprep.subr.mxu0 %v1995_v27  ;;  %v2146_v58 = vld [vmem:[#allocation7 + $0x730] sm:$0xff]  ;;  %v2137_v27 = vld [vmem:[#allocation7 + $0x6e8] sm:$0xff] }
 0x79b   : > { %2339 = vmatpush1.msra.mxu1 %v1992_v37  ;;  %2416 = vmatpush1.msra.mxu0 %v1994_v61  ;;  %v2139_v37 = vld [vmem:[#allocation7 + $0x6f8] sm:$0xff]  ;;  %v2136_v61 = vld [vmem:[#allocation7 + $0x6e0] sm:$0xff] }
 0x79c   : > { %2340 = vmatprep.subr.mxu1 %v1985_v62  ;;  %2417 = vmatprep.subr.mxu0 %v1987_v15  ;;  %v2138_v62 = vld [vmem:[#allocation7 + $0x6f0] sm:$0xff]  ;;  %v2129_v15 = vld [vmem:[#allocation7 + $0x6a8] sm:$0xff] }
 0x79d   : > { %2341 = vmatpush1.msra.mxu1 %v1984_v49  ;;  %2418 = vmatpush1.msra.mxu0 %v1986_v18  ;;  %v2131_v49 = vld [vmem:[#allocation7 + $0x6b8] sm:$0xff]  ;;  %v2128_v18 = vld [vmem:[#allocation7 + $0x6a0] sm:$0xff] }
 0x79e   : > { %2342 = vmatprep.subr.mxu1 %v1977_v38  ;;  %2419 = vmatprep.subr.mxu0 %v1979_v5  ;;  %v2130_v38 = vld [vmem:[#allocation7 + $0x6b0] sm:$0xff]  ;;  %v5972_v5 = vld [vmem:[%s5969_s13] sm:$0xff] }
 0x79f   : > { %2343 = vmatpush1.msra.mxu1 %v1976_v52  ;;  %2420 = vmatpush1.msra.mxu0 %v1978_v53  ;;  %7936 = vst [vmem:[#allocation23_spill] sm:$0xff] %v5972_v5  ;;  %v2121_v52 = vld [vmem:[#allocation7 + $0x668] sm:$0xff]  ;;  %v2123_v53 = vld [vmem:[#allocation7 + $0x678] sm:$0xff] }
 0x7a0   : > { %2344 = vmatprep.subr.mxu1 %v1969_v60  ;;  %2421 = vmatprep.subr.mxu0 %v1971_v32  ;;  %v5975_v60 = vld [vmem:[%s5969_s13 + $0x20] sm:$0xff]  ;;  %v2120_v32 = vld [vmem:[#allocation7 + $0x660] sm:$0xff] }
 0x7a1   : > { %2345 = vmatpush1.msra.mxu1 %v1968_v10  ;;  %2422 = vmatpush1.msra.mxu0 %v1970_v19  ;;  %7937 = vst [vmem:[#allocation24_spill] sm:$0xff] %v5975_v60  ;;  %v2122_v10 = vld [vmem:[#allocation7 + $0x670] sm:$0xff] }
 0x7a2   : > { %2346 = vmatprep.subr.mxu1 %v1961_v20  ;;  %2423 = vmatprep.subr.mxu0 %v1963_v48  ;;  %v5978_v19 = vld [vmem:[%s5969_s13 + $0x18] sm:$0xff]  ;;  %v5980_v20 = vpop.permute.xlu1 %2529  ;;  %v5982_v48 = vpop.permute.xlu0 %2524 }
 0x7a3   : > { %2347 = vmatpush1.msra.mxu1 %v1960_v44  ;;  %2424 = vmatpush1.msra.mxu0 %v1962_v12  ;;  %7938 = vst [vmem:[#allocation25_spill] sm:$0xff] %v5978_v19  ;;  %v2113_v44 = vld [vmem:[#allocation7 + $0x628] sm:$0xff]  ;;  %v2115_v12 = vld [vmem:[#allocation7 + $0x638] sm:$0xff] }
 0x7a4   : > { %2348 = vmatprep.subr.mxu1 %v1953_v59  ;;  %2425 = vmatprep.subr.mxu0 %v1955_v31  ;;  %v5985_v59 = vld [vmem:[%s5969_s13 + $0x38] sm:$0xff]  ;;  %v2112_v31 = vld [vmem:[#allocation7 + $0x620] sm:$0xff] }
 0x7a5   : > { %2349 = vmatpush1.msra.mxu1 %v1952_v17  ;;  %2426 = vmatpush1.msra.mxu0 %v1954_v51  ;;  %7939 = vst [vmem:[#allocation26_spill] sm:$0xff] %v5985_v59  ;;  %v2114_v17 = vld [vmem:[#allocation7 + $0x630] sm:$0xff]  ;;  %v7789_v51 = vunpack.c.h.bf16 %v5972_v5 }
 0x7a6   : > { %2350 = vmatprep.subr.mxu1 %v1945_v3  ;;  %2427 = vmatprep.subr.mxu0 %v1947_v35  ;;  %v7787_v3 = vunpack.c.h.bf16 %v5975_v60  ;;  %v2105_v35 = vld [vmem:[#allocation7 + $0x5e8] sm:$0xff] }
 0x7a7   : > { %2351 = vmatpush1.msra.mxu1 %v1944_v26  ;;  %2428 = vmatpush1.msra.mxu0 %v1946_v43  ;;  %v2107_v26 = vld [vmem:[#allocation7 + $0x5f8] sm:$0xff]  ;;  %v7775_v43 = vunpack.c.h.bf16 %v5978_v19 }
 0x7a8   : > { %2352 = vmatprep.subr.mxu1 %v1937_v45  ;;  %2429 = vmatprep.subr.mxu0 %v1939_v6  ;;  %v2104_v45 = vld [vmem:[#allocation7 + $0x5e0] sm:$0xff]  ;;  %v2106_v6 = vld [vmem:[#allocation7 + $0x5f0] sm:$0xff] }
 0x7a9   : > { %2353 = vmatpush1.msra.mxu1 %v1936_v7  ;;  %2430 = vmatpush1.msra.mxu0 %v1938_v28  ;;  %v7771_v7 = vunpack.c.h.bf16 %v5985_v59  ;;  %v5992_v28 = vld [vmem:[%s5969_s13 + $0x8] sm:$0xff] }
 0x7aa   : > { %2354 = vmatprep.subr.mxu1 %v1929_v23  ;;  %2431 = vmatprep.subr.mxu0 %v1931_v33  ;;  %7940 = vst [vmem:[#allocation27_spill] sm:$0xff] %v5992_v28  ;;  %v2097_v23 = vld [vmem:[#allocation7 + $0x5a8] sm:$0xff]  ;;  %v2099_v33 = vld [vmem:[#allocation7 + $0x5b8] sm:$0xff] }
 0x7ab   : > { %2355 = vmatpush1.msra.mxu1 %v1928_v14  ;;  %2432 = vmatpush1.msra.mxu0 %v1930_v30  ;;  %v7790_v14 = vunpack.c.l.bf16 %v5972_v5  ;;  %v5996_v30 = vld [vmem:[%s5969_s13 + $0x28] sm:$0xff] }
 0x7ac   : > { %2356 = vmatprep.subr.mxu1 %v1921_v42  ;;  %2433 = vmatprep.subr.mxu0 %v1923_v29  ;;  %7941 = vst [vmem:[#allocation28_spill] sm:$0xff] %v5996_v30  ;;  %v2096_v42 = vld [vmem:[#allocation7 + $0x5a0] sm:$0xff]  ;;  %v2098_v29 = vld [vmem:[#allocation7 + $0x5b0] sm:$0xff] }
 0x7ad   : > { %2357 = vmatpush1.msra.mxu1 %v1920_v2  ;;  %2434 = vmatpush1.msra.mxu0 %v1922_v13  ;;  %v7788_v2 = vunpack.c.l.bf16 %v5975_v60  ;;  %v2533_v13 = vmul.f32 %v5982_v48, %v7789_v51 }
 0x7ae   : > { %2358 = vmatprep.subr.mxu1 %v2169_v21  ;;  %2435 = vmatprep.subr.mxu0 %v2171_v11  ;;  %v2541_v21 = vmul.f32 %v5980_v20, %v7787_v3  ;;  %v6005_v11 = vpop.permute.xlu1 %2553 }
 0x7af   : > { %2359 = vmatpush2.msra.mxu1 %v2168_v57  ;;  %2436 = vmatpush2.msra.mxu0 %v2170_v22  ;;  %v6007_v57 = vpop.permute.xlu0 %2549  ;;  %v2089_v22 = vld [vmem:[#allocation7 + $0x568] sm:$0xff] }
 0x7b0   : > { %2360 = vmatprep.subr.mxu1 %v2161_v47  ;;  %2437 = vmatprep.subr.mxu0 %v2163_v54  ;;  %v2091_v47 = vld [vmem:[#allocation7 + $0x578] sm:$0xff]  ;;  %v7781_v54 = vunpack.c.l.bf16 %v5978_v19 }
 0x7b1   : > { %2361 = vmatpush2.msra.mxu1 %v2160_v55  ;;  %2438 = vmatpush2.msra.mxu0 %v2162_v50  ;;  %v7773_v55 = vunpack.c.l.bf16 %v5985_v59  ;;  %v2539_v50 = vmul.f32 %v5982_v48, %v7775_v43 }
 0x7b2   : > { %2362 = vmatprep.subr.mxu1 %v2153_v46  ;;  %2439 = vmatprep.subr.mxu0 %v2155_v56  ;;  %v2088_v46 = vld [vmem:[#allocation7 + $0x560] sm:$0xff]  ;;  %v2090_v56 = vld [vmem:[#allocation7 + $0x570] sm:$0xff] }
 0x7b3   : > { %2363 = vmatpush2.msra.mxu1 %v2152_v34  ;;  %2440 = vmatpush2.msra.mxu0 %v2154_v9  ;;  %v2547_v34 = vmul.f32 %v5980_v20, %v7771_v7  ;;  %v7785_v9 = vunpack.c.h.bf16 %v5992_v28 }
 0x7b4   : > { %2364 = vmatprep.subr.mxu1 %v2145_v4  ;;  %2441 = vmatprep.subr.mxu0 %v2147_v8  ;;  %v7783_v4 = vunpack.c.h.bf16 %v5996_v30  ;;  %v2081_v8 = vld [vmem:[#allocation7 + $0x528] sm:$0xff] }
 0x7b5   : > { %2365 = vmatpush2.msra.mxu1 %v2144_v63  ;;  %2442 = vmatpush2.msra.mxu0 %v2146_v58  ;;  %v2083_v63 = vld [vmem:[#allocation7 + $0x538] sm:$0xff]  ;;  %v2532_v58 = vmul.f32 %v5982_v48, %v7790_v14 }
 0x7b6   : > { %2366 = vmatprep.subr.mxu1 %v2137_v27  ;;  %2443 = vmatprep.subr.mxu0 %v2139_v37  ;;  %v2080_v27 = vld [vmem:[#allocation7 + $0x520] sm:$0xff]  ;;  %v2082_v37 = vld [vmem:[#allocation7 + $0x530] sm:$0xff] }
 0x7b7   : > { %2367 = vmatpush2.msra.mxu1 %v2136_v61  ;;  %2444 = vmatpush2.msra.mxu0 %v2138_v62  ;;  %v6023_v61 = vadd.f32 %v6007_v57, %v2533_v13  ;;  %v6026_v62 = vadd.f32 %v6005_v11, %v2541_v21 }
 0x7b8   : > { %2368 = vmatprep.subr.mxu1 %v2129_v15  ;;  %2445 = vmatprep.subr.mxu0 %v2131_v49  ;;  %v2540_v15 = vmul.f32 %v5980_v20, %v7788_v2  ;;  %v6032_v49 = vld [vmem:[%s5969_s13 + $0x10] sm:$0xff] }
 0x7b9   : > { %2369 = vmatpush2.msra.mxu1 %v2128_v18  ;;  %2446 = vmatpush2.msra.mxu0 %v2130_v38  ;;  %7942 = vst [vmem:[#allocation29_spill] sm:$0xff] %v6032_v49  ;;  %v2073_v18 = vld [vmem:[#allocation7 + $0x4e8] sm:$0xff]  ;;  %v2075_v38 = vld [vmem:[#allocation7 + $0x4f8] sm:$0xff]  ;;  %v7776_v21 = vunpack.c.h.bf16 %v6032_v49 }
 0x7ba   : > { %2370 = vmatprep.subr.mxu1 %v2121_v52  ;;  %2447 = vmatprep.subr.mxu0 %v2123_v53  ;;  %v6035_v52 = vadd.f32 %v6007_v57, %v2539_v50  ;;  %v2538_v53 = vmul.f32 %v5982_v48, %v7781_v54  ;;  %v2564_v13 = vadd.f32 %v6005_v11, %v2540_v15  ;;  %v2059_v50 = vld [vmem:[#allocation7 + $0x478] sm:$0xff] }
 0x7bb   : > { %2371 = vmatpush2.msra.mxu1 %v2120_v32  ;;  %2448 = vmatpush2.msra.mxu0 %v2122_v10  ;;  %v2546_v32 = vmul.f32 %v5980_v20, %v7773_v55  ;;  %v6044_v10 = vld [vmem:[%s5969_s13 + $0x30] sm:$0xff]  ;;  %s7777_s13 = smov 32  }
 0x7bc   : > { %2372 = vmatprep.subr.mxu1 %v2113_v44  ;;  %2449 = vmatprep.subr.mxu0 %v2115_v12  ;;  %7943 = vst [vmem:[#allocation30_spill] sm:$0xff] %v6044_v10  ;;  %v2072_v44 = vld [vmem:[#allocation7 + $0x4e0] sm:$0xff]  ;;  %v2074_v12 = vld [vmem:[#allocation7 + $0x4f0] sm:$0xff] }
 0x7bd   : > { %2373 = vmatpush2.msra.mxu1 %v2112_v31  ;;  %2450 = vmatpush2.msra.mxu0 %v2114_v17  ;;  %v2571_v31 = vadd.f32 %v6005_v11, %v2547_v34  ;;  %v2535_v17 = vmul.f32 %v5982_v48, %v7785_v9  ;;  %v2562_v34 = vadd.f32 %v6007_v57, %v2538_v53 }
 0x7be   : > { %2374 = vmatprep.subr.mxu1 %v2105_v35  ;;  %2451 = vmatprep.subr.mxu0 %v2107_v26  ;;  %v2543_v35 = vmul.f32 %v5980_v20, %v7783_v4  ;;  %v2065_v26 = vld [vmem:[#allocation7 + $0x4a8] sm:$0xff] }
 0x7bf   : > { %2375 = vmatpush2.msra.mxu1 %v2104_v45  ;;  %2452 = vmatpush2.msra.mxu0 %v2106_v6  ;;  %v2067_v45 = vld [vmem:[#allocation7 + $0x4b8] sm:$0xff]  ;;  %v7786_v6 = vunpack.c.l.bf16 %v5992_v28  ;;  %v2559_v15 = vadd.f32 %v6007_v57, %v2535_v17  ;;  %v2580_v17 = vmax.f32 %v2564_v13, 0.0 }
 0x7c0   : > { %2376 = vmatprep.subr.mxu1 %v2097_v23  ;;  %2453 = vmatprep.subr.mxu0 %v2099_v33  ;;  %v7784_v23 = vunpack.c.l.bf16 %v5996_v30  ;;  %v2064_v33 = vld [vmem:[#allocation7 + $0x4a0] sm:$0xff] }
 0x7c1   : > { %2377 = vmatpush2.msra.mxu1 %v2096_v42  ;;  %2454 = vmatpush2.msra.mxu0 %v2098_v29  ;;  %v2066_v42 = vld [vmem:[#allocation7 + $0x4b0] sm:$0xff]  ;;  %v2556_v29 = vadd.f32 %v6007_v57, %v2532_v58 }
 0x7c2   : > { %2378 = vmatprep.subr.mxu1 %v2089_v22  ;;  %2455 = vmatprep.subr.mxu0 %v2091_v47  ;;  %v7772_v22 = vunpack.c.h.bf16 %v6044_v10  ;;  %v2057_v47 = vld [vmem:[#allocation7 + $0x468] sm:$0xff]  ;;  %v2058_v58 = vld [vmem:[#allocation7 + $0x470] sm:$0xff]  ;;  %v2542_v53 = vmul.f32 %v5980_v20, %v7784_v23 }
 0x7c3   : > { %2379 = vmatpush2.msra.mxu1 %v2088_v46  ;;  %2456 = vmatpush2.msra.mxu0 %v2090_v56  ;;  %v2573_v46 = vmax.f32 %v6023_v61, 0.0  ;;  %v2581_v56 = vmax.f32 %v6026_v62, 0.0  ;;  %v2049_v61 = vld [vmem:[#allocation7 + $0x428] sm:$0xff]  ;;  %v2534_v62 = vmul.f32 %v5982_v48, %v7786_v6 }
 0x7c4   : > { %2380 = vmatprep.subr.mxu1 %v2081_v8  ;;  %2457 = vmatprep.subr.mxu0 %v2083_v63  ;;  %v2570_v8 = vadd.f32 %v6005_v11, %v2546_v32  ;;  %v2056_v63 = vld [vmem:[#allocation7 + $0x460] sm:$0xff]  ;;  %v2050_v32 = vld [vmem:[#allocation7 + $0x430] sm:$0xff]  ;;  %v2566_v7 = vadd.f32 %v6005_v11, %v2542_v53 }
 0x7c5   : > { %2381 = vmatpush2.msra.mxu1 %v2080_v27  ;;  %2458 = vmatpush2.msra.mxu0 %v2082_v37  ;;  %v2579_v27 = vmax.f32 %v6035_v52, 0.0  ;;  %v2587_v37 = vmax.f32 %v2571_v31, 0.0  ;;  %v2048_v52 = vld [vmem:[#allocation7 + $0x420] sm:$0xff]  ;;  %v2572_v31 = vmax.f32 %v2556_v29, 0.0 }
 0x7c6   : > { %2382 = vmatprep.subr.mxu1 %v2073_v18  ;;  %2459 = vmatprep.subr.mxu0 %v2075_v38  ;;  %v2567_v18 = vadd.f32 %v6005_v11, %v2543_v35  ;;  %v2051_v38 = vld [vmem:[#allocation7 + $0x438] sm:$0xff]  ;;  %v2578_v35 = vmax.f32 %v2562_v34, 0.0 }
 0x7c7   : > { %2383 = vmatpush2.msra.mxu1 %v2072_v44  ;;  %2460 = vmatpush2.msra.mxu0 %v2074_v12  ;;  %v2537_v44 = vmul.f32 %v5982_v48, %v7776_v21  ;;  %v2545_v12 = vmul.f32 %v5980_v20, %v7772_v22  ;;  %v7782_v22 = vunpack.c.l.bf16 %v6032_v49 }
 0x7c8   : > { %2384 = vmatprep.subr.mxu1 %v2065_v26  ;;  %2461 = vmatprep.subr.mxu0 %v2067_v45  ;;  %v2586_v26 = vmax.f32 %v2570_v8, 0.0  ;;  %v2589_v45 = vpack.c.bf16 %v2581_v56, %v2573_v46  ;;  %v2588_v46 = vpack.c.bf16 %v2580_v17, %v2572_v31 }
 0x7c9   : > { %2385 = vmatpush2.msra.mxu1 %v2064_v33  ;;  %2462 = vmatpush2.msra.mxu0 %v2066_v42  ;;  %v2595_v33 = vpack.c.bf16 %v2587_v37, %v2579_v27  ;;  %v2575_v42 = vmax.f32 %v2559_v15, 0.0  ;;  %v2561_v29 = vadd.f32 %v6007_v57, %v2537_v44  ;;  %v2569_v13 = vadd.f32 %v6005_v11, %v2545_v12 }
 0x7ca   : > { %2386 = vmatprep.subr.mxu1 %v2057_v47  ;;  %2463 = vmatprep.subr.mxu0 %v2059_v50  ;;  %v2583_v47 = vmax.f32 %v2567_v18, 0.0  ;;  %v2558_v50 = vadd.f32 %v6007_v57, %v2534_v62  ;;  %v2594_v56 = vpack.c.bf16 %v2586_v26, %v2578_v35  ;;  %v6122_v35 = vpop.permute.xlu1 %2782 }
 0x7cb   : > { %2387 = vmatpush2.msra.mxu1 %v2056_v63  ;;  %2464 = vmatpush2.msra.mxu0 %v2058_v58  ;;  %v7774_v63 = vunpack.c.l.bf16 %v6044_v10  ;;  %v2582_v58 = vmax.f32 %v2566_v7, 0.0  ;;  %v2577_v37 = vmax.f32 %v2561_v29, 0.0  ;;  %v2585_v15 = vmax.f32 %v2569_v13, 0.0 }
 0x7cc   : > { %2388 = vmatprep.subr.mxu1 %v2049_v61  ;;  %2465 = vmatprep.subr.mxu0 %v2051_v38  ;;  %v2591_v34 = vpack.c.bf16 %v2583_v47, %v2575_v42  ;;  %v2574_v8 = vmax.f32 %v2558_v50, 0.0 }
 0x7cd   : > { %2389 = vmatpush2.msra.mxu1 %v2048_v52  ;;  %2466 = vmatpush2.msra.mxu0 %v2050_v32  ;;  %v2544_v27 = vmul.f32 %v5980_v20, %v7774_v63  ;;  %v2593_v18 = vpack.c.bf16 %v2585_v15, %v2577_v37 }
 0x7ce   : > { %2391 = vmatmul.mubr.f32.vlgmr.msra.gmra.mxu1 %v5945_v16  ;;  %2468 = vmatmul.mubr.f32.vlgmr.msra.gmra.mxu0 %v5945_v16  ;;  %v2536_v16 = vmul.f32 %v5982_v48, %v7782_v22  ;;  %v2590_v48 = vpack.c.bf16 %v2582_v58, %v2574_v8  ;;  %v6129_v29 = vpop.permute.xlu1 %2807 }
 0x7cf   : > { %2620 = vmatprep.subr.bf16.mxu1 %v2589_v45  ;;  %2749 = vmatprep.subr.bf16.mxu0 %v2595_v33  ;;  %v2568_v20 = vadd.f32 %v6005_v11, %v2544_v27 }
 0x7d0   : > { %2396 = vmatprep.mubr.f32.mxu1 %v5950_v25  ;;  %2473 = vmatprep.mubr.f32.mxu0 %v5950_v25  ;;  %v4643_v25 = vld [vmem:[%s7738_s19] sm:$0xff]   ;;  %v2560_v7 = vadd.f32 %v6007_v57, %v2536_v16 }
 0x7d1   : > { %2621 = vmatpush1.bf16.msra.mxu1 %v2588_v46  ;;  %2750 = vmatpush1.bf16.msra.mxu0 %v2594_v56  ;;  %v2584_v61 = vmax.f32 %v2568_v20, 0.0 }
 0x7d2   : > { %2663 = vmatprep.subr.bf16.mxu1 %v2591_v34  ;;  %2397 = vmatmul.mubr.f32.gmra.mxu1 %v5953_v24  ;;  %v6133_v34 = vpop.permute.xlu0 %2787 }
 0x7d3   : > { %2474 = vmatmul.mubr.f32.gmra.mxu0 %v5953_v24  ;;  %2638 = vmatprep.mubr.bf16.mxu1 %v7791_v1  ;;  %v2576_v24 = vmax.f32 %v2560_v7, 0.0 }
 0x7d4   : > { %2767 = vmatprep.mubr.bf16.mxu0 %v7791_v1 }
 0x7d5   : > { %v2592_v38 = vpack.c.bf16 %v2584_v61, %v2576_v24 }
 0x7d6   : > { %4446 = vmatmul.mubr.msk.bf16.vlgmr.msra.gmra.mxu1 %vm1300_vm1, %v4643_v25 }
 0x7d7   : > { %2664 = vmatpush1.bf16.msra.mxu1 %v2590_v48  ;;  %4449 = vmatmul.mubr.msk.bf16.vlgmr.msra.gmra.mxu0 %vm1300_vm1, %v4643_v25 }
 0x7d8   : > { %2706 = vmatprep.subr.bf16.mxu1 %v2593_v18  ;;  %2681 = vmatprep.mubr.bf16.mxu1 %v7791_v1 }
 0x7de   : > { %4447 = vmatmul.mubr.msk.bf16.vlgmr.msra.gmra.mxu1 %vm1300_vm1, %v4643_v25 }
 0x7df   : > { %2707 = vmatpush1.bf16.msra.mxu1 %v2592_v38  ;;  %2724 = vmatprep.mubr.bf16.mxu1 %v7791_v1 }
 0x7e6   : > { %4448 = vmatmul.mubr.msk.bf16.vlgmr.msra.gmra.mxu1 %vm1300_vm1, %v4643_v25  ;;  %v6139_v25 = vpop.permute.xlu1 %2811 }
 0x84b   : > { %v2238_v11 = vpop.f32.mrf.mxu1  ;;  %v2315_v57 = vpop.f32.mrf.mxu0 }
 0x84c   : > { %2480 = vst [vmem:[%s6110_s1] sm:$0xff] %v2238_v11  ;;  %2482 = vst [vmem:[%s6110_s1 + $0x10] sm:$0xff] %v2315_v57 }
 0x84d   : > { %v2240_v62 = vpop.f32.mrf.mxu1  ;;  %v2317_v53 = vpop.f32.mrf.mxu0 }
 0x84e   : > { %2481 = vst [vmem:[%s6110_s1 + $0x8] sm:$0xff] %v2240_v62  ;;  %2483 = vst [vmem:[%s6110_s1 + $0x18] sm:$0xff] %v2317_v53 }
 0x851   : > { %v2244_v52 = vpop.f32.mrf.mxu1  ;;  %v2321_v32 = vpop.f32.mrf.mxu0 }
 0x852   : > { %2488 = vst [vmem:[%s6110_s1 + $0x40] sm:$0xff] %v2244_v52  ;;  %2490 = vst [vmem:[%s6110_s1 + $0x50] sm:$0xff] %v2321_v32 }
 0x853   : > { %v2246_v44 = vpop.f32.mrf.mxu1  ;;  %v2323_v12 = vpop.f32.mrf.mxu0 }
 0x854   : > { %2489 = vst [vmem:[%s6110_s1 + $0x48] sm:$0xff] %v2246_v44  ;;  %2491 = vst [vmem:[%s6110_s1 + $0x58] sm:$0xff] %v2323_v12 }
 0x88e   : > { %v2392_v31 = vpop.f32.mrf.mxu1  ;;  %v2469_v17 = vpop.f32.mrf.mxu0 }
 0x88f   : > { %2484 = vst [vmem:[%s6110_s1 + $0x20] sm:$0xff] %v2392_v31  ;;  %2486 = vst [vmem:[%s6110_s1 + $0x30] sm:$0xff] %v2469_v17 }
 0x890   : > { %v2394_v26 = vpop.f32.mrf.mxu1  ;;  %v2471_v45 = vpop.f32.mrf.mxu0 }
 0x891   : > { %2485 = vst [vmem:[%s6110_s1 + $0x28] sm:$0xff] %v2394_v26  ;;  %2487 = vst [vmem:[%s6110_s1 + $0x38] sm:$0xff] %v2471_v45 }
 0x892   : > { %v2398_v33 = vpop.f32.mrf.mxu1 }
 0x893   : > { %2492 = vst [vmem:[%s6110_s1 + $0x60] sm:$0xff] %v2398_v33  ;;  %v2475_v42 = vpop.f32.mrf.mxu0 }
 0x894   : > { %2494 = vst [vmem:[%s6110_s1 + $0x70] sm:$0xff] %v2475_v42  ;;  %v2400_v47 = vpop.f32.mrf.mxu1 }
 0x895   : > { %2493 = vst [vmem:[%s6110_s1 + $0x68] sm:$0xff] %v2400_v47  ;;  %v2477_v50 = vpop.f32.mrf.mxu0 }
 0x896   : > { %2495 = vst [vmem:[%s6110_s1 + $0x78] sm:$0xff] %v2477_v50  ;;  %v2640_v13 = vpop.f32.mrf.mxu1 }
 0x897   : > { %v2790_v46 = vmul.f32 %v6122_v35, %v2640_v13  ;;  %v2769_v7 = vpop.f32.mrf.mxu0 }
 0x898   : > { %v2642_v56 = vpop.f32.mrf.mxu1  ;;  %v2796_v18 = vmul.f32 %v6122_v35, %v2769_v7 }
 0x899   : > { %v2814_v8 = vadd.f32 %v6129_v29, %v2790_v46  ;;  %v2771_v20 = vpop.f32.mrf.mxu0  ;;  %v2791_v53 = vmul.f32 %v6122_v35, %v2642_v56 }
 0x89a   : > { %v2644_v58 = vpop.f32.mrf.mxu1  ;;  %v2820_v61 = vadd.f32 %v6129_v29, %v2796_v18  ;;  %v2797_v26 = vmul.f32 %v6122_v35, %v2771_v20 }
 0x89b   : > { %v6136_v16 = vmax.f32 %v2814_v8, 0.0  ;;  %v2798_v27 = vmul.f32 %v6133_v34, %v2644_v58  ;;  %v2773_v24 = vpop.f32.mrf.mxu0  ;;  %v2815_v32 = vadd.f32 %v6129_v29, %v2791_v53 }
 0x89c   : > { %v2804_v38 = vmul.f32 %v6133_v34, %v2773_v24  ;;  %v6179_v11 = vmax.f32 %v2820_v61, 0.0  ;;  %v2646_v52 = vpop.f32.mrf.mxu1  ;;  %v2821_v33 = vadd.f32 %v6129_v29, %v2797_v26 }
 0x89d   : > { %7944 = vst [vmem:[#allocation31_spill] sm:$0xff] %v6136_v16  ;;  %v2822_v37 = vadd.f32 %v6139_v25, %v2798_v27  ;;  %3493 = vrot.lane.b32.xlu0 %v6136_v16, %s4937_s10  ;;  %v2799_v44 = vmul.f32 %v6133_v34, %v2646_v52  ;;  %v6215_v12 = vmax.f32 %v2815_v32, 0.0  ;;  %v2775_v45 = vpop.f32.mrf.mxu0 }
 0x89e   : > { %7946 = vst [vmem:[#allocation33_spill] sm:$0xff] %v6179_v11  ;;  %v2828_v57 = vadd.f32 %v6139_v25, %v2804_v38  ;;  %v2805_v42 = vmul.f32 %v6133_v34, %v2775_v45  ;;  %v6239_v47 = vmax.f32 %v2821_v33, 0.0  ;;  %v2683_v46 = vpop.f32.mrf.mxu1 }
 0x89f   : > { %v6144_v15 = vmax.f32 %v2822_v37, 0.0  ;;  %v2823_v31 = vadd.f32 %v6139_v25, %v2799_v44  ;;  %v2792_v8 = vmul.f32 %v6122_v35, %v2683_v46 }
 0x8a0   : > { %v6186_v62 = vmax.f32 %v2828_v57, 0.0  ;;  %7948 = vst [vmem:[#allocation35_spill] sm:$0xff] %v6239_v47  ;;  %v2829_v50 = vadd.f32 %v6139_v25, %v2805_v42  ;;  %v2685_v56 = vpop.f32.mrf.mxu1 }
 0x8a1   : > { %7945 = vst [vmem:[#allocation32_spill] sm:$0xff] %v6144_v15  ;;  %3385 = vrot.lane.b32.xlu0 %v6136_v16, %s4938_s30  ;;  %3495 = vrot.lane.b32.xlu1 %v6144_v15, %s4937_s10  ;;  %v6222_v17 = vmax.f32 %v2823_v31, 0.0  ;;  %v2816_v27 = vadd.f32 %v6129_v29, %v2792_v8 }
 0x8a2   : > { %7947 = vst [vmem:[#allocation34_spill] sm:$0xff] %v6186_v62  ;;  %v6246_v13 = vmax.f32 %v2829_v50, 0.0  ;;  %v2687_v58 = vpop.f32.mrf.mxu1  ;;  %v2793_v50 = vmul.f32 %v6122_v35, %v2685_v56 }
 0x8a3   : > { %v2800_v37 = vmul.f32 %v6133_v34, %v2687_v58  ;;  %v6293_v20 = vmax.f32 %v2816_v27, 0.0 }
 0x8a4   : > { %7949 = vst [vmem:[#allocation36_spill] sm:$0xff] %v6246_v13  ;;  %v2689_v58 = vpop.f32.mrf.mxu1  ;;  %v2817_v27 = vadd.f32 %v6129_v29, %v2793_v50 }
 0x8a5   : > { %3278 = vrot.lane.b32.xlu0 %v6136_v16, %s4931_s3  ;;  %3387 = vrot.lane.b32.xlu1 %v6144_v15, %s4938_s30  ;;  %7950 = vst [vmem:[#allocation37_spill] sm:$0xff] %v6293_v20  ;;  %v2824_v18 = vadd.f32 %v6139_v25, %v2800_v37  ;;  %v2801_v37 = vmul.f32 %v6133_v34, %v2689_v58 }
 0x8a6   : > { %v6365_v56 = vmax.f32 %v2817_v27, 0.0  ;;  %v2726_v6 = vpop.f32.mrf.mxu1 }
 0x8a7   : > { %v6304_v38 = vmax.f32 %v2824_v18, 0.0  ;;  %v2825_v63 = vadd.f32 %v6139_v25, %v2801_v37  ;;  %v2794_v14 = vmul.f32 %v6122_v35, %v2726_v6 }
 0x8a8   : > { %7959 = vst [vmem:[#allocation46_spill] sm:$0xff] %v6365_v56  ;;  %v6423_v51 = vpop.f32.mrf.mxu1 }
 0x8a9   : > { %3171 = vrot.lane.b32.xlu0 %v6136_v16, %s4932_s25  ;;  %3280 = vrot.lane.b32.xlu1 %v6144_v15, %s4931_s3  ;;  %7951 = vst [vmem:[#allocation38_spill] sm:$0xff] %v6304_v38  ;;  %v6385_v58 = vmax.f32 %v2825_v63, 0.0  ;;  %v2818_v59 = vadd.f32 %v6129_v29, %v2794_v14 }
 0x8aa   : > { %v2730_v48 = vpop.f32.mrf.mxu1 }
 0x8ab   : > { %7964 = vst [vmem:[#allocation50_spill] sm:$0xff] %v6385_v58  ;;  %v2802_v10 = vmul.f32 %v6133_v34, %v2730_v48  ;;  %v6448_v6 = vmax.f32 %v2818_v59, 0.0  ;;  %v6470_v59 = vsub.s32 7, %v5431_v36 }
 0x8ad   : > { %3063 = vrot.lane.b32.xlu0 %v6136_v16, %s7779_s11  ;;  %3173 = vrot.lane.b32.xlu1 %v6144_v15, %s4932_s25  ;;  %7978 = vst [vmem:[#allocation62_spill] sm:$0xff] %v6448_v6  ;;  %v2826_v30 = vadd.f32 %v6139_v25, %v2802_v10  ;;  %7980 = vst [vmem:[#allocation64_spill] sm:$0xff] %v6470_v59 }
 0x8af   : > { %v6459_v14 = vmax.f32 %v2826_v30, 0.0 }
 0x8b1   : > { %2955 = vrot.lane.b32.xlu0 %v6136_v16, %s7777_s13  ;;  %3065 = vrot.lane.b32.xlu1 %v6144_v15, %s7779_s11  ;;  %7979 = vst [vmem:[#allocation63_spill] sm:$0xff] %v6459_v14 }
 0x8b5   : > { %2848 = vrot.lane.b32.xlu0 %v6136_v16, %s4941_s2  ;;  %2957 = vrot.lane.b32.xlu1 %v6144_v15, %s7777_s13 }
 0x8b9   : > { %3601 = vrot.lane.b32.xlu0 %v6136_v16, %s4942_s7  ;;  %2850 = vrot.lane.b32.xlu1 %v6144_v15, %s4941_s2  ;;  %v6510_v16 = vld [vmem:[#allocation5 + $0x10] sm:$0xff] }
 0x8bd   : > { %3517 = vrot.lane.b32.xlu0 %v6179_v11, %s4937_s10  ;;  %3603 = vrot.lane.b32.xlu1 %v6144_v15, %s4942_s7  ;;  %v6545_v15 = vld [vmem:[#allocation5 + $0x8] sm:$0xff] }
 0x8c1   : > { %3409 = vrot.lane.b32.xlu0 %v6179_v11, %s4938_s30  ;;  %3519 = vrot.lane.b32.xlu1 %v6186_v62, %s4937_s10 }
 0x8c5   : > { %3302 = vrot.lane.b32.xlu0 %v6179_v11, %s4931_s3  ;;  %3411 = vrot.lane.b32.xlu1 %v6186_v62, %s4938_s30 }
 0x8c9   : > { %3195 = vrot.lane.b32.xlu0 %v6179_v11, %s4932_s25  ;;  %3304 = vrot.lane.b32.xlu1 %v6186_v62, %s4931_s3 }
 0x8cd   : > { %3087 = vrot.lane.b32.xlu0 %v6179_v11, %s7779_s11  ;;  %3197 = vrot.lane.b32.xlu1 %v6186_v62, %s4932_s25 }
 0x8d1   : > { %2979 = vrot.lane.b32.xlu0 %v6179_v11, %s7777_s13  ;;  %3089 = vrot.lane.b32.xlu1 %v6186_v62, %s7779_s11 }
 0x8d5   : > { %2872 = vrot.lane.b32.xlu0 %v6179_v11, %s4941_s2  ;;  %2981 = vrot.lane.b32.xlu1 %v6186_v62, %s7777_s13 }
 0x8d9   : > { %3497 = vrot.lane.b32.xlu0 %v6215_v12, %s4937_s10  ;;  %2874 = vrot.lane.b32.xlu1 %v6186_v62, %s4941_s2 }
 0x8dd   : > { %3389 = vrot.lane.b32.xlu0 %v6215_v12, %s4938_s30  ;;  %3499 = vrot.lane.b32.xlu1 %v6222_v17, %s4937_s10 }
 0x8e1   : > { %3282 = vrot.lane.b32.xlu0 %v6215_v12, %s4931_s3  ;;  %3391 = vrot.lane.b32.xlu1 %v6222_v17, %s4938_s30 }
 0x8e5   : > { %3175 = vrot.lane.b32.xlu0 %v6215_v12, %s4932_s25  ;;  %3284 = vrot.lane.b32.xlu1 %v6222_v17, %s4931_s3 }
 0x8e9   : > { %3199 = vrot.lane.b32.xlu0 %v6239_v47, %s4932_s25  ;;  %3177 = vrot.lane.b32.xlu1 %v6222_v17, %s4932_s25 }
 0x8ed   : > { %3067 = vrot.lane.b32.xlu0 %v6215_v12, %s7779_s11  ;;  %3201 = vrot.lane.b32.xlu1 %v6246_v13, %s4932_s25 }
 0x8f1   : > { %3091 = vrot.lane.b32.xlu0 %v6239_v47, %s7779_s11  ;;  %3069 = vrot.lane.b32.xlu1 %v6222_v17, %s7779_s11 }
 0x8f5   : > { %2959 = vrot.lane.b32.xlu0 %v6215_v12, %s7777_s13  ;;  %3093 = vrot.lane.b32.xlu1 %v6246_v13, %s7779_s11 }
 0x8f9   : > { %2983 = vrot.lane.b32.xlu0 %v6239_v47, %s7777_s13  ;;  %2961 = vrot.lane.b32.xlu1 %v6222_v17, %s7777_s13 }
 0x8fd   : > { %2852 = vrot.lane.b32.xlu0 %v6215_v12, %s4941_s2  ;;  %2985 = vrot.lane.b32.xlu1 %v6246_v13, %s7777_s13 }
 0x901   : > { %2876 = vrot.lane.b32.xlu0 %v6239_v47, %s4941_s2  ;;  %2854 = vrot.lane.b32.xlu1 %v6222_v17, %s4941_s2 }
 0x905   : > { %3605 = vrot.lane.b32.xlu0 %v6215_v12, %s4942_s7  ;;  %2878 = vrot.lane.b32.xlu1 %v6246_v13, %s4941_s2 }
 0x909   : > { %3521 = vrot.lane.b32.xlu0 %v6239_v47, %s4937_s10  ;;  %3607 = vrot.lane.b32.xlu1 %v6222_v17, %s4942_s7 }
 0x90d   : > { %3413 = vrot.lane.b32.xlu0 %v6239_v47, %s4938_s30  ;;  %3523 = vrot.lane.b32.xlu1 %v6246_v13, %s4937_s10 }
 0x90f   : > { %v6287_v7 = vpop.permute.xlu0 %3493 }
 0x911   : > { %3306 = vrot.lane.b32.xlu0 %v6239_v47, %s4931_s3  ;;  %3415 = vrot.lane.b32.xlu1 %v6246_v13, %s4938_s30 }
 0x913   : > { %v6296_v24 = vpop.permute.xlu0 %3385  ;;  %v6298_v61 = vpop.permute.xlu1 %3495 }
 0x915   : > { %3308 = vrot.lane.b32.xlu1 %v6246_v13, %s4931_s3  ;;  %3501 = vrot.lane.b32.xlu0 %v6293_v20, %s4937_s10 }
 0x917   : > { %v6306_v57 = vpop.permute.xlu0 %3278  ;;  %v6308_v53 = vpop.permute.xlu1 %3387 }
 0x919   : > { %3393 = vrot.lane.b32.xlu0 %v6293_v20, %s4938_s30  ;;  %3503 = vrot.lane.b32.xlu1 %v6304_v38, %s4937_s10 }
 0x91b   : > { %v6314_v52 = vpop.permute.xlu0 %3171  ;;  %v6316_v32 = vpop.permute.xlu1 %3280 }
 0x91d   : > { %3286 = vrot.lane.b32.xlu0 %v6293_v20, %s4931_s3  ;;  %3395 = vrot.lane.b32.xlu1 %v6304_v38, %s4938_s30 }
 0x91f   : > { %v6322_v44 = vpop.permute.xlu0 %3063  ;;  %v6324_v31 = vpop.permute.xlu1 %3173 }
 0x921   : > { %3179 = vrot.lane.b32.xlu0 %v6293_v20, %s4932_s25  ;;  %3288 = vrot.lane.b32.xlu1 %v6304_v38, %s4931_s3 }
 0x923   : > { %v6330_v26 = vpop.permute.xlu0 %2955  ;;  %v6332_v45 = vpop.permute.xlu1 %3065 }
 0x924   : > { %7952 = vst [vmem:[#allocation39_spill] sm:$0xff] %v6330_v26 }
 0x925   : > { %3071 = vrot.lane.b32.xlu0 %v6293_v20, %s7779_s11  ;;  %3181 = vrot.lane.b32.xlu1 %v6304_v38, %s4932_s25 }
 0x927   : > { %v6338_v33 = vpop.permute.xlu0 %2848  ;;  %v6340_v42 = vpop.permute.xlu1 %2957 }
 0x928   : > { %7953 = vst [vmem:[#allocation40_spill] sm:$0xff] %v6338_v33  ;;  %7954 = vst [vmem:[#allocation41_spill] sm:$0xff] %v6340_v42 }
 0x929   : > { %2963 = vrot.lane.b32.xlu0 %v6293_v20, %s7777_s13  ;;  %3073 = vrot.lane.b32.xlu1 %v6304_v38, %s7779_s11  ;;  %s7962_s11 = sld [smem:[#allocation107_spill]] }
 0x92b   : > { %v6347_v46 = vpop.permute.xlu0 %3601  ;;  %v6349_v8 = vpop.permute.xlu1 %2850 }
 0x92c   : > { %7955 = vst [vmem:[#allocation42_spill] sm:$0xff] %v6347_v46  ;;  %7956 = vst [vmem:[#allocation43_spill] sm:$0xff] %v6349_v8 }
 0x92d   : > { %2856 = vrot.lane.b32.xlu0 %v6293_v20, %s4941_s2  ;;  %2965 = vrot.lane.b32.xlu1 %v6304_v38, %s7777_s13  ;;  %s7973_s13 = smov 31  }
 0x92f   : > { %v6357_v18 = vpop.permute.xlu0 %3517  ;;  %v6359_v55 = vpop.permute.xlu1 %3603  ;;  %v6375_v50 = vld [vmem:[%s7962_s11 + $0x4] ss:$8 sps:$4 sm:$0xff]  }
 0x930   : > { %7957 = vst [vmem:[#allocation44_spill] sm:$0xff] %v6357_v18  ;;  %7958 = vst [vmem:[#allocation45_spill] sm:$0xff] %v6359_v55  ;;  %4452 = vmatprep.mubr.msk.bf16.mxu1 %vm1300_vm1, %v6375_v50  ;;  %4453 = vmatprep.mubr.msk.bf16.mxu0 %vm1300_vm1, %v6375_v50 }
 0x931   : > { %3609 = vrot.lane.b32.xlu0 %v6293_v20, %s4942_s7  ;;  %2858 = vrot.lane.b32.xlu1 %v6304_v38, %s4941_s2  ;;  %7963 = vst [vmem:[#allocation49_spill] sm:$0xff] %v6375_v50  ;;  %v6476_v20 = vld [vmem:[#allocation5 + $0x18] sm:$0xff] }
 0x932   : > { %v3253_v30 = vrot.slane %v6476_v20, %v6470_v59 }
 0x933   : > { %v6368_v43 = vpop.permute.xlu0 %3409  ;;  %v6370_v21 = vpop.permute.xlu1 %3519 }
 0x934   : > { %7960 = vst [vmem:[#allocation47_spill] sm:$0xff] %v6368_v43  ;;  %7961 = vst [vmem:[#allocation48_spill] sm:$0xff] %v6370_v21 }
 0x935   : > { %3505 = vrot.lane.b32.xlu0 %v6365_v56, %s4937_s10  ;;  %3611 = vrot.lane.b32.xlu1 %v6304_v38, %s4942_s7 }
 0x937   : > { %v6387_v27 = vpop.permute.xlu0 %3302  ;;  %v6389_v37 = vpop.permute.xlu1 %3411 }
 0x938   : > { %7965 = vst [vmem:[#allocation51_spill] sm:$0xff] %v6387_v27  ;;  %7966 = vst [vmem:[#allocation52_spill] sm:$0xff] %v6389_v37 }
 0x939   : > { %3397 = vrot.lane.b32.xlu0 %v6365_v56, %s4938_s30  ;;  %3507 = vrot.lane.b32.xlu1 %v6385_v58, %s4937_s10 }
 0x93b   : > { %v6395_v54 = vpop.permute.xlu0 %3195  ;;  %v6397_v22 = vpop.permute.xlu1 %3304 }
 0x93c   : > { %7967 = vst [vmem:[#allocation53_spill] sm:$0xff] %v6395_v54  ;;  %7968 = vst [vmem:[#allocation54_spill] sm:$0xff] %v6397_v22 }
 0x93d   : > { %3290 = vrot.lane.b32.xlu0 %v6365_v56, %s4931_s3  ;;  %3399 = vrot.lane.b32.xlu1 %v6385_v58, %s4938_s30 }
 0x93f   : > { %v6403_v63 = vpop.permute.xlu0 %3087  ;;  %v6405_v4 = vpop.permute.xlu1 %3197 }
 0x940   : > { %7969 = vst [vmem:[#allocation55_spill] sm:$0xff] %v6403_v63  ;;  %7970 = vst [vmem:[#allocation56_spill] sm:$0xff] %v6405_v4 }
 0x941   : > { %3183 = vrot.lane.b32.xlu0 %v6365_v56, %s4932_s25  ;;  %3292 = vrot.lane.b32.xlu1 %v6385_v58, %s4931_s3 }
 0x943   : > { %v6411_v23 = vpop.permute.xlu0 %2979  ;;  %v6413_v9 = vpop.permute.xlu1 %3089 }
 0x944   : > { %7971 = vst [vmem:[#allocation57_spill] sm:$0xff] %v6411_v23  ;;  %7972 = vst [vmem:[#allocation58_spill] sm:$0xff] %v6413_v9 }
 0x945   : > { %3075 = vrot.lane.b32.xlu0 %v6365_v56, %s7973_s13  ;;  %3185 = vrot.lane.b32.xlu1 %v6385_v58, %s4932_s25 }
 0x947   : > { %v6419_v3 = vpop.permute.xlu0 %2872  ;;  %v6421_v2 = vpop.permute.xlu1 %2981 }
 0x948   : > { %7974 = vst [vmem:[#allocation59_spill] sm:$0xff] %v6419_v3  ;;  %7975 = vst [vmem:[#allocation60_spill] sm:$0xff] %v6421_v2 }
 0x949   : > { %2967 = vrot.lane.b32.xlu0 %v6365_v56, %s7976_s8  ;;  %3077 = vrot.lane.b32.xlu1 %v6385_v58, %s7973_s13 }
 0x94b   : > { %v6430_v1 = vpop.permute.xlu0 %3497  ;;  %v6432_v0 = vpop.permute.xlu1 %2874 }
 0x94c   : > { %7977 = vst [vmem:[#allocation61_spill] sm:$0xff] %v6432_v0 }
 0x94d   : > { %2860 = vrot.lane.b32.xlu0 %v6365_v56, %s4941_s2  ;;  %2969 = vrot.lane.b32.xlu1 %v6385_v58, %s7976_s8 }
 0x94f   : > { %v6440_v19 = vpop.permute.xlu0 %3389  ;;  %v6442_v49 = vpop.permute.xlu1 %3499 }
 0x951   : > { %3613 = vrot.lane.b32.xlu0 %v6365_v56, %s4942_s7  ;;  %2862 = vrot.lane.b32.xlu1 %v6385_v58, %s4941_s2 }
 0x953   : > { %v6451_v28 = vpop.permute.xlu0 %3282  ;;  %v6453_v60 = vpop.permute.xlu1 %3391 }
 0x955   : > { %3615 = vrot.lane.b32.xlu1 %v6385_v58, %s4942_s7  ;;  %3509 = vrot.lane.b32.xlu0 %v6448_v6, %s4937_s10 }
 0x957   : > { %v6461_v48 = vpop.permute.xlu0 %3175  ;;  %v6463_v5 = vpop.permute.xlu1 %3284 }
 0x959   : > { %3401 = vrot.lane.b32.xlu0 %v6448_v6, %s4938_s30  ;;  %3511 = vrot.lane.b32.xlu1 %v6459_v14, %s4937_s10 }
 0x95b   : > { %v6472_v10 = vpop.permute.xlu0 %3199  ;;  %v6474_v38 = vpop.permute.xlu1 %3177 }
 0x95c   : > { %v3203_v58 = vsel %vm1131_vm5, %v6395_v54, %v6472_v10 }
 0x95d   : > { %3294 = vrot.lane.b32.xlu0 %v6448_v6, %s4931_s3  ;;  %3403 = vrot.lane.b32.xlu1 %v6459_v14, %s4938_s30  ;;  %v6496_v55 = vmul.f32 %v3253_v30, %v3203_v58 }
 0x95f   : > { %v6488_v56 = vpop.permute.xlu0 %3067  ;;  %v6490_v50 = vpop.permute.xlu1 %3201  ;;  %7981 = vst [vmem:[#allocation65_spill] sm:$0xff] %v6496_v55 }
 0x960   : > { %v3204_v46 = vsel %vm1131_vm5, %v6405_v4, %v6490_v50 }
 0x961   : > { %v6498_v33 = vmul.f32 %v3253_v30, %v3204_v46  ;;  %3625 = vrot.lane.b32.xlu0 %v6179_v11, %s4942_s7  ;;  %3296 = vrot.lane.b32.xlu1 %v6459_v14, %s4931_s3  ;;  %v3146_v46 = vrot.slane %v6510_v16, %v6470_v59 }
 0x963   : > { %7982 = vst [vmem:[#allocation66_spill] sm:$0xff] %v6498_v33  ;;  %v6504_v54 = vpop.permute.xlu0 %3091  ;;  %v6506_v8 = vpop.permute.xlu1 %3069 }
 0x964   : > { %v3096_v58 = vsel %vm3095_vm10, %v6403_v63, %v6504_v54 }
 0x965   : > { %3617 = vrot.lane.b32.xlu0 %v6448_v6, %s4942_s7  ;;  %3627 = vrot.lane.b32.xlu1 %v6186_v62, %s4942_s7  ;;  %v6531_v33 = vmul.f32 %v3146_v46, %v3096_v58  ;;  %v2795_v58 = vmul.f32 %v6122_v35, %v6423_v51 }
 0x967   : > { %v6523_v30 = vpop.permute.xlu0 %2959  ;;  %v6525_v26 = vpop.permute.xlu1 %3093  ;;  %7983 = vst [vmem:[#allocation67_spill] sm:$0xff] %v6531_v33  ;;  %v2819_v51 = vadd.f32 %v6129_v29, %v2795_v58 }
 0x968   : > { %v3097_v55 = vsel %vm3095_vm10, %v6413_v9, %v6525_v26 }
 0x969   : > { %v6533_v11 = vmul.f32 %v3146_v46, %v3097_v55  ;;  %3187 = vrot.lane.b32.xlu0 %v6448_v6, %s4932_s25  ;;  %3619 = vrot.lane.b32.xlu1 %v6459_v14, %s4942_s7  ;;  %v3038_v55 = vrot.slane %v6545_v15, %v6470_v59 }
 0x96b   : > { %7984 = vst [vmem:[#allocation68_spill] sm:$0xff] %v6533_v11  ;;  %v6539_v63 = vpop.permute.xlu0 %2983  ;;  %v6541_v62 = vpop.permute.xlu1 %2961 }
 0x96c   : > { %7985 = vst [vmem:[#allocation69_spill] sm:$0xff] %v6539_v63  ;;  %v2988_v46 = vsel %vm2987_vm11, %v6411_v23, %v6539_v63  ;;  %v2732_v11 = vpop.f32.mrf.mxu1 }
 0x96d   : > { %3079 = vrot.lane.b32.xlu0 %v6448_v6, %s7973_s13  ;;  %3189 = vrot.lane.b32.xlu1 %v6459_v14, %s4932_s25  ;;  %v6568_v13 = vmul.f32 %v3038_v55, %v2988_v46  ;;  %v2803_v35 = vmul.f32 %v6133_v34, %v2732_v11  ;;  %v6597_v34 = vmax.f32 %v2819_v51, 0.0 }
 0x96f   : > { %v6560_v4 = vpop.permute.xlu0 %2852  ;;  %v6562_v33 = vpop.permute.xlu1 %2985  ;;  %7987 = vst [vmem:[#allocation71_spill] sm:$0xff] %v6568_v13  ;;  %7991 = vst [vmem:[#allocation75_spill] sm:$0xff] %v6597_v34  ;;  %v2827_v11 = vadd.f32 %v6139_v25, %v2803_v35  ;;  %v6617_v25 = vsub.s32 6, %v5431_v36 }
 0x970   : > { %7986 = vst [vmem:[#allocation70_spill] sm:$0xff] %v6562_v33  ;;  %v2989_v9 = vsel %vm2987_vm11, %v6421_v2, %v6562_v33  ;;  %v6584_v2 = vld [vmem:[#allocation5] sm:$0xff] }
 0x971   : > { %v6570_v42 = vmul.f32 %v3038_v55, %v2989_v9  ;;  %2971 = vrot.lane.b32.xlu0 %v6448_v6, %s7976_s8  ;;  %3081 = vrot.lane.b32.xlu1 %v6459_v14, %s7973_s13  ;;  %v2930_v9 = vrot.slane %v6584_v2, %v6470_v59  ;;  %7996 = vst [vmem:[#allocation80_spill] sm:$0xff] %v6617_v25  ;;  %v6619_v51 = vmax.f32 %v2827_v11, 0.0 }
 0x973   : > { %7988 = vst [vmem:[#allocation72_spill] sm:$0xff] %v6570_v42  ;;  %v6578_v23 = vpop.permute.xlu0 %2876  ;;  %v6580_v63 = vpop.permute.xlu1 %2854  ;;  %7997 = vst [vmem:[#allocation81_spill] sm:$0xff] %v6619_v51 }
 0x974   : > { %7989 = vst [vmem:[#allocation73_spill] sm:$0xff] %v6578_v23  ;;  %7990 = vst [vmem:[#allocation74_spill] sm:$0xff] %v6580_v63  ;;  %v2881_v29 = vsel %vm2880_vm12, %v6419_v3, %v6578_v23 }
 0x975   : > { %2864 = vrot.lane.b32.xlu0 %v6448_v6, %s4941_s2  ;;  %2973 = vrot.lane.b32.xlu1 %v6459_v14, %s7976_s8  ;;  %v6608_v13 = vmul.f32 %v2930_v9, %v2881_v29 }
 0x977   : > { %v6600_v55 = vpop.permute.xlu0 %3605  ;;  %v6602_v58 = vpop.permute.xlu1 %2878  ;;  %7994 = vst [vmem:[#allocation78_spill] sm:$0xff] %v6608_v13  ;;  %v6643_v13 = vld [vmem:[#allocation5 + $0x30] sm:$0xff] }
 0x978   : > { %7992 = vst [vmem:[#allocation76_spill] sm:$0xff] %v6600_v55  ;;  %7993 = vst [vmem:[#allocation77_spill] sm:$0xff] %v6602_v58  ;;  %v2882_v46 = vsel %vm2880_vm12, %v6432_v0, %v6602_v58  ;;  %v6625_v0 = vld [vmem:[#allocation5 + $0x38] sm:$0xff]  ;;  %v3464_v6 = vrot.slane %v6643_v13, %v6617_v25 }
 0x979   : > { %v6610_v42 = vmul.f32 %v2930_v9, %v2882_v46  ;;  %3513 = vrot.lane.b32.xlu0 %v6597_v34, %s4937_s10  ;;  %2866 = vrot.lane.b32.xlu1 %v6459_v14, %s4941_s2  ;;  %v3572_v46 = vrot.slane %v6625_v0, %v6617_v25  ;;  %v3576_v9 = vrot.slane %v6625_v0, %v6470_v59 }
 0x97b   : > { %7995 = vst [vmem:[#allocation79_spill] sm:$0xff] %v6610_v42  ;;  %v3522_v35 = vpop.permute.xlu0 %3521  ;;  %v6621_v3 = vpop.permute.xlu1 %3607 }
 0x97c   : > { %7998 = vst [vmem:[#allocation82_spill] sm:$0xff] %v6621_v3  ;;  %v3526_v11 = vsel %vm3525_vm13, %v6357_v18, %v3522_v35  ;;  %v3540_v29 = vsel %vm3525_vm13, %v3522_v35, %v6287_v7  ;;  %v3468_v3 = vrot.slane %v6643_v13, %v6470_v59 }
 0x97d   : > { %3405 = vrot.lane.b32.xlu0 %v6597_v34, %s4938_s30  ;;  %3515 = vrot.lane.b32.xlu1 %v6619_v51, %s4937_s10  ;;  %v6655_v55 = vmul.f32 %v3572_v46, %v3526_v11  ;;  %v6657_v23 = vmul.f32 %v3576_v9, %v3540_v29  ;;  %s8011_s10 = sld [smem:[#allocation108_spill]] }
 0x97f   : > { %v3414_v42 = vpop.permute.xlu0 %3413  ;;  %v3524_v14 = vpop.permute.xlu1 %3523  ;;  %7999 = vst [vmem:[#allocation83_spill] sm:$0xff] %v6655_v55  ;;  %8000 = vst [vmem:[#allocation84_spill] sm:$0xff] %v6657_v23 }
 0x980   : > { %v3527_v18 = vsel %vm3525_vm13, %v6370_v21, %v3524_v14  ;;  %v3541_v35 = vsel %vm3525_vm13, %v3524_v14, %v6298_v61  ;;  %v3418_v33 = vsel %vm3417_vm14, %v6368_v43, %v3414_v42  ;;  %v3432_v21 = vsel %vm3417_vm14, %v3414_v42, %v6296_v24  ;;  %v6673_v14 = vld [vmem:[#allocation5 + $0x28] sm:$0xff] }
 0x981   : > { %v6659_v58 = vmul.f32 %v3572_v46, %v3527_v18  ;;  %v6661_v63 = vmul.f32 %v3576_v9, %v3541_v35  ;;  %3298 = vrot.lane.b32.xlu0 %v6597_v34, %s4931_s3  ;;  %3407 = vrot.lane.b32.xlu1 %v6619_v51, %s4938_s30  ;;  %v3356_v11 = vrot.slane %v6673_v14, %v6617_v25 }
 0x982   : > { %v3360_v35 = vrot.slane %v6673_v14, %v6470_v59  ;;  %v6689_v18 = vmul.f32 %v3464_v6, %v3418_v33  ;;  %v6691_v55 = vmul.f32 %v3468_v3, %v3432_v21 }
 0x983   : > { %8001 = vst [vmem:[#allocation85_spill] sm:$0xff] %v6659_v58  ;;  %8002 = vst [vmem:[#allocation86_spill] sm:$0xff] %v6661_v63  ;;  %v3307_v29 = vpop.permute.xlu0 %3306  ;;  %v3416_v46 = vpop.permute.xlu1 %3415 }
 0x984   : > { %v3419_v42 = vsel %vm3417_vm14, %v6389_v37, %v3416_v46  ;;  %v3433_v43 = vsel %vm3417_vm14, %v3416_v46, %v6308_v53  ;;  %8003 = vst [vmem:[#allocation87_spill] sm:$0xff] %v6689_v18  ;;  %8004 = vst [vmem:[#allocation88_spill] sm:$0xff] %v6691_v55  ;;  %v3310_v59 = vsel %vm1161_vm4, %v6387_v27, %v3307_v29 }
 0x985   : > { %v6693_v58 = vmul.f32 %v3464_v6, %v3419_v42  ;;  %v6695_v9 = vmul.f32 %v3468_v3, %v3433_v43  ;;  %3191 = vrot.lane.b32.xlu0 %v6597_v34, %s4932_s25  ;;  %v3324_v25 = vsel %vm1161_vm4, %v3307_v29, %v6306_v57  ;;  %3300 = vrot.lane.b32.xlu1 %v6619_v51, %s4931_s3 }
 0x986   : > { %v3539_v6 = vsel %vm3525_vm13, %v6298_v61, %v6442_v49  ;;  %v3552_v42 = vrot.slane %v6625_v0, %v5443_v41  ;;  %v6725_v21 = vmul.f32 %v3356_v11, %v3310_v59  ;;  %v6727_v18 = vmul.f32 %v3360_v35, %v3324_v25 }
 0x987   : > { %8005 = vst [vmem:[#allocation89_spill] sm:$0xff] %v6693_v58  ;;  %8006 = vst [vmem:[#allocation90_spill] sm:$0xff] %v6695_v9  ;;  %v3309_v33 = vpop.permute.xlu1 %3308  ;;  %v6709_v3 = vpop.permute.xlu0 %3501  ;;  %v3548_v61 = vrot.slane %v6625_v0, %v5440_v40  ;;  %v3538_v59 = vsel %vm3525_vm13, %v6287_v7, %v6430_v1  ;;  %v3431_v55 = vsel %vm3417_vm14, %v6308_v53, %v6453_v60 }
 0x988   : > { %v3311_v29 = vsel %vm1161_vm4, %v6397_v22, %v3309_v33  ;;  %v3325_v46 = vsel %vm1161_vm4, %v3309_v33, %v6316_v32  ;;  %8007 = vst [vmem:[#allocation91_spill] sm:$0xff] %v6725_v21  ;;  %8008 = vst [vmem:[#allocation92_spill] sm:$0xff] %v6727_v18  ;;  %v3536_v33 = vsel %vm3525_vm13, %v6430_v1, %v6709_v3 }
 0x989   : > { %v6729_v43 = vmul.f32 %v3356_v11, %v3311_v29  ;;  %v6731_v58 = vmul.f32 %v3360_v35, %v3325_v46  ;;  %3083 = vrot.lane.b32.xlu0 %v6597_v34, %s7973_s13  ;;  %3193 = vrot.lane.b32.xlu1 %v6619_v51, %s4932_s25  ;;  %v3440_v46 = vrot.slane %v6643_v13, %v5440_v40 }
 0x98a   : > { %v3593_v22 = vmul.f32 %v3548_v61, %v3539_v6  ;;  %v3430_v7 = vsel %vm3417_vm14, %v6296_v24, %v6440_v19  ;;  %v3586_v25 = vmul.f32 %v3552_v42, %v3536_v33  ;;  %v3444_v29 = vrot.slane %v6643_v13, %v5443_v41 }
 0x98b   : > { %8009 = vst [vmem:[#allocation93_spill] sm:$0xff] %v6729_v43  ;;  %8010 = vst [vmem:[#allocation94_spill] sm:$0xff] %v6731_v58  ;;  %v6749_v11 = vpop.permute.xlu0 %3393  ;;  %v6751_v35 = vpop.permute.xlu1 %3503  ;;  %v3585_v21 = vmul.f32 %v3548_v61, %v3538_v59  ;;  %v3332_v24 = vrot.slane %v6673_v14, %v5440_v40  ;;  %v3485_v33 = vmul.f32 %v3440_v46, %v3431_v55 }
 0x98c   : > { %v3537_v1 = vsel %vm3525_vm13, %v6442_v49, %v6751_v35  ;;  %v3428_v53 = vsel %vm3417_vm14, %v6440_v19, %v6749_v11  ;;  %v3477_v43 = vmul.f32 %v3440_v46, %v3430_v7  ;;  %v3336_v18 = vrot.slane %v6673_v14, %v5443_v41 }
 0x98d   : > { %v3594_v6 = vmul.f32 %v3552_v42, %v3537_v1  ;;  %2975 = vrot.lane.b32.xlu0 %v6597_v34, %s7976_s8  ;;  %3085 = vrot.lane.b32.xlu1 %v6619_v51, %s7973_s13  ;;  %v3229_v42 = vrot.slane %v6476_v20, %v5443_v41  ;;  %v3765_v19 = vpack.c.bf16 %v3593_v22, %v3585_v21  ;;  %v6802_v22 = vsub.s32 2, %v5431_v36  ;;  %s4253_s13 = sshll.u32 %s6110_s1, 4  ;;  %s7668_s13 = int_to_ptr.vmem [resolvable:$true] %s4253_s13 }
 0x98e   : > { %v3323_v55 = vsel %vm1161_vm4, %v6316_v32, %v6463_v5  ;;  %v3478_v58 = vmul.f32 %v3444_v29, %v3428_v53  ;;  %v3225_v21 = vrot.slane %v6476_v20, %v5440_v40  ;;  %v6820_v46 = vrot.slane %v6510_v16, %v5440_v40 }
 0x98f   : > { %v6785_v1 = vpop.permute.xlu0 %3286  ;;  %v6787_v61 = vpop.permute.xlu1 %3395  ;;  %v3766_v59 = vpack.c.bf16 %v3594_v6, %v3586_v25  ;;  %v3322_v25 = vsel %vm1161_vm4, %v6306_v57, %v6451_v28 }
 0x990   : > { %v3429_v49 = vsel %vm3417_vm14, %v6453_v60, %v6787_v61  ;;  %v3122_v60 = vrot.slane %v6510_v16, %v5443_v41  ;;  %v3320_v32 = vsel %vm1161_vm4, %v6451_v28, %v6785_v1 }
 0x991   : > { %v3486_v9 = vmul.f32 %v3444_v29, %v3429_v49  ;;  %3793 = vmatprep.subr.bf16.mxu1 %v3766_v59  ;;  %2868 = vrot.lane.b32.xlu0 %v6597_v34, %s4941_s2  ;;  %v3757_v29 = vpack.c.bf16 %v3485_v33, %v3477_v43  ;;  %v3377_v49 = vmul.f32 %v3332_v24, %v3323_v55 }
 0x992   : > { %2977 = vrot.lane.b32.xlu1 %v6619_v51, %s7976_s8  ;;  %3794 = vmatpush1.bf16.msra.mxu1 %v3765_v19  ;;  %v3216_v59 = vsel %vm1131_vm5, %v6324_v31, %v6474_v38  ;;  %v3370_v43 = vmul.f32 %v3336_v18, %v3320_v32  ;;  %v3369_v33 = vmul.f32 %v3332_v24, %v3322_v25 }
 0x993   : > { %v6822_v7 = vpop.permute.xlu0 %3179  ;;  %v6824_v6 = vpop.permute.xlu1 %3288  ;;  %v3758_v53 = vpack.c.bf16 %v3486_v9, %v3478_v58  ;;  %v3233_v58 = vrot.slane %v6476_v20, %v6802_v22  ;;  %v3215_v19 = vsel %vm1131_vm5, %v6314_v52, %v6461_v48  ;;  %v3014_v55 = vrot.slane %v6545_v15, %v5443_v41 }
 0x994   : > { %v3213_v28 = vsel %vm1131_vm5, %v6461_v48, %v6822_v7  ;;  %v3321_v57 = vsel %vm1161_vm4, %v6463_v5, %v6824_v6  ;;  %v3217_v5 = vsel %vm1131_vm5, %v6472_v10, %v6314_v52  ;;  %v3126_v24 = vrot.slane %v6510_v16, %v6802_v22 }
 0x995   : > { %v3378_v9 = vmul.f32 %v3336_v18, %v3321_v57  ;;  %3795 = vmatprep.subr.bf16.mxu1 %v3758_v53  ;;  %3621 = vrot.lane.b32.xlu0 %v6597_v34, %s4942_s7  ;;  %v3271_v18 = vmul.f32 %v3229_v42, %v3216_v59  ;;  %v3749_v53 = vpack.c.bf16 %v3377_v49, %v3369_v33  ;;  %v8021_v34 = vld [vmem:[#allocation74_spill] sm:$0xff] }
 0x996   : > { %2870 = vrot.lane.b32.xlu1 %v6619_v51, %s4941_s2  ;;  %3796 = vmatpush1.bf16.msra.mxu1 %v3757_v29  ;;  %v3218_v29 = vsel %vm1131_vm5, %v6490_v50, %v6324_v31  ;;  %v3263_v59 = vmul.f32 %v3229_v42, %v3215_v19  ;;  %v6872_v57 = vmul.f32 %v3233_v58, %v3213_v28  ;;  %v3965_v42 = vld [vmem:[%s8011_s10] sm:$0xff]  ;;  %s8109_s2 = sld [smem:[#allocation109_spill]] }
 0x997   : > { %v6856_v32 = vpop.permute.xlu0 %3071  ;;  %v6858_v25 = vpop.permute.xlu1 %3181  ;;  %v3750_v48 = vpack.c.bf16 %v3378_v9, %v3370_v43  ;;  %v3262_v31 = vmul.f32 %v3225_v21, %v3217_v5  ;;  %v3109_v50 = vsel %vm3095_vm10, %v6332_v45, %v6506_v8  ;;  %v3108_v49 = vsel %vm3095_vm10, %v6322_v44, %v6488_v56 }
 0x998   : > { %v3106_v52 = vsel %vm3095_vm10, %v6488_v56, %v6856_v32  ;;  %v3214_v10 = vsel %vm1131_vm5, %v6474_v38, %v6858_v25  ;;  %v3018_v38 = vrot.slane %v6545_v15, %v6802_v22  ;;  %v3270_v28 = vmul.f32 %v3225_v21, %v3218_v29  ;;  %v8014_v29 = vld [vmem:[#allocation36_spill] sm:$0xff] }
 0x999   : > { %v6874_v43 = vmul.f32 %v3233_v58, %v3214_v10  ;;  %3797 = vmatprep.subr.bf16.mxu1 %v3750_v48  ;;  %3629 = vrot.lane.b32.xlu0 %v6239_v47, %s4942_s7  ;;  %v8012_v33 = vpack.c.bf16 %v6222_v17, %v6215_v12  ;;  %v3734_v5 = vpack.c.bf16 %v3271_v18, %v3263_v59  ;;  %v8013_v18 = vld [vmem:[#allocation41_spill] sm:$0xff]  ;;  %v8015_v10 = vld [vmem:[#allocation32_spill] sm:$0xff] }
 0x99a   : > { %3623 = vrot.lane.b32.xlu1 %v6619_v51, %s4942_s7  ;;  %3798 = vmatpush1.bf16.msra.mxu1 %v3749_v53  ;;  %v3110_v48 = vsel %vm3095_vm10, %v6504_v54, %v6322_v44  ;;  %v3111_v56 = vsel %vm3095_vm10, %v6525_v26, %v6332_v45  ;;  %v3164_v17 = vmul.f32 %v3122_v60, %v3109_v50 }
 0x99b   : > { %v6895_v9 = vpop.permute.xlu0 %2963  ;;  %3799 = vmatprep.subr.bf16.mxu1 %v8012_v33  ;;  %v6900_v19 = vpop.permute.xlu1 %3073  ;;  %v3001_v54 = vsel %vm2987_vm11, %v8013_v18, %v6541_v62  ;;  %v6922_v44 = vmul.f32 %v3126_v24, %v3106_v52  ;;  %v3156_v26 = vmul.f32 %v3122_v60, %v3108_v49  ;;  %v3010_v45 = vrot.slane %v6545_v15, %v5440_v40  ;;  %v8018_v52 = vld [vmem:[#allocation39_spill] sm:$0xff] }
 0x99c   : > { %v2998_v21 = vsel %vm2987_vm11, %v6523_v30, %v6895_v9  ;;  %v3107_v12 = vsel %vm3095_vm10, %v6506_v8, %v6900_v19  ;;  %v8016_v8 = vld [vmem:[#allocation31_spill] sm:$0xff]  ;;  %v2910_v50 = vrot.slane %v6584_v2, %v6802_v22  ;;  %v3733_v33 = vpack.c.bf16 %v3270_v28, %v3262_v31 }
 0x99d   : > { %v6924_v53 = vmul.f32 %v3126_v24, %v3107_v12  ;;  %3969 = vperm.xlu0 %4623, %v3965_v42   ;;  %v8017_v59 = vpack.c.bf16 %v8015_v10, %v8016_v8  ;;  %v3000_v24 = vsel %vm2987_vm11, %v8018_v52, %v6523_v30  ;;  %v3163_v60 = vmul.f32 %v6820_v46, %v3111_v56  ;;  %v3966_v10 = vld [vmem:[%s8011_s10 + $0x8] sm:$0xff] }
 0x99e   : > { %3631 = vrot.lane.b32.xlu1 %v8014_v29, %s4942_s7  ;;  %v3155_v31 = vmul.f32 %v6820_v46, %v3110_v48  ;;  %v3056_v28 = vmul.f32 %v3014_v55, %v3001_v54  ;;  %v3726_v46 = vpack.c.bf16 %v3164_v17, %v3156_v26  ;;  %v8020_v48 = vmov 1   ;;  %v8022_v29 = vld [vmem:[#allocation43_spill] sm:$0xff]  ;;  %v8024_v26 = vld [vmem:[#allocation40_spill] sm:$0xff]  ;;  %s4468_s7 = sshll.u32 %s5092_s29, 12  ;;  %s8132_s29 = sld [smem:[#allocation110_spill]] }
 0x99f   : > { %3800 = vmatpush1.bf16.msra.mxu1 %v8017_v59  ;;  %v6942_v12 = vpop.permute.xlu0 %2856  ;;  %v6944_v58 = vpop.permute.xlu1 %2965  ;;  %v6962_v59 = vmul.f32 %v3018_v38, %v2998_v21  ;;  %v3048_v54 = vmul.f32 %v3014_v55, %v3000_v24  ;;  %v2906_v51 = vrot.slane %v6584_v2, %v5443_v41  ;;  %v8023_v21 = vld [vmem:[#allocation69_spill] sm:$0xff] }
 0x9a0   : > { %3801 = vmatprep.subr.bf16.mxu1 %v3734_v5  ;;  %v2891_v30 = vsel %vm2880_vm12, %v6560_v4, %v6942_v12  ;;  %v2999_v56 = vsel %vm2987_vm11, %v6541_v62, %v6944_v58  ;;  %v8019_v5 = vld [vmem:[#allocation70_spill] sm:$0xff]  ;;  %v2894_v62 = vsel %vm2880_vm12, %v8022_v29, %v8021_v34  ;;  %v3725_v47 = vpack.c.bf16 %v3163_v60, %v3155_v31 }
 0x9a1   : > { %v3003_v8 = vsel %vm2987_vm11, %v8019_v5, %v8013_v18  ;;  %v6964_v49 = vmul.f32 %v3018_v38, %v2999_v56  ;;  %4626 = vset.pattern.permute.xlu0 %v8020_v48  ;;  %v3002_v38 = vsel %vm2987_vm11, %v8023_v21, %v8018_v52  ;;  %v3718_v60 = vpack.c.bf16 %v3056_v28, %v3048_v54  ;;  %v6991_v56 = vld [vmem:[#allocation5 + $0x40] sm:$0xff]  ;;  %v8025_v5 = vld [vmem:[#allocation77_spill] sm:$0xff] }
 0x9a2   : > { %3974 = vperm.xlu1 %4625, %v3966_v10   ;;  %3994 = vperm.xlu0 %4626, %v3965_v42   ;;  %v3055_v24 = vmul.f32 %v3010_v45, %v3003_v8  ;;  %v2948_v31 = vmul.f32 %v2906_v51, %v2894_v62  ;;  %v2896_v42 = vsel %vm2880_vm12, %v8025_v5, %v8022_v29  ;;  %v8026_v54 = vld [vmem:[#allocation73_spill] sm:$0xff]  ;;  %v8028_v62 = vld [vmem:[#allocation82_spill] sm:$0xff] }
 0x9a3   : > { %3802 = vmatpush1.bf16.msra.mxu1 %v3733_v33  ;;  %v6979_v55 = vpop.permute.xlu0 %3609  ;;  %v6981_v18 = vpop.permute.xlu1 %2858  ;;  %v2893_v33 = vsel %vm2880_vm12, %v8024_v26, %v6560_v4  ;;  %v3047_v4 = vmul.f32 %v3010_v45, %v3002_v38  ;;  %v2902_v8 = vrot.slane %v6584_v2, %v5440_v40  ;;  %v2895_v29 = vsel %vm2880_vm12, %v8026_v54, %v8024_v26  ;;  %v8029_v26 = vld [vmem:[#allocation45_spill] sm:$0xff] }
 0x9a4   : > { %3803 = vmatprep.subr.bf16.mxu1 %v3726_v46  ;;  %v2892_v52 = vsel %vm2880_vm12, %v8021_v34, %v6981_v18  ;;  %v6997_v46 = vmul.f32 %v2910_v50, %v2891_v30  ;;  %v3660_v34 = vrot.slane %v6991_v56, %v5443_v41  ;;  %v2940_v28 = vmul.f32 %v2906_v51, %v2893_v33  ;;  %v8027_v51 = vld [vmem:[#allocation76_spill] sm:$0xff]  ;;  %s7666_s25 = scalar_lea.hbm %s8132_s29, %s4468_s7  ;;  %s4943_s7 = smov [#allocation14]  }
 0x9a5   : > { %v6999_v21 = vmul.f32 %v2910_v50, %v2892_v52  ;;  %v3717_v41 = vpack.c.bf16 %v3055_v24, %v3047_v4  ;;  %v3647_v33 = vsel %vm3633_vm15, %v8029_v26, %v8028_v62  ;;  %v3656_v5 = vrot.slane %v6991_v56, %v5440_v40  ;;  %v8030_v4 = vld [vmem:[#allocation42_spill] sm:$0xff]  ;;  %s4841_s8 = sshll.u32 %s4943_s7, 4  ;;  %s4842_s8 = int_to_ptr.vmem [resolvable:$false] %s4841_s8 }
 0x9a6   : > { %4627 = vset.pattern.permute.xlu1 %v8020_v48  ;;  %v3644_v48 = vsel %vm3633_vm15, %v8027_v51, %v6979_v55  ;;  %v3710_v52 = vpack.c.bf16 %v2948_v31, %v2940_v28  ;;  %v3646_v54 = vsel %vm3633_vm15, %v8030_v4, %v8027_v51  ;;  %s4843_s3 = scalar_lea.vmem %s4842_s8, 8192  ;;  %p4844_p5 = scmp.lt.s32.totalorder %s7668_s13, %s4842_s8 }
 0x9a7   : > { %3804 = vmatpush1.bf16.msra.mxu1 %v3725_v47  ;;  %v7013_v50 = vpop.permute.xlu0 %3505  ;;  %v7015_v30 = vpop.permute.xlu1 %3611  ;;  %3998 = vperm.xlu1 %4627, %v3966_v10   ;;  %v2947_v47 = vmul.f32 %v2902_v8, %v2896_v42  ;;  %v3556_v10 = vrot.slane %v6625_v0, %v6802_v22  ;;  %v3701_v28 = vmul.f32 %v3656_v5, %v3647_v33 }
 0x9a8   : > { %3805 = vmatprep.subr.bf16.mxu1 %v3718_v60  ;;  %v3645_v38 = vsel %vm3633_vm15, %v8028_v62, %v7015_v30  ;;  %v2939_v60 = vmul.f32 %v2902_v8, %v2895_v29  ;;  %v3534_v42 = vsel %vm3525_vm13, %v6709_v3, %v7013_v50  ;;  %v3694_v62 = vmul.f32 %v3660_v34, %v3644_v48 }
 0x9a9   : > { %v3702_v24 = vmul.f32 %v3660_v34, %v3645_v38  ;;  %v7049_v3 = vmul.f32 %v3556_v10, %v3534_v42  ;;  %v3448_v29 = vrot.slane %v6643_v13, %v6802_v22  ;;  %v3693_v51 = vmul.f32 %v3656_v5, %v3646_v54  ;;  %v7081_v5 = vld [vmem:[%s7962_s11] ss:$8 sps:$4 sm:$0xff]  }
 0x9aa   : > { %v3709_v8 = vpack.c.bf16 %v2947_v47, %v2939_v60  ;;  %v7076_v60 = vsub.s32 3, %v5431_v36  ;;  %8031 = vst [vmem:[#allocation41_spill] sm:$0xff] %v7081_v5 }
 0x9ab   : > { %3806 = vmatpush1.bf16.msra.mxu1 %v3717_v41  ;;  %v7041_v45 = vpop.permute.xlu0 %3397  ;;  %v7043_v31 = vpop.permute.xlu1 %3507  ;;  %v3774_v34 = vpack.c.bf16 %v3702_v24, %v3694_v62  ;;  %v3773_v33 = vpack.c.bf16 %v3701_v28, %v3693_v51 }
 0x9ac   : > { %3807 = vmatprep.subr.bf16.mxu1 %v3710_v52  ;;  %v3535_v40 = vsel %vm3525_vm13, %v6751_v35, %v7043_v31  ;;  %v3426_v47 = vsel %vm3417_vm14, %v6749_v11, %v7041_v45  ;;  %v3340_v11 = vrot.slane %v6673_v14, %v6802_v22  ;;  %v3344_v63 = vrot.slane %v6673_v14, %v7076_v60 }
 0x9ad   : > { %v7053_v41 = vmul.f32 %v3556_v10, %v3535_v40  ;;  %v7069_v24 = vmul.f32 %v3448_v29, %v3426_v47  ;;  %v3237_v40 = vrot.slane %v6476_v20, %v7076_v60 }
 0x9af   : > { %3808 = vmatpush1.bf16.msra.mxu1 %v3709_v8  ;;  %v7061_v38 = vpop.permute.xlu0 %3290  ;;  %v7063_v35 = vpop.permute.xlu1 %3399 }
 0x9b0   : > { %3823 = vmatprep.subr.bf16.mxu1 %v3774_v34  ;;  %v3427_v10 = vsel %vm3417_vm14, %v6787_v61, %v7063_v35  ;;  %v3318_v61 = vsel %vm1161_vm4, %v6785_v1, %v7061_v38  ;;  %v8032_v34 = vld [vmem:[#allocation49_spill] sm:$0xff] }
 0x9b1   : > { %v7073_v52 = vmul.f32 %v3448_v29, %v3427_v10  ;;  %v7097_v28 = vmul.f32 %v3340_v11, %v3318_v61 }
 0x9b3   : > { %3824 = vmatpush2.bf16.msra.mxu1 %v3773_v33  ;;  %v7089_v54 = vpop.permute.xlu0 %3183  ;;  %v7091_v62 = vpop.permute.xlu1 %3292 }
 0x9b4   : > { %v3319_v8 = vsel %vm1161_vm4, %v6824_v6, %v7091_v62  ;;  %v3211_v1 = vsel %vm1131_vm5, %v6822_v7, %v7089_v54  ;;  %v3130_v7 = vrot.slane %v6510_v16, %v7076_v60 }
 0x9b5   : > { %v7101_v29 = vmul.f32 %v3340_v11, %v3319_v8  ;;  %v7120_v10 = vmul.f32 %v3237_v40, %v3211_v1 }
 0x9b6   : > { %3826 = vmatmul.mubr.bf16.vlgmr.msra.gmra.mxu1 %v7081_v5 }
 0x9b7   : > { %4454 = vmatprep.mubr.msk.bf16.mxu1 %vm1300_vm1, %v8032_v34  ;;  %v7112_v51 = vpop.permute.xlu0 %3075  ;;  %v7114_v47 = vpop.permute.xlu1 %3185 }
 0x9b8   : > { %v3212_v33 = vsel %vm1131_vm5, %v6858_v25, %v7114_v47  ;;  %v3104_v61 = vsel %vm3095_vm10, %v6856_v32, %v7112_v51 }
 0x9b9   : > { %v7124_v11 = vmul.f32 %v3237_v40, %v3212_v33  ;;  %v7140_v1 = vmul.f32 %v3130_v7, %v3104_v61  ;;  %v3022_v40 = vrot.slane %v6545_v15, %v7076_v60 }
 0x9bb   : > { %v7130_v8 = vpop.permute.xlu0 %2967  ;;  %v7132_v34 = vpop.permute.xlu1 %3077 }
 0x9bc   : > { %v3105_v25 = vsel %vm3095_vm10, %v6900_v19, %v7132_v34  ;;  %v2996_v32 = vsel %vm2987_vm11, %v6895_v9, %v7130_v8 }
 0x9bd   : > { %v7144_v33 = vmul.f32 %v3130_v7, %v3105_v25  ;;  %v7160_v61 = vmul.f32 %v3022_v40, %v2996_v32  ;;  %v2914_v7 = vrot.slane %v6584_v2, %v7076_v60 }
 0x9bf   : > { %v7150_v6 = vpop.permute.xlu0 %2860  ;;  %v7152_v17 = vpop.permute.xlu1 %2969 }
 0x9c0   : > { %v2997_v19 = vsel %vm2987_vm11, %v6944_v58, %v7152_v17  ;;  %v2889_v9 = vsel %vm2880_vm12, %v6942_v12, %v7150_v6 }
 0x9c1   : > { %v7164_v25 = vmul.f32 %v3022_v40, %v2997_v19  ;;  %v7180_v32 = vmul.f32 %v2914_v7, %v2889_v9  ;;  %v3664_v40 = vrot.slane %v6991_v56, %v6802_v22  ;;  %v3560_v9 = vrot.slane %v6625_v0, %v7076_v60 }
 0x9c3   : > { %v7170_v48 = vpop.permute.xlu0 %3613  ;;  %v7172_v42 = vpop.permute.xlu1 %2862 }
 0x9c4   : > { %v2890_v58 = vsel %vm2880_vm12, %v6981_v18, %v7172_v42  ;;  %v3642_v12 = vsel %vm3633_vm15, %v6979_v55, %v7170_v48 }
 0x9c5   : > { %v7184_v19 = vmul.f32 %v2914_v7, %v2890_v58  ;;  %v7200_v22 = vmul.f32 %v3664_v40, %v3642_v12  ;;  %v3452_v12 = vrot.slane %v6643_v13, %v7076_v60 }
 0x9c7   : > { %v7190_v4 = vpop.permute.xlu1 %3615  ;;  %v7192_v26 = vpop.permute.xlu0 %3509 }
 0x9c8   : > { %v3643_v18 = vsel %vm3633_vm15, %v7015_v30, %v7190_v4  ;;  %v3532_v55 = vsel %vm3525_vm13, %v7013_v50, %v7192_v26 }
 0x9c9   : > { %v7202_v7 = vmul.f32 %v3664_v40, %v3643_v18  ;;  %v3588_v40 = vmul.f32 %v3560_v9, %v3532_v55 }
 0x9cb   : > { %v7212_v27 = vpop.permute.xlu0 %3401  ;;  %v7214_v5 = vpop.permute.xlu1 %3511 }
 0x9cc   : > { %v3533_v30 = vsel %vm3525_vm13, %v7043_v31, %v7214_v5  ;;  %v3424_v50 = vsel %vm3417_vm14, %v7041_v45, %v7212_v27 }
 0x9cd   : > { %v3596_v18 = vmul.f32 %v3560_v9, %v3533_v30  ;;  %v3480_v55 = vmul.f32 %v3452_v12, %v3424_v50  ;;  %v8033_v30 = vpack.c.bf16 %v7053_v41, %v7049_v3 }
 0x9cf   : > { %v7226_v58 = vpop.permute.xlu0 %3294  ;;  %v7228_v37 = vpop.permute.xlu1 %3403  ;;  %v3768_v23 = vpack.c.bf16 %v3596_v18, %v3588_v40 }
 0x9d0   : > { %v3425_v31 = vsel %vm3417_vm14, %v7063_v35, %v7228_v37  ;;  %v3316_v45 = vsel %vm1161_vm4, %v7061_v38, %v7226_v58  ;;  %v8035_v38 = vpack.c.bf16 %v7073_v52, %v7069_v24  ;;  %v8039_v52 = vld [vmem:[#allocation37_spill] sm:$0xff] }
 0x9d1   : > { %v3488_v9 = vmul.f32 %v3452_v12, %v3425_v31  ;;  %3836 = vmatprep.subr.bf16.mxu0 %v3768_v23  ;;  %v3372_v23 = vmul.f32 %v3344_v63, %v3316_v45  ;;  %v8040_v45 = vld [vmem:[#allocation38_spill] sm:$0xff] }
 0x9d2   : > { %3837 = vmatpush1.bf16.msra.mxu0 %v8033_v30  ;;  %v8037_v30 = vld [vmem:[#allocation50_spill] sm:$0xff] }
 0x9d3   : > { %v7243_v40 = vpop.permute.xlu0 %3625  ;;  %v7245_v18 = vpop.permute.xlu1 %3296  ;;  %v3760_v35 = vpack.c.bf16 %v3488_v9, %v3480_v55  ;;  %v7259_v55 = vsub.s32 4, %v5431_v36  ;;  %v8036_v9 = vld [vmem:[#allocation46_spill] sm:$0xff] }
 0x9d4   : > { %8034 = vst [vmem:[#allocation32_spill] sm:$0xff] %v7243_v40  ;;  %v3317_v12 = vsel %vm1161_vm4, %v7091_v62, %v7245_v18  ;;  %v3744_v40 = vpack.c.bf16 %v8037_v30, %v8036_v9  ;;  %v8043_v30 = vpack.c.bf16 %v7144_v33, %v7140_v1 }
 0x9d5   : > { %v3380_v50 = vmul.f32 %v3344_v63, %v3317_v12  ;;  %3838 = vmatprep.subr.bf16.mxu0 %v3760_v35  ;;  %v8038_v63 = vpack.c.bf16 %v7101_v29, %v7097_v28  ;;  %v3743_v35 = vpack.c.bf16 %v8040_v45, %v8039_v52  ;;  %v3241_v12 = vrot.slane %v6476_v20, %v7259_v55 }
 0x9d6   : > { %3839 = vmatpush1.bf16.msra.mxu0 %v8035_v38  ;;  %v8041_v28 = vpack.c.bf16 %v7124_v11, %v7120_v10  ;;  %v8042_v11 = vpack.c.bf16 %v6874_v43, %v6872_v57  ;;  %v3026_v57 = vrot.slane %v6545_v15, %v7259_v55  ;;  %v3668_v52 = vrot.slane %v6991_v56, %v7076_v60 }
 0x9d7   : > { %v7254_v31 = vpop.permute.xlu0 %3617  ;;  %v7256_v3 = vpop.permute.xlu1 %3627  ;;  %v3752_v41 = vpack.c.bf16 %v3380_v50, %v3372_v23 }
 0x9d9   : > { %3840 = vmatprep.subr.bf16.mxu0 %v3752_v41  ;;  %v3134_v41 = vrot.slane %v6510_v16, %v7259_v55 }
 0x9da   : > { %3841 = vmatpush1.bf16.msra.mxu0 %v8038_v63 }
 0x9db   : > { %v7266_v62 = vpop.permute.xlu0 %3187  ;;  %3842 = vmatprep.subr.bf16.mxu0 %v3744_v40  ;;  %v7268_v24 = vpop.permute.xlu1 %3619 }
 0x9dc   : > { %v3209_v23 = vsel %vm1131_vm5, %v7089_v54, %v7266_v62  ;;  %v3641_v1 = vsel %vm3633_vm15, %v7190_v4, %v7268_v24  ;;  %v8045_v4 = vpack.c.bf16 %v7164_v25, %v7160_v61  ;;  %v7358_v25 = vsub.s32 5, %v5431_v36 }
 0x9dd   : > { %v7289_v38 = vmul.f32 %v3241_v12, %v3209_v23 }
 0x9de   : > { %3843 = vmatpush1.bf16.msra.mxu0 %v3743_v35 }
 0x9df   : > { %v7278_v50 = vpop.permute.xlu0 %3079  ;;  %3844 = vmatprep.subr.bf16.mxu0 %v8041_v28  ;;  %v7283_v29 = vpop.permute.xlu1 %3189 }
 0x9e0   : > { %v3210_v40 = vsel %vm1131_vm5, %v7114_v47, %v7283_v29  ;;  %v3102_v10 = vsel %vm3095_vm10, %v7112_v51, %v7278_v50 }
 0x9e1   : > { %v7293_v54 = vmul.f32 %v3241_v12, %v3210_v40  ;;  %v7315_v63 = vmul.f32 %v3134_v41, %v3102_v10  ;;  %v8047_v40 = vpack.c.bf16 %v7184_v19, %v7180_v32  ;;  %v8048_v32 = vld [vmem:[#allocation44_spill] sm:$0xff] }
 0x9e2   : > { %3845 = vmatpush1.bf16.msra.mxu0 %v8042_v11 }
 0x9e3   : > { %v3737_v9 = vpack.c.bf16 %v7293_v54, %v7289_v38  ;;  %v7304_v47 = vpop.permute.xlu0 %2971  ;;  %3846 = vmatprep.subr.bf16.mxu0 %v8043_v30  ;;  %v7309_v16 = vpop.permute.xlu1 %3081  ;;  %v8096_v54 = vld [vmem:[#allocation61_spill] sm:$0xff] }
 0x9e4   : > { %v3103_v51 = vsel %vm3095_vm10, %v7132_v34, %v7309_v16  ;;  %v2994_v33 = vsel %vm2987_vm11, %v7130_v8, %v7304_v47  ;;  %v8044_v34 = vpack.c.bf16 %v6924_v53, %v6922_v44  ;;  %v3640_v44 = vsel %vm3633_vm15, %v7170_v48, %v7254_v31 }
 0x9e5   : > { %v7319_v43 = vmul.f32 %v3134_v41, %v3103_v51  ;;  %v2918_v53 = vrot.slane %v6584_v2, %v7259_v55  ;;  %v3704_v8 = vmul.f32 %v3668_v52, %v3641_v1  ;;  %v7353_v12 = vmul.f32 %v3026_v57, %v2994_v33 }
 0x9e6   : > { %3847 = vmatpush1.bf16.msra.mxu0 %v8044_v34  ;;  %v8046_v2 = vpack.c.bf16 %v6964_v49, %v6962_v59  ;;  %v3696_v23 = vmul.f32 %v3668_v52, %v3640_v44  ;;  %v3564_v41 = vrot.slane %v6625_v0, %v7259_v55  ;;  %v8049_v51 = vpack.c.bf16 %v6999_v21, %v6997_v46  ;;  %v8050_v34 = vld [vmem:[#allocation48_spill] sm:$0xff] }
 0x9e7   : > { %v3729_v15 = vpack.c.bf16 %v7319_v43, %v7315_v63  ;;  %v7336_v45 = vpop.permute.xlu0 %2864  ;;  %3848 = vmatprep.subr.bf16.mxu0 %v8045_v4  ;;  %v7341_v35 = vpop.permute.xlu1 %2973  ;;  %v3456_v1 = vrot.slane %v6643_v13, %v7259_v55  ;;  %v3460_v33 = vrot.slane %v6643_v13, %v7358_v25  ;;  %v8102_v63 = vld [vmem:[#allocation64_spill] sm:$0xff] }
 0x9e8   : > { %v2995_v60 = vsel %vm2987_vm11, %v7152_v17, %v7341_v35  ;;  %v2887_v48 = vsel %vm2880_vm12, %v7150_v6, %v7336_v45  ;;  %v3568_v6 = vrot.slane %v6625_v0, %v7358_v25  ;;  %v3776_v11 = vpack.c.bf16 %v3704_v8, %v3696_v23  ;;  %v8053_v23 = vld [vmem:[#allocation86_spill] sm:$0xff] }
 0x9e9   : > { %v7355_v61 = vmul.f32 %v3026_v57, %v2995_v60  ;;  %v7380_v59 = vmul.f32 %v2918_v53, %v2887_v48  ;;  %v8052_v8 = vpack.c.bf16 %v7202_v7, %v7200_v22  ;;  %v3684_v43 = vrot.slane %v6991_v56, %v8102_v63 }
 0x9ea   : > { %3849 = vmatpush1.bf16.msra.mxu0 %v8046_v2 }
 0x9eb   : > { %v3721_v17 = vpack.c.bf16 %v7355_v61, %v7353_v12  ;;  %v3514_v28 = vpop.permute.xlu0 %3513  ;;  %3850 = vmatprep.subr.bf16.mxu0 %v8047_v40  ;;  %v7372_v36 = vpop.permute.xlu1 %2866  ;;  %v8107_v12 = vld [vmem:[#allocation45_spill] sm:$0xff] }
 0x9ec   : > { %v2888_v49 = vsel %vm2880_vm12, %v7172_v42, %v7372_v36  ;;  %v3528_v19 = vsel %vm3525_vm13, %v3514_v28, %v8048_v32  ;;  %v3530_v30 = vsel %vm3525_vm13, %v7192_v26, %v3514_v28  ;;  %v8056_v32 = vld [vmem:[#allocation52_spill] sm:$0xff] }
 0x9ed   : > { %v7384_v10 = vmul.f32 %v2918_v53, %v2888_v49  ;;  %v3589_v21 = vmul.f32 %v3564_v41, %v3530_v30  ;;  %v3590_v52 = vmul.f32 %v3568_v6, %v3528_v19  ;;  %v8051_v53 = vld [vmem:[#allocation47_spill] sm:$0xff]  ;;  %v3352_v49 = vrot.slane %v6673_v14, %v7358_v25  ;;  %v8057_v19 = vld [vmem:[#allocation41_spill] sm:$0xff] }
 0x9ee   : > { %3851 = vmatpush1.bf16.msra.mxu0 %v8049_v51 }
 0x9ef   : > { %v3713_v42 = vpack.c.bf16 %v7384_v10, %v7380_v59  ;;  %v3406_v57 = vpop.permute.xlu0 %3405  ;;  %3866 = vmatprep.subr.bf16.mxu0 %v3776_v11  ;;  %v3516_v0 = vpop.permute.xlu1 %3515 }
 0x9f0   : > { %v3529_v26 = vsel %vm3525_vm13, %v3516_v0, %v8050_v34  ;;  %v3531_v46 = vsel %vm3525_vm13, %v7214_v5, %v3516_v0  ;;  %v3420_v60 = vsel %vm3417_vm14, %v3406_v57, %v8051_v53  ;;  %v3422_v13 = vsel %vm3417_vm14, %v7212_v27, %v3406_v57  ;;  %v8054_v5 = vld [vmem:[#allocation84_spill] sm:$0xff]  ;;  %v8059_v0 = vld [vmem:[#allocation83_spill] sm:$0xff] }
 0x9f1   : > { %v3597_v4 = vmul.f32 %v3564_v41, %v3531_v46  ;;  %v3598_v44 = vmul.f32 %v3568_v6, %v3529_v26  ;;  %v8055_v28 = vpack.c.bf16 %v8053_v23, %v8054_v5  ;;  %v3348_v41 = vrot.slane %v6673_v14, %v7259_v55  ;;  %v8058_v14 = vld [vmem:[#allocation85_spill] sm:$0xff]  ;;  %v8061_v26 = vld [vmem:[#allocation51_spill] sm:$0xff] }
 0x9f2   : > { %3867 = vmatpush2.bf16.msra.mxu0 %v8052_v8  ;;  %v3481_v11 = vmul.f32 %v3456_v1, %v3422_v13  ;;  %v3482_v27 = vmul.f32 %v3460_v33, %v3420_v60  ;;  %v8060_v34 = vpack.c.bf16 %v8058_v14, %v8059_v0  ;;  %v8065_v60 = vld [vmem:[#allocation54_spill] sm:$0xff]  ;;  %v8066_v5 = vld [vmem:[#allocation89_spill] sm:$0xff]  ;;  %v8073_v14 = vld [vmem:[#allocation35_spill] sm:$0xff] }
 0x9f3   : > { %v3769_v48 = vpack.c.bf16 %v3597_v4, %v3589_v21  ;;  %v3299_v2 = vpop.permute.xlu0 %3298  ;;  %3922 = vmatprep.subr.bf16.mxu0 %v8055_v28  ;;  %v3770_v40 = vpack.c.bf16 %v3598_v44, %v3590_v52  ;;  %v3408_v6 = vpop.permute.xlu1 %3407  ;;  %v8063_v52 = vld [vmem:[#allocation88_spill] sm:$0xff]  ;;  %v8067_v28 = vld [vmem:[#allocation87_spill] sm:$0xff] }
 0x9f4   : > { %v3421_v22 = vsel %vm3417_vm14, %v3408_v6, %v8056_v32  ;;  %v3423_v7 = vsel %vm3417_vm14, %v7228_v37, %v3408_v6  ;;  %v3314_v30 = vsel %vm1161_vm4, %v7226_v58, %v3299_v2  ;;  %v3312_v46 = vsel %vm1161_vm4, %v3299_v2, %v8061_v26  ;;  %v8062_v37 = vld [vmem:[#allocation90_spill] sm:$0xff]  ;;  %v8074_v0 = vld [vmem:[#allocation36_spill] sm:$0xff]  ;;  %v4649_v26 = vld [vmem:[#allocation5 + $0x18] sm:$0xff] }
 0x9f5   : > { %3869 = vmatmul.mubr.bf16.vlgmr.msra.gmra.mxu0 %v8057_v19  ;;  %v3489_v51 = vmul.f32 %v3456_v1, %v3423_v7  ;;  %v3490_v57 = vmul.f32 %v3460_v33, %v3421_v22  ;;  %3879 = vmatprep.subr.bf16.mxu1 %v3770_v40  ;;  %v8064_v4 = vpack.c.bf16 %v8062_v37, %v8063_v52  ;;  %v4648_v1 = vld [vmem:[%s7962_s11 + $0x4] ss:$8 sps:$4 sm:$0xff]   ;;  %v8076_v52 = vld [vmem:[#allocation93_spill] sm:$0xff] }
 0x9f6   : > { %3923 = vmatpush1.bf16.msra.mxu0 %v8060_v34  ;;  %3880 = vmatpush1.bf16.msra.mxu1 %v3769_v48  ;;  %v3373_v33 = vmul.f32 %v3348_v41, %v3314_v30  ;;  %v3374_v48 = vmul.f32 %v3352_v49, %v3312_v46  ;;  %v8068_v40 = vpack.c.bf16 %v8066_v5, %v8067_v28  ;;  %v8083_v5 = vld [vmem:[#allocation34_spill] sm:$0xff] }
 0x9f7   : > { %v3192_v21 = vpop.permute.xlu0 %3191  ;;  %3924 = vmatprep.subr.bf16.mxu0 %v8064_v4  ;;  %v3761_v44 = vpack.c.bf16 %v3489_v51, %v3481_v11  ;;  %v3301_v53 = vpop.permute.xlu1 %3300  ;;  %v3762_v58 = vpack.c.bf16 %v3490_v57, %v3482_v27  ;;  %4455 = vmatprep.mubr.msk.bf16.mxu0 %vm1300_vm1, %v4648_v1  ;;  %v8069_v11 = vld [vmem:[#allocation94_spill] sm:$0xff]  ;;  %v8070_v27 = vld [vmem:[#allocation92_spill] sm:$0xff]  ;;  %v3245_v22 = vrot.slane %v6476_v20, %v7358_v25  ;;  %v8077_v4 = vld [vmem:[#allocation91_spill] sm:$0xff] }
 0x9f8   : > { %v3313_v13 = vsel %vm1161_vm4, %v3301_v53, %v8065_v60  ;;  %v3315_v8 = vsel %vm1161_vm4, %v7245_v18, %v3301_v53  ;;  %v8071_v32 = vpack.c.bf16 %v8069_v11, %v8070_v27  ;;  %v3748_v34 = vpack.c.bf16 %v8074_v0, %v8073_v14  ;;  %v8075_v20 = vld [vmem:[#allocation80_spill] sm:$0xff]  ;;  %v8080_v53 = vld [vmem:[#allocation81_spill] sm:$0xff]  ;;  %v8084_v11 = vld [vmem:[#allocation58_spill] sm:$0xff] }
 0x9f9   : > { %v3381_v2 = vmul.f32 %v3348_v41, %v3315_v8  ;;  %v3382_v23 = vmul.f32 %v3352_v49, %v3313_v13  ;;  %3881 = vmatprep.subr.bf16.mxu1 %v3762_v58  ;;  %v3207_v41 = vsel %vm1131_vm5, %v7266_v62, %v3192_v21  ;;  %v8072_v49 = vld [vmem:[#allocation56_spill] sm:$0xff]  ;;  %v3249_v46 = vrot.slane %v4649_v26, %v8075_v20  ;;  %v8079_v62 = vld [vmem:[#allocation75_spill] sm:$0xff]  ;;  %v8081_v1 = vld [vmem:[#allocation53_spill] sm:$0xff] }
 0x9fa   : > { %3925 = vmatpush1.bf16.msra.mxu0 %v8068_v40  ;;  %3882 = vmatpush1.bf16.msra.mxu1 %v3761_v44  ;;  %v8078_v44 = vpack.c.bf16 %v8076_v52, %v8077_v4  ;;  %v3746_v58 = vpack.c.bf16 %v8080_v53, %v8079_v62  ;;  %v3267_v60 = vmul.f32 %v3245_v22, %v3207_v41  ;;  %v4650_v13 = vld [vmem:[#allocation5 + $0x10] sm:$0xff]  ;;  %v8088_v14 = vld [vmem:[#allocation66_spill] sm:$0xff]  ;;  %v8089_v0 = vld [vmem:[#allocation65_spill] sm:$0xff] }
 0x9fb   : > { %v3084_v6 = vpop.permute.xlu0 %3083  ;;  %3926 = vmatprep.subr.bf16.mxu0 %v8071_v32  ;;  %v3753_v7 = vpack.c.bf16 %v3381_v2, %v3373_v33  ;;  %v3194_v30 = vpop.permute.xlu1 %3193  ;;  %v3754_v18 = vpack.c.bf16 %v3382_v23, %v3374_v48  ;;  %v3205_v33 = vsel %vm1131_vm5, %v3192_v21, %v8081_v1  ;;  %v3138_v8 = vrot.slane %v4650_v13, %v7358_v25  ;;  %v8082_v23 = vld [vmem:[#allocation33_spill] sm:$0xff]  ;;  %v8085_v32 = vld [vmem:[#allocation62_spill] sm:$0xff]  ;;  %v4651_v52 = vld [vmem:[#allocation5 + $0x8] sm:$0xff] }
 0x9fc   : > { %v3206_v51 = vsel %vm1131_vm5, %v3194_v30, %v8072_v49  ;;  %v3208_v57 = vsel %vm1131_vm5, %v7283_v29, %v3194_v30  ;;  %v3747_v28 = vpack.c.bf16 %v8083_v5, %v8082_v23  ;;  %v3100_v40 = vsel %vm3095_vm10, %v7278_v50, %v3084_v6  ;;  %v8091_v62 = vld [vmem:[#allocation60_spill] sm:$0xff] }
 0x9fd   : > { %v3275_v37 = vmul.f32 %v3245_v22, %v3208_v57  ;;  %3883 = vmatprep.subr.bf16.mxu1 %v3754_v18  ;;  %v3276_v48 = vmul.f32 %v3249_v46, %v3206_v51  ;;  %v8086_v22 = vld [vmem:[#allocation63_spill] sm:$0xff]  ;;  %v3268_v30 = vmul.f32 %v3249_v46, %v3205_v33  ;;  %v3142_v18 = vrot.slane %v4650_v13, %v8075_v20  ;;  %v8092_v13 = vld [vmem:[#allocation57_spill] sm:$0xff] }
 0x9fe   : > { %3927 = vmatpush1.bf16.msra.mxu0 %v8078_v44  ;;  %3884 = vmatpush1.bf16.msra.mxu1 %v3753_v7  ;;  %v3745_v7 = vpack.c.bf16 %v8086_v22, %v8085_v32  ;;  %v8087_v51 = vld [vmem:[#allocation55_spill] sm:$0xff]  ;;  %v3030_v46 = vrot.slane %v4651_v52, %v7358_v25  ;;  %v3034_v1 = vrot.slane %v4651_v52, %v8075_v20 }
 0x9ff   : > { %v2976_v29 = vpop.permute.xlu0 %2975  ;;  %3928 = vmatprep.subr.bf16.mxu0 %v3748_v34  ;;  %v3086_v2 = vpop.permute.xlu1 %3085  ;;  %3885 = vmatprep.subr.bf16.mxu1 %v3746_v58  ;;  %v3738_v49 = vpack.c.bf16 %v3275_v37, %v3267_v60  ;;  %v3098_v50 = vsel %vm3095_vm10, %v3084_v6, %v8087_v51  ;;  %v8090_v34 = vpack.c.bf16 %v8088_v14, %v8089_v0  ;;  %v8097_v22 = vld [vmem:[#allocation59_spill] sm:$0xff] }
 0xa00   : > { %v3099_v21 = vsel %vm3095_vm10, %v3086_v2, %v8084_v11  ;;  %v3101_v27 = vsel %vm3095_vm10, %v7309_v16, %v3086_v2  ;;  %v3160_v16 = vmul.f32 %v3138_v8, %v3100_v40  ;;  %v3739_v26 = vpack.c.bf16 %v3276_v48, %v3268_v30  ;;  %v8093_v48 = vld [vmem:[#allocation68_spill] sm:$0xff]  ;;  %v8094_v2 = vld [vmem:[#allocation67_spill] sm:$0xff] }
 0xa01   : > { %v3168_v41 = vmul.f32 %v3138_v8, %v3101_v27  ;;  %v3169_v4 = vmul.f32 %v3142_v18, %v3099_v21  ;;  %v2992_v37 = vsel %vm2987_vm11, %v7304_v47, %v2976_v29  ;;  %v3161_v58 = vmul.f32 %v3142_v18, %v3098_v50  ;;  %v8099_v51 = vld [vmem:[#allocation71_spill] sm:$0xff] }
 0xa02   : > { %3929 = vmatpush1.bf16.msra.mxu0 %v3747_v28  ;;  %3886 = vmatpush1.bf16.msra.mxu1 %v3745_v7  ;;  %v2990_v8 = vsel %vm2987_vm11, %v2976_v29, %v8092_v13  ;;  %v8095_v23 = vpack.c.bf16 %v8093_v48, %v8094_v2  ;;  %v4652_v28 = vld [vmem:[#allocation5] sm:$0xff] }
 0xa03   : > { %v2869_v57 = vpop.permute.xlu0 %2868  ;;  %3930 = vmatprep.subr.bf16.mxu0 %v8090_v34  ;;  %3887 = vmatprep.subr.bf16.mxu1 %v3738_v49  ;;  %v3730_v60 = vpack.c.bf16 %v3168_v41, %v3160_v16  ;;  %v3731_v5 = vpack.c.bf16 %v3169_v4, %v3161_v58  ;;  %v2922_v40 = vrot.slane %v4652_v28, %v7358_v25  ;;  %v8098_v49 = vld [vmem:[#allocation72_spill] sm:$0xff] }
 0xa04   : > { %v2978_v44 = vpop.permute.xlu1 %2977  ;;  %v2926_v27 = vrot.slane %v4652_v28, %v8075_v20  ;;  %v2885_v38 = vsel %vm2880_vm12, %v7336_v45, %v2869_v57  ;;  %v3053_v32 = vmul.f32 %v3034_v1, %v2990_v8  ;;  %v2883_v7 = vsel %vm2880_vm12, %v2869_v57, %v8097_v22 }
 0xa05   : > { %v2991_v6 = vsel %vm2987_vm11, %v2978_v44, %v8091_v62  ;;  %v2993_v53 = vsel %vm2987_vm11, %v7341_v35, %v2978_v44  ;;  %v3052_v35 = vmul.f32 %v3030_v46, %v2992_v37  ;;  %v3676_v41 = vrot.slane %v6991_v56, %v7358_v25  ;;  %v8103_v37 = vld [vmem:[#allocation42_spill] sm:$0xff] }
 0xa06   : > { %v3060_v33 = vmul.f32 %v3030_v46, %v2993_v53  ;;  %3931 = vmatpush1.bf16.msra.mxu0 %v3739_v26  ;;  %3888 = vmatpush1.bf16.msra.mxu1 %v3737_v9  ;;  %v3061_v11 = vmul.f32 %v3034_v1, %v2991_v6  ;;  %v8100_v50 = vpack.c.bf16 %v8098_v49, %v8099_v51  ;;  %v8101_v26 = vld [vmem:[#allocation32_spill] sm:$0xff]  ;;  %v8104_v6 = vld [vmem:[#allocation79_spill] sm:$0xff]  ;;  %v8105_v53 = vld [vmem:[#allocation78_spill] sm:$0xff] }
 0xa07   : > { %v3622_v47 = vpop.permute.xlu0 %3621  ;;  %3932 = vmatprep.subr.bf16.mxu0 %v8095_v23  ;;  %3889 = vmatprep.subr.bf16.mxu1 %v3730_v60  ;;  %v3680_v57 = vrot.slane %v6991_v56, %v8075_v20  ;;  %v2945_v16 = vmul.f32 %v2926_v27, %v2883_v7  ;;  %v3672_v44 = vrot.slane %v6991_v56, %v7259_v55  ;;  %v7597_v49 = vld [vmem:[%s8109_s2] sm:$0xff]   ;;  %s4837_s2 = scalar_lea.vmem %s7668_s13, 4096 }
 0xa08   : > { %v2871_v21 = vpop.permute.xlu1 %2870  ;;  %v3722_v18 = vpack.c.bf16 %v3060_v33, %v3052_v35  ;;  %v3723_v14 = vpack.c.bf16 %v3061_v11, %v3053_v32  ;;  %v3636_v25 = vsel %vm3633_vm15, %v3622_v47, %v8101_v26  ;;  %v8106_v58 = vpack.c.bf16 %v8104_v6, %v8105_v53  ;;  %p4838_p9 = scmp.ne.s32.totalorder %s7668_s13, %s4837_s2  ;;  %p4845_p1 = scmp.lt.s32.totalorder %s4843_s3, %s4837_s2 }
 0xa09   : > { %v2884_v9 = vsel %vm2880_vm12, %v2871_v21, %v8096_v54  ;;  %v2886_v29 = vsel %vm2880_vm12, %v7372_v36, %v2871_v21  ;;  %v2944_v36 = vmul.f32 %v2922_v40, %v2885_v38  ;;  %v3698_v1 = vmul.f32 %v3676_v41, %v3636_v25 }
 0xa0a   : > { %v2952_v30 = vmul.f32 %v2922_v40, %v2886_v29  ;;  %3933 = vmatpush1.bf16.msra.mxu0 %v3731_v5  ;;  %3890 = vmatpush1.bf16.msra.mxu1 %v3729_v15  ;;  %v2953_v0 = vmul.f32 %v2926_v27, %v2884_v9  ;;  %p4839_p11 = pnand %p4838_p9, %p8135_p12  ;;  %p4846_p3 = por %p4845_p1, %p4844_p5 }
 0xa0b   : > { %v3630_v45 = vpop.permute.xlu0 %3629  ;;  %3934 = vmatprep.subr.bf16.mxu0 %v8100_v50  ;;  %3891 = vmatprep.subr.bf16.mxu1 %v3722_v18 }
 0xa0c   : > { %v3624_v34 = vpop.permute.xlu1 %3623  ;;  %v3634_v52 = vsel %vm3633_vm15, %v8101_v26, %v3630_v45  ;;  %v3714_v4 = vpack.c.bf16 %v2952_v30, %v2944_v36  ;;  %v3648_v62 = vsel %vm3633_vm15, %v3630_v45, %v8103_v37  ;;  %v3715_v33 = vpack.c.bf16 %v2953_v0, %v2945_v16  ;;  %p4840_p0 = pneg %p4839_p11 }
 0xa0d   : > { %v3637_v15 = vsel %vm3633_vm15, %v3624_v34, %v7256_v3  ;;  %v3639_v20 = vsel %vm3633_vm15, %v7268_v24, %v3624_v34  ;;  %v3638_v24 = vsel %vm3633_vm15, %v7254_v31, %v3622_v47  ;;  %v3699_v56 = vmul.f32 %v3680_v57, %v3634_v52 }
 0xa0e   : > { %v3706_v46 = vmul.f32 %v3676_v41, %v3637_v15  ;;  %3935 = vmatpush1.bf16.msra.mxu0 %v3723_v14  ;;  %3892 = vmatpush1.bf16.msra.mxu1 %v3721_v17  ;;  %v3705_v55 = vmul.f32 %v3672_v44, %v3639_v20  ;;  %v3700_v17 = vmul.f32 %v3684_v43, %v3648_v62  ;;  %p4847_p4 = pnand %p4846_p3, %p4840_p0 }
 0xa0f   : > { %3936 = vmatprep.subr.bf16.mxu0 %v8106_v58  ;;  %3893 = vmatprep.subr.bf16.mxu1 %v3714_v4  ;;  %v3697_v31 = vmul.f32 %v3672_v44, %v3638_v24 }
 0xa10   : > { %v3632_v60 = vpop.permute.xlu1 %3631  ;;  %v3778_v2 = vpack.c.bf16 %v3706_v46, %v3698_v1 }
 0xa11   : > { %v3635_v13 = vsel %vm3633_vm15, %v7256_v3, %v3632_v60  ;;  %v3649_v61 = vsel %vm3633_vm15, %v3632_v60, %v8107_v12  ;;  %v3777_v35 = vpack.c.bf16 %v3705_v55, %v3697_v31 }
 0xa12   : > { %v3707_v8 = vmul.f32 %v3680_v57, %v3635_v13  ;;  %v3708_v48 = vmul.f32 %v3684_v43, %v3649_v61  ;;  %3937 = vmatpush1.bf16.msra.mxu0 %v3715_v33  ;;  %3894 = vmatpush1.bf16.msra.mxu1 %v3713_v42 }
 0xa13   : > { %3909 = vmatprep.subr.bf16.mxu1 %v3778_v2 }
 0xa14   : > { %v3779_v47 = vpack.c.bf16 %v3707_v8, %v3699_v56  ;;  %v3780_v23 = vpack.c.bf16 %v3708_v48, %v3700_v17 }
 0xa16   : > { %3952 = vmatprep.subr.bf16.mxu0 %v3780_v23  ;;  %3910 = vmatpush2.bf16.msra.mxu1 %v3777_v35 }
 0xa17   : > { %3953 = vmatpush2.bf16.msra.mxu0 %v3779_v47 }
 0xa18   : > { %v3970_v59 = vpop.permute.xlu0 %3969 }
 0xa19   : > { %3912 = vmatmul.mubr.bf16.vlgmr.msra.gmra.mxu1 %v8057_v19 }
 0xa1a   : > { %3955 = vmatmul.mubr.bf16.vlgmr.msra.gmra.mxu0 %v8057_v19  ;;  %4083 = vmatprep.mubr.bf16.mxu1 %v8108_v39 }
 0xa1b   : > { %4126 = vmatprep.mubr.bf16.mxu0 %v8108_v39 }
 0xa1d   : > { %v7586_v3 = vpop.permute.xlu1 %3974  ;;  %v3995_v21 = vpop.permute.xlu0 %3994 }
 0xa22   : > { %v7588_v11 = vpop.permute.xlu1 %3998 }
 0xa76   : > { %v3827_v5 = vpop.f32.mrf.mxu1 }
 0xa77   : > { %v3977_v28 = vmul.f32 %v3970_v59, %v3827_v5 }
 0xa78   : > { %v3829_v10 = vpop.f32.mrf.mxu1 }
 0xa79   : > { %v3978_v42 = vmul.f32 %v3970_v59, %v3829_v10  ;;  %v4001_v29 = vadd.f32 %v3995_v21, %v3977_v28 }
 0xa7a   : > { %v3831_v40 = vpop.f32.mrf.mxu1 }
 0xa7b   : > { %v3985_v27 = vmul.f32 %v7586_v3, %v3831_v40  ;;  %v4002_v54 = vadd.f32 %v3995_v21, %v3978_v42  ;;  %v4017_v18 = vmax.f32 %v4001_v29, 0.0  ;;  %v8110_v29 = vld [vmem:[#allocation23_spill] sm:$0xff] }
 0xa7c   : > { %v3833_v38 = vpop.f32.mrf.mxu1 }
 0xa7d   : > { %v3986_v19 = vmul.f32 %v7586_v3, %v3833_v38  ;;  %v4009_v9 = vadd.f32 %v7588_v11, %v3985_v27  ;;  %v4018_v7 = vmax.f32 %v4002_v54, 0.0 }
 0xa7f   : > { %v4010_v32 = vadd.f32 %v7588_v11, %v3986_v19  ;;  %v4025_v22 = vmax.f32 %v4009_v9, 0.0 }
 0xa81   : > { %v4026_v30 = vmax.f32 %v4010_v32, 0.0  ;;  %v4033_v45 = vpack.c.bf16 %v4025_v22, %v4017_v18  ;;  %v8111_v32 = vunpack.c.l.bf16 %v8110_v29 }
 0xa83   : > { %v4034_v41 = vpack.c.bf16 %v4026_v30, %v4018_v7  ;;  %v8112_v30 = vunpack.c.h.bf16 %v8110_v29 }
 0xa85   : > { %4065 = vmatprep.subr.bf16.mxu1 %v4034_v41 }
 0xa86   : > { %4066 = vmatpush1.bf16.msra.mxu1 %v4033_v45  ;;  %v8113_v45 = vld [vmem:[#allocation24_spill] sm:$0xff] }
 0xa89   : > { %4457 = vmatmul.mubr.msk.bf16.vlgmr.msra.gmra.mxu1 %vm1300_vm1, %v7597_v49 }
 0xa8a   : > { %4169 = vmatprep.mubr.bf16.mxu1 %v8108_v39 }
 0xab5   : > { %v3870_v51 = vpop.f32.mrf.mxu0 }
 0xab6   : > { %v3979_v14 = vmul.f32 %v3970_v59, %v3870_v51  ;;  %v8114_v51 = vunpack.c.l.bf16 %v8113_v45 }
 0xab7   : > { %v3872_v50 = vpop.f32.mrf.mxu0 }
 0xab8   : > { %v3980_v36 = vmul.f32 %v3970_v59, %v3872_v50  ;;  %v4003_v63 = vadd.f32 %v3995_v21, %v3979_v14 }
 0xab9   : > { %v3874_v0 = vpop.f32.mrf.mxu0 }
 0xaba   : > { %v3987_v57 = vmul.f32 %v7586_v3, %v3874_v0  ;;  %v4004_v16 = vadd.f32 %v3995_v21, %v3980_v36  ;;  %v4019_v46 = vmax.f32 %v4003_v63, 0.0 }
 0xabb   : > { %v3876_v34 = vpop.f32.mrf.mxu0 }
 0xabc   : > { %v4011_v26 = vadd.f32 %v7588_v11, %v3987_v57  ;;  %v3988_v25 = vmul.f32 %v7586_v3, %v3876_v34  ;;  %v4020_v52 = vmax.f32 %v4004_v16, 0.0  ;;  %v8116_v57 = vld [vmem:[#allocation27_spill] sm:$0xff] }
 0xabd   : > { %v8117_v34 = vunpack.c.l.bf16 %v8116_v57 }
 0xabe   : > { %v4012_v43 = vadd.f32 %v7588_v11, %v3988_v25  ;;  %v4027_v15 = vmax.f32 %v4011_v26, 0.0  ;;  %v8118_v25 = vunpack.c.h.bf16 %v8116_v57 }
 0xac0   : > { %v4028_v20 = vmax.f32 %v4012_v43, 0.0  ;;  %v4035_v44 = vpack.c.bf16 %v4027_v15, %v4019_v46  ;;  %v8119_v15 = vld [vmem:[#allocation28_spill] sm:$0xff] }
 0xac2   : > { %v4036_v4 = vpack.c.bf16 %v4028_v20, %v4020_v52  ;;  %v8120_v52 = vunpack.c.l.bf16 %v8119_v15 }
 0xac4   : > { %4108 = vmatprep.subr.bf16.mxu0 %v4036_v4  ;;  %v8121_v4 = vunpack.c.h.bf16 %v8119_v15 }
 0xac5   : > { %4109 = vmatpush1.bf16.msra.mxu0 %v4035_v44 }
 0xac8   : > { %4458 = vmatmul.mubr.msk.bf16.vlgmr.msra.gmra.mxu0 %vm1300_vm1, %v7597_v49 }
 0xac9   : > { %4212 = vmatprep.mubr.bf16.mxu0 %v8108_v39 }
 0xad9   : > { %v3913_v37 = vpop.f32.mrf.mxu1 }
 0xada   : > { %v3956_v62 = vpop.f32.mrf.mxu0  ;;  %v3981_v1 = vmul.f32 %v3970_v59, %v3913_v37 }
 0xadb   : > { %v3915_v6 = vpop.f32.mrf.mxu1  ;;  %v3983_v33 = vmul.f32 %v3970_v59, %v3956_v62 }
 0xadc   : > { %v3958_v53 = vpop.f32.mrf.mxu0  ;;  %v3982_v58 = vmul.f32 %v3970_v59, %v3915_v6  ;;  %v4005_v31 = vadd.f32 %v3995_v21, %v3981_v1  ;;  %v8122_v6 = vld [vmem:[#allocation29_spill] sm:$0xff] }
 0xadd   : > { %v3984_v24 = vmul.f32 %v3970_v59, %v3958_v53  ;;  %v3917_v60 = vpop.f32.mrf.mxu1  ;;  %v4007_v47 = vadd.f32 %v3995_v21, %v3983_v33  ;;  %v8123_v53 = vunpack.c.l.bf16 %v8122_v6 }
 0xade   : > { %v3960_v56 = vpop.f32.mrf.mxu0  ;;  %v3989_v55 = vmul.f32 %v7586_v3, %v3917_v60  ;;  %v4006_v17 = vadd.f32 %v3995_v21, %v3982_v58  ;;  %v4021_v38 = vmax.f32 %v4005_v31, 0.0 }
 0xadf   : > { %v3991_v13 = vmul.f32 %v7586_v3, %v3960_v56  ;;  %v3919_v12 = vpop.f32.mrf.mxu1  ;;  %v4008_v8 = vadd.f32 %v3995_v21, %v3984_v24  ;;  %v4023_v54 = vmax.f32 %v4007_v47, 0.0  ;;  %v8124_v24 = vld [vmem:[#allocation25_spill] sm:$0xff]  ;;  %v8130_v47 = vld [vmem:[#allocation26_spill] sm:$0xff] }
 0xae0   : > { %v3962_v61 = vpop.f32.mrf.mxu0  ;;  %v3990_v48 = vmul.f32 %v7586_v3, %v3919_v12  ;;  %v4013_v23 = vadd.f32 %v7588_v11, %v3989_v55  ;;  %v4022_v42 = vmax.f32 %v4006_v17, 0.0  ;;  %v8125_v1 = vunpack.c.l.bf16 %v8124_v24 }
 0xae1   : > { %v3992_v2 = vmul.f32 %v7586_v3, %v3962_v61  ;;  %v4015_v35 = vadd.f32 %v7588_v11, %v3991_v13  ;;  %v4024_v28 = vmax.f32 %v4008_v8, 0.0  ;;  %v8126_v55 = vunpack.c.h.bf16 %v8122_v6 }
 0xae2   : > { %v4014_v39 = vadd.f32 %v7588_v11, %v3990_v48  ;;  %v4029_v59 = vmax.f32 %v4013_v23, 0.0  ;;  %v8127_v12 = vunpack.c.h.bf16 %v8124_v24  ;;  %v8128_v48 = vld [vmem:[#allocation30_spill] sm:$0xff]  ;;  %v8131_v23 = vunpack.c.l.bf16 %v8130_v47 }
 0xae3   : > { %v4016_v5 = vadd.f32 %v7588_v11, %v3992_v2  ;;  %v4031_v10 = vmax.f32 %v4015_v35, 0.0  ;;  %v8129_v2 = vunpack.c.l.bf16 %v8128_v48 }
 0xae4   : > { %v4030_v40 = vmax.f32 %v4014_v39, 0.0  ;;  %v4037_v19 = vpack.c.bf16 %v4029_v59, %v4021_v38  ;;  %v8133_v59 = vunpack.c.h.bf16 %v8128_v48 }
 0xae5   : > { %v4032_v27 = vmax.f32 %v4016_v5, 0.0  ;;  %v4039_v9 = vpack.c.bf16 %v4031_v10, %v4023_v54 }
 0xae6   : > { %v4038_v3 = vpack.c.bf16 %v4030_v40, %v4022_v42  ;;  %v8134_v42 = vunpack.c.h.bf16 %v8130_v47 }
 0xae7   : > { %v4040_v21 = vpack.c.bf16 %v4032_v27, %v4024_v28 }
 0xae8   : > { %4151 = vmatprep.subr.bf16.mxu1 %v4038_v3 }
 0xae9   : > { %4194 = vmatprep.subr.bf16.mxu0 %v4040_v21  ;;  %4152 = vmatpush1.bf16.msra.mxu1 %v4037_v19 }
 0xaea   : > { %4195 = vmatpush1.bf16.msra.mxu0 %v4039_v9 }
 0xaec   : > { %4459 = vmatmul.mubr.msk.bf16.vlgmr.msra.gmra.mxu1 %vm1300_vm1, %v7597_v49 }
 0xaed   : > { %4460 = vmatmul.mubr.msk.bf16.vlgmr.msra.gmra.mxu0 %vm1300_vm1, %v7597_v49  ;;  %v8115_v49 = vunpack.c.h.bf16 %v8113_v45 }
 0xb49   : > { %v4085_v11 = vpop.f32.mrf.mxu1 }
 0xb4a   : > { %v4086_v22 = vadd.f32 %v4085_v11, %v8111_v32 }
 0xb4b   : > { %v4087_v7 = vpop.f32.mrf.mxu1 }
 0xb4c   : > { %4223 = vst [vmem:[%s6110_s1 + $0x80] sm:$0xff] %v4086_v22  ;;  %v4088_v18 = vadd.f32 %v4087_v7, %v8112_v30 }
 0xb4d   : > { %v4089_v41 = vpop.f32.mrf.mxu1 }
 0xb4e   : > { %4224 = vst [vmem:[%s6110_s1 + $0x88] sm:$0xff] %v4088_v18  ;;  %v4090_v50 = vadd.f32 %v4089_v41, %v8114_v51 }
 0xb4f   : > { %v4091_v36 = vpop.f32.mrf.mxu1 }
 0xb50   : > { %4231 = vst [vmem:[%s6110_s1 + $0xc0] sm:$0xff] %v4090_v50  ;;  %v4092_v14 = vadd.f32 %v4091_v36, %v8115_v49 }
 0xb52   : > { %4232 = vst [vmem:[%s6110_s1 + $0xc8] sm:$0xff] %v4092_v14 }
 0xb88   : > { %v4128_v0 = vpop.f32.mrf.mxu0 }
 0xb89   : > { %v4129_v16 = vadd.f32 %v4128_v0, %v8117_v34 }
 0xb8a   : > { %v4130_v26 = vpop.f32.mrf.mxu0 }
 0xb8b   : > { %4225 = vst [vmem:[%s6110_s1 + $0x90] sm:$0xff] %v4129_v16  ;;  %v4131_v63 = vadd.f32 %v4130_v26, %v8118_v25 }
 0xb8c   : > { %v4132_v43 = vpop.f32.mrf.mxu0 }
 0xb8d   : > { %4226 = vst [vmem:[%s6110_s1 + $0x98] sm:$0xff] %v4131_v63  ;;  %v4133_v20 = vadd.f32 %v4132_v43, %v8120_v52 }
 0xb8e   : > { %v4134_v46 = vpop.f32.mrf.mxu0 }
 0xb8f   : > { %4233 = vst [vmem:[%s6110_s1 + $0xd0] sm:$0xff] %v4133_v20  ;;  %v4135_v44 = vadd.f32 %v4134_v46, %v8121_v4 }
 0xb91   : > { %4234 = vst [vmem:[%s6110_s1 + $0xd8] sm:$0xff] %v4135_v44 }
 0xbac   : > { %v4171_v37 = vpop.f32.mrf.mxu1 }
 0xbad   : > { %v4214_v62 = vpop.f32.mrf.mxu0  ;;  %v4172_v58 = vadd.f32 %v4171_v37, %v8123_v53 }
 0xbae   : > { %v4215_v33 = vadd.f32 %v4214_v62, %v8125_v1  ;;  %v4173_v60 = vpop.f32.mrf.mxu1 }
 0xbaf   : > { %v4216_v56 = vpop.f32.mrf.mxu0  ;;  %4227 = vst [vmem:[%s6110_s1 + $0xa0] sm:$0xff] %v4172_v58  ;;  %v4174_v13 = vadd.f32 %v4173_v60, %v8126_v55 }
 0xbb0   : > { %4229 = vst [vmem:[%s6110_s1 + $0xb0] sm:$0xff] %v4215_v33  ;;  %v4217_v61 = vadd.f32 %v4216_v56, %v8127_v12  ;;  %v4175_v17 = vpop.f32.mrf.mxu1 }
 0xbb1   : > { %v4218_v8 = vpop.f32.mrf.mxu0  ;;  %4228 = vst [vmem:[%s6110_s1 + $0xa8] sm:$0xff] %v4174_v13  ;;  %v4176_v31 = vadd.f32 %v4175_v17, %v8129_v2 }
 0xbb2   : > { %4230 = vst [vmem:[%s6110_s1 + $0xb8] sm:$0xff] %v4217_v61  ;;  %v4219_v35 = vadd.f32 %v4218_v8, %v8131_v23  ;;  %v4177_v39 = vpop.f32.mrf.mxu1 }
 0xbb3   : > { %v4220_v5 = vpop.f32.mrf.mxu0  ;;  %4235 = vst [vmem:[%s6110_s1 + $0xe0] sm:$0xff] %v4176_v31  ;;  %v4178_v10 = vadd.f32 %v4177_v39, %v8133_v59 }
 0xbb4   : > { %4237 = vst [vmem:[%s6110_s1 + $0xf0] sm:$0xff] %v4219_v35  ;;  %v4221_v28 = vadd.f32 %v4220_v5, %v8134_v42 }
 0xbb5   : > { %4236 = vst [vmem:[%s6110_s1 + $0xe8] sm:$0xff] %v4178_v10 }
 0xbb6   : > { %4238 = vst [vmem:[%s6110_s1 + $0xf8] sm:$0xff] %v4221_v28 }
 0xbb7   : > { %4850 = shalt.err (!%p4847_p4)
}
 0xbb8   : > { %s4851_s1 = scalar_lea.hbm %s7666_s25, 4096  ;;  %s4855_s7 = scalar_lea.hbm %s8132_s29, 8192 }
 0xbb9   : > { %p4852_p10 = scmp.ne.s32.totalorder %s7666_s25, %s4851_s1  ;;  %p4856_p7 = scmp.lt.s32.totalorder %s7666_s25, %s8132_s29 }
 0xbba   : > { %p4857_p2 = scmp.lt.s32.totalorder %s4855_s7, %s4851_s1 }
 0xbbb   : > { %p4853_p6 = pnand %p4852_p10, %p8135_p12 }
 0xbbc   : > { %p4858_p8 = por %p4857_p2, %p4856_p7 }
 0xbbd   : > { %p4854_p13 = pneg %p4853_p6 }
 0xbbf   : > { %p4859_p9 = pnand %p4858_p8, %p4854_p13 }
 0xbc1   : > { %4862 = shalt.err (!%p4859_p9)
}
 0xbc2   : > { %s4944_s2 = smov 1024   ;;  %s4945_s8 = smov 64  }
 0xbc3   : > { %s8136_s3 = scalar_lea.sflag [#allocation4], %s5255_s27 }
 0xbc4   : > { %4495 = dma.vmem_to_hbm [thread:$0]  (%p8135_p12), %s7668_s13, 4096, %s7666_s25, %s8136_s3, %s4944_s2, %s4944_s2, %s4945_s8  }
 0xbc5 PF: > { %s4268_s0 = sand.u32 1, %s4901_s5   ;;  %p8137_p11 = scmp.ne.s32.totalorder %s7914_s24, 0 }
 0xbc6   : > { %p8138_p0 = scmp.ge.s32.totalorder %s4913_s28, 2  ;;  %s4269_s6 = scalar_lea.sflag [#allocation4], %s4268_s0 }
 0xbc8   : > { %p4521_p5 = pnand %p8138_p0, %p8137_p11 }
 0xbca   : > { %p4522_p1 = pneg %p4521_p5 }
 0xbcc   : > { %4896 = dma.done.wait (%p4522_p1), %s4269_s6, 4096  }
 0xbcd   : > { %4898 = vsyncadd (%p4522_p1), %s4269_s6, 4294963200  ;;  %s8139_s28 = sld [smem:[#allocation21_spill]]  ;;  %s8142_s5 = smov %s4905_s26 }
 0xbce   : > { %s8140_s4 = sld [smem:[#allocation20_spill]] }
 0xbcf   : > { %s8141_s27 = sld [smem:[#allocation22_spill]] }
 0xbd3   : > { %p40_p3 = scmp.ge.s32.totalorder %s8139_s28, 4  }
 0xbd4   : > { %s8143_s26 = smov %s8140_s4 }
 0xbd5   :  { %42 = sbr.rel (!%p40_p3) target bundleno = 25 (0x19), region = 202 }
 0xbda   :  { %4274 = vsyncpa [#allocation3], 1 }
 0xbdb   :  { %4276 = vsyncpa [#allocation3 + $0x1], 1 }
 0xbdc   :  { %4277 = vsyncpa [#allocation6], 1 }
 0xbdd   :  { %4278 = vsyncpa [#allocation9], 1 }
 0xbde   :  { %4279 = vsyncpa [#allocation12], 1 }
 0xbdf   :  { %4280 = vsyncpa [#allocation4], 1 }
 0xbe0   :  { %4282 = vsyncpa [#allocation4 + $0x1], 1 }

</bundles_post_ra>
